<compile_context>
chip_gen: v7x
topology: tpu7x:2x2x1
jax: 0.10.0
libtpu: 0.0.40
codegen_flags: <defaults>
</compile_context>

<pallas_src>
import jax
import jax.numpy as jnp
from jax import lax
from jax.experimental import pallas as pl
from jax.experimental.pallas import tpu as pltpu


_PAD = 128  # lane-aligned halo on each side of the flattened spatial axis


def _make_kernel(H, W, cin, c0, c1, c2):
    HW = H * W
    P = _PAD
    HWP = HW + 2 * P

    def kernel(ts_ref, x_ref, w0_ref, b0_ref, w1_ref, b1_ref, w2_ref, b2_ref,
               mask_ref, x0_ref, apad_ref):
        ts = ts_ref[0]

        # Row-wrap keep-masks for the dx = -1 / +1 taps, hoisted once per
        # kernel invocation and applied to the small (cout, HW) grouped
        # outputs (never to the (cin, HW) inputs).
        col = lax.broadcasted_iota(jnp.int32, (1, HW), 1) % W
        keep_left = (col >= 1).astype(jnp.float32)        # dx = -1 needs w-1 >= 0
        keep_right = (col < (W - 1)).astype(jnp.float32)  # dx = +1 needs w+1 <  W

        # Zero only the halo columns (lane-aligned blocks); the interior is
        # fully overwritten by every layer, so it is never cleared.
        apad_ref[:, 0:P] = jnp.zeros((cin, P), jnp.float32)
        apad_ref[:, P + HW:HWP] = jnp.zeros((cin, P), jnp.float32)

        def conv3x3(ci, w_ref, b_ref):
            """3x3 SAME conv of apad interior rows [0:ci] -> (cout, HW) f32.

            Nine accumulating matmuls, taps grouped by horizontal offset so
            the row-wrap correction costs two broadcast multiplies on the
            small (cout, HW) outputs."""
            groups = []
            for dx in (-1, 0, 1):
                acc = None
                for dy in (-1, 0, 1):
                    off = dy * W + dx
                    t = (dy + 1) * 3 + (dx + 1)          # tap index ky*3 + kx
                    shifted = apad_ref[0:ci, P + off:P + off + HW]
                    contrib = jnp.dot(w_ref[t], shifted,
                                      preferred_element_type=jnp.float32)
                    acc = contrib if acc is None else acc + contrib
                groups.append(acc)
            return (groups[1] + groups[0] * keep_left + groups[2] * keep_right
                    + b_ref[...])                        # bias (co, 1) broadcast

        # Layer 0: conv(cin -> c0), then * tgt_sparsity.
        apad_ref[0:cin, P:P + HW] = x_ref[0]             # lane-aligned interior
        x0 = conv3x3(cin, w0_ref, b0_ref) * ts           # (c0, HW)
        x0_ref[...] = x0.reshape(1, c0, HW)              # lane-dense store

        # Layer 1: conv(c0 -> c1) on relu(x0).
        apad_ref[0:c0, P:P + HW] = jnp.maximum(x0, 0.0)
        y1 = conv3x3(c0, w1_ref, b1_ref)                 # (c1, HW)

        # Layer 2: conv(c1 -> c2) on relu(y1).
        apad_ref[0:c1, P:P + HW] = jnp.maximum(y1, 0.0)
        y2 = conv3x3(c1, w2_ref, b2_ref)                 # (c2, HW)
        mask_ref[...] = y2.reshape(1, c2, HW)            # lane-dense store

    return kernel


def spatial_mask_forward(x_nchw, tgt_sparsity, params):
    """x_nchw: (N, Cin, H, W) f32.  Returns (mask (N,2,H,W), x0 (N,C0,H,W))."""
    w0, b0, w1, b1, w2, b2 = params          # OIHW weights, (cout,) biases
    N, cin, H, W = x_nchw.shape
    c0, c1, c2 = w0.shape[0], w1.shape[0], w2.shape[0]
    HW = H * W
    HWP = HW + 2 * _PAD

    x_flat = x_nchw.reshape(N, cin, HW)      # free reshape (no HBM round-trip)
    ts = jnp.asarray(tgt_sparsity, jnp.float32).reshape((1,))

    def wtaps(w):   # (co, ci, 3, 3) OIHW -> (9, co, ci) f32, tap t = ky*3 + kx
        co, ci = w.shape[0], w.shape[1]
        return w.transpose(2, 3, 0, 1).reshape(9, co, ci).astype(jnp.float32)

    def bvec(b):    # (co,) -> (co, 1) f32
        return b.reshape(-1, 1).astype(jnp.float32)

    kernel = _make_kernel(H, W, cin, c0, c1, c2)

    mask, x0 = pl.pallas_call(
        kernel,
        out_shape=(
            jax.ShapeDtypeStruct((N, c2, HW), jnp.float32),
            jax.ShapeDtypeStruct((N, c0, HW), jnp.float32),
        ),
        grid=(N,),
        in_specs=[
            pl.BlockSpec(memory_space=pltpu.MemorySpace.SMEM),    # tgt_sparsity
            pl.BlockSpec((1, cin, HW), lambda n: (n, 0, 0)),      # x (channel-major)
            pl.BlockSpec((9, c0, cin), lambda n: (0, 0, 0)),      # w0 taps
            pl.BlockSpec((c0, 1), lambda n: (0, 0)),              # b0
            pl.BlockSpec((9, c1, c0), lambda n: (0, 0, 0)),       # w1 taps
            pl.BlockSpec((c1, 1), lambda n: (0, 0)),              # b1
            pl.BlockSpec((9, c2, c1), lambda n: (0, 0, 0)),       # w2 taps
            pl.BlockSpec((c2, 1), lambda n: (0, 0)),              # b2
        ],
        out_specs=(
            pl.BlockSpec((1, c2, HW), lambda n: (n, 0, 0)),
            pl.BlockSpec((1, c0, HW), lambda n: (n, 0, 0)),
        ),
        scratch_shapes=[
            pltpu.VMEM((cin, HWP), jnp.float32),   # halo-padded activation (only scratch)
        ],
        compiler_params=pltpu.CompilerParams(dimension_semantics=("parallel",)),
    )(ts, x_flat, wtaps(w0), bvec(b0), wtaps(w1), bvec(b1), wtaps(w2), bvec(b2))

    return mask.reshape(N, c2, H, W), x0.reshape(N, c0, H, W)


def reference_forward(x_nchw, tgt_sparsity, params):
    """Plain-JAX reference replicating the PyTorch module (NCHW / OIHW)."""
    w0, b0, w1, b1, w2, b2 = params
    dn = ('NCHW', 'OIHW', 'NCHW')

    def conv(x, w, b):
        y = lax.conv_general_dilated(x, w, (1, 1), 'SAME', dimension_numbers=dn)
        return y + b.reshape(1, -1, 1, 1)

    y0 = conv(x_nchw, w0, b0) * tgt_sparsity
    y1 = conv(jnp.maximum(y0, 0.0), w1, b1)
    y2 = conv(jnp.maximum(y1, 0.0), w2, b2)
    return y2, y0


def init_params(key, input_dim):
    cin = input_dim + input_dim // 8
    c0 = input_dim // 8
    c1 = input_dim // 16
    c2 = 2
    ks = jax.random.split(key, 6)

    def conv_w(k, co, ci):
        scale = 1.0 / jnp.sqrt(9.0 * ci)
        return jax.random.normal(k, (co, ci, 3, 3), jnp.float32) * scale

    w0 = conv_w(ks[0], c0, cin)
    b0 = jax.random.normal(ks[1], (c0,), jnp.float32) * 0.05
    w1 = conv_w(ks[2], c1, c0)
    b1 = jax.random.normal(ks[3], (c1,), jnp.float32) * 0.05
    w2 = conv_w(ks[4], c2, c1)
    b2 = jax.random.normal(ks[5], (c2,), jnp.float32) * 0.05
    return (w0, b0, w1, b1, w2, b2)


if __name__ == "__main__":
    input_dim = 128                      # module default
    N, H, W = 2, 16, 16
    cin = input_dim + input_dim // 8     # 144

    key = jax.random.PRNGKey(0)
    k_x, k_p = jax.random.split(key)
    x = jax.random.normal(k_x, (N, cin, H, W), jnp.float32)   # NCHW (PyTorch layout)
    params = init_params(k_p, input_dim)
    tgt_sparsity = jnp.float32(0.7)

    mask, x0 = spatial_mask_forward(x, tgt_sparsity, params)
    jax.block_until_ready((mask, x0))

    mask_ref, x0_ref = reference_forward(x, tgt_sparsity, params)
    assert mask.shape == (N, 2, H, W) and x0.shape == (N, input_dim // 8, H, W)
    # f32 operands with f32 accumulation; keep bf16-level tolerance to cover
    # any MXU-internal truncation on older generations.
    assert jnp.allclose(x0, x0_ref, rtol=2e-2, atol=2e-2), "x0 mismatch"
    assert jnp.allclose(mask, mask_ref, rtol=2e-2, atol=2e-2), "mask mismatch"

    print("KERNEL_OK")
</pallas_src>

<mosaic_0001>
module attributes {stable_mosaic.version = 11 : i64} {
  func.func @kernel(%arg0: i32, %arg1: memref<1xf32, #tpu.memory_space<smem>>, %arg2: memref<1x144x256xf32, #tpu.memory_space<vmem>>, %arg3: memref<9x16x144xf32, #tpu.memory_space<vmem>>, %arg4: memref<16x1xf32, #tpu.memory_space<vmem>>, %arg5: memref<9x8x16xf32, #tpu.memory_space<vmem>>, %arg6: memref<8x1xf32, #tpu.memory_space<vmem>>, %arg7: memref<9x2x8xf32, #tpu.memory_space<vmem>>, %arg8: memref<2x1xf32, #tpu.memory_space<vmem>>, %arg9: memref<1x2x256xf32, #tpu.memory_space<vmem>>, %arg10: memref<1x16x256xf32, #tpu.memory_space<vmem>>, %arg11: memref<144x512xf32, #tpu.memory_space<vmem>>) attributes {dimension_semantics = [#tpu.dimension_semantics<parallel>], iteration_bounds = array<i64: 2>, scalar_prefetch = 0 : i64, scratch_operands = 1 : i64, tpu.core_type = #tpu.core_type<tc>, window_params = [{transform_indices = @transform_0, window_bounds = array<i64: 1>}, {transform_indices = @transform_1, window_bounds = array<i64: 1, 144, 256>}, {pipeline_mode = #tpu.pipeline_mode<synchronous>, transform_indices = @transform_2, window_bounds = array<i64: 9, 16, 144>}, {pipeline_mode = #tpu.pipeline_mode<synchronous>, transform_indices = @transform_3, window_bounds = array<i64: 16, 1>}, {pipeline_mode = #tpu.pipeline_mode<synchronous>, transform_indices = @transform_4, window_bounds = array<i64: 9, 8, 16>}, {pipeline_mode = #tpu.pipeline_mode<synchronous>, transform_indices = @transform_5, window_bounds = array<i64: 8, 1>}, {pipeline_mode = #tpu.pipeline_mode<synchronous>, transform_indices = @transform_6, window_bounds = array<i64: 9, 2, 8>}, {pipeline_mode = #tpu.pipeline_mode<synchronous>, transform_indices = @transform_7, window_bounds = array<i64: 2, 1>}, {transform_indices = @transform_8, window_bounds = array<i64: 1, 2, 256>}, {transform_indices = @transform_9, window_bounds = array<i64: 1, 16, 256>}]} {
    %c0 = arith.constant 0 : index
    %0 = memref.load %arg1[%c0] : memref<1xf32, #tpu.memory_space<smem>>
    %1 = tpu.iota {dimensions = array<i32: 1>} : vector<1x256xi32>
    %c16_i32 = arith.constant 16 : i32
    %c0_i32 = arith.constant 0 : i32
    %2 = arith.cmpi eq, %c16_i32, %c0_i32 : i32
    %c1_i32 = arith.constant 1 : i32
    %3 = arith.select %2, %c1_i32, %c16_i32 : i32
    %4 = vector.broadcast %3 : i32 to vector<1x256xi32>
    %5 = arith.remsi %1, %4 : vector<1x256xi32>
    %c0_i32_0 = arith.constant 0 : i32
    %6 = vector.broadcast %c0_i32_0 : i32 to vector<1x256xi32>
    %7 = arith.cmpi ne, %5, %6 : vector<1x256xi32>
    %c0_i32_1 = arith.constant 0 : i32
    %8 = vector.broadcast %c0_i32_1 : i32 to vector<1x256xi32>
    %9 = arith.cmpi slt, %5, %8 : vector<1x256xi32>
    %c0_i32_2 = arith.constant 0 : i32
    %10 = arith.cmpi slt, %3, %c0_i32_2 : i32
    %11 = vector.broadcast %10 : i1 to vector<1x256xi1>
    %12 = vector.broadcast %11 : vector<1x256xi1> to vector<1x256xi1>
    %13 = arith.xori %9, %12 : vector<1x256xi1>
    %14 = arith.andi %13, %7 : vector<1x256xi1>
    %15 = vector.broadcast %3 : i32 to vector<1x256xi32>
    %16 = arith.addi %5, %15 : vector<1x256xi32>
    %17 = arith.select %14, %16, %5 : vector<1x256xi1>, vector<1x256xi32>
    %c1_i32_3 = arith.constant 1 : i32
    %18 = vector.broadcast %c1_i32_3 : i32 to vector<1x256xi32>
    %19 = arith.cmpi sge, %17, %18 : vector<1x256xi32>
    %20 = arith.extui %19 : vector<1x256xi1> to vector<1x256xi32>
    %21 = arith.sitofp %20 : vector<1x256xi32> to vector<1x256xf32>
    %c15_i32 = arith.constant 15 : i32
    %22 = vector.broadcast %c15_i32 : i32 to vector<1x256xi32>
    %23 = arith.cmpi slt, %17, %22 : vector<1x256xi32>
    %24 = arith.extui %23 : vector<1x256xi1> to vector<1x256xi32>
    %25 = arith.sitofp %24 : vector<1x256xi32> to vector<1x256xf32>
    %cst = arith.constant 0.000000e+00 : f32
    %26 = vector.broadcast %cst : f32 to vector<144x128xf32>
    %c0_4 = arith.constant 0 : index
    %c0_5 = arith.constant 0 : index
    %27 = vector.load %arg11[%c0_4, %c0_5] : memref<144x512xf32, #tpu.memory_space<vmem>>, vector<144x128xf32>
    tpu.vector_store %arg11[%c0_4, %c0_5], %26 {strides = array<i32>} : memref<144x512xf32, #tpu.memory_space<vmem>>, vector<144x128xf32>,
    %cst_6 = arith.constant 0.000000e+00 : f32
    %28 = vector.broadcast %cst_6 : f32 to vector<144x128xf32>
    %c0_7 = arith.constant 0 : index
    %c384 = arith.constant 384 : index
    %29 = vector.load %arg11[%c0_7, %c384] : memref<144x512xf32, #tpu.memory_space<vmem>>, vector<144x128xf32>
    tpu.vector_store %arg11[%c0_7, %c384], %28 {strides = array<i32>} : memref<144x512xf32, #tpu.memory_space<vmem>>, vector<144x128xf32>,
    %c0_8 = arith.constant 0 : index
    %c0_9 = arith.constant 0 : index
    %c0_10 = arith.constant 0 : index
    %30 = vector.load %arg2[%c0_8, %c0_9, %c0_10] : memref<1x144x256xf32, #tpu.memory_space<vmem>>, vector<1x144x256xf32>
    %31 = vector.shape_cast %30 : vector<1x144x256xf32> to vector<144x256xf32>
    %c0_11 = arith.constant 0 : index
    %c128 = arith.constant 128 : index
    %32 = vector.load %arg11[%c0_11, %c128] : memref<144x512xf32, #tpu.memory_space<vmem>>, vector<144x256xf32>
    tpu.vector_store %arg11[%c0_11, %c128], %31 {strides = array<i32>} : memref<144x512xf32, #tpu.memory_space<vmem>>, vector<144x256xf32>,
    %c0_12 = arith.constant 0 : index
    %c111 = arith.constant 111 : index
    %33 = vector.load %arg11[%c0_12, %c111] : memref<144x512xf32, #tpu.memory_space<vmem>>, vector<144x256xf32>
    %c0_13 = arith.constant 0 : index
    %c0_14 = arith.constant 0 : index
    %c0_15 = arith.constant 0 : index
    %34 = vector.load %arg3[%c0_13, %c0_14, %c0_15] : memref<9x16x144xf32, #tpu.memory_space<vmem>>, vector<1x16x144xf32>
    %35 = vector.shape_cast %34 : vector<1x16x144xf32> to vector<16x144xf32>
    %cst_16 = arith.constant dense<0.000000e+00> : vector<16x256xf32>
    %36 = tpu.matmul %35, %33, %cst_16 {dimension_numbers = #tpu.dot_dimension_numbers<[1], [0], [0], [1], [0, 0, 1, 1], [], []>} : vector<16x144xf32>, vector<144x256xf32>, vector<16x256xf32> -> vector<16x256xf32>
    %c0_17 = arith.constant 0 : index
    %c127 = arith.constant 127 : index
    %37 = vector.load %arg11[%c0_17, %c127] : memref<144x512xf32, #tpu.memory_space<vmem>>, vector<144x256xf32>
    %c3 = arith.constant 3 : index
    %c0_18 = arith.constant 0 : index
    %c0_19 = arith.constant 0 : index
    %38 = vector.load %arg3[%c3, %c0_18, %c0_19] : memref<9x16x144xf32, #tpu.memory_space<vmem>>, vector<1x16x144xf32>
    %39 = vector.shape_cast %38 : vector<1x16x144xf32> to vector<16x144xf32>
    %cst_20 = arith.constant dense<0.000000e+00> : vector<16x256xf32>
    %40 = tpu.matmul %39, %37, %cst_20 {dimension_numbers = #tpu.dot_dimension_numbers<[1], [0], [0], [1], [0, 0, 1, 1], [], []>} : vector<16x144xf32>, vector<144x256xf32>, vector<16x256xf32> -> vector<16x256xf32>
    %41 = arith.addf %36, %40 : vector<16x256xf32>
    %c0_21 = arith.constant 0 : index
    %c143 = arith.constant 143 : index
    %42 = vector.load %arg11[%c0_21, %c143] : memref<144x512xf32, #tpu.memory_space<vmem>>, vector<144x256xf32>
    %c6 = arith.constant 6 : index
    %c0_22 = arith.constant 0 : index
    %c0_23 = arith.constant 0 : index
    %43 = vector.load %arg3[%c6, %c0_22, %c0_23] : memref<9x16x144xf32, #tpu.memory_space<vmem>>, vector<1x16x144xf32>
    %44 = vector.shape_cast %43 : vector<1x16x144xf32> to vector<16x144xf32>
    %cst_24 = arith.constant dense<0.000000e+00> : vector<16x256xf32>
    %45 = tpu.matmul %44, %42, %cst_24 {dimension_numbers = #tpu.dot_dimension_numbers<[1], [0], [0], [1], [0, 0, 1, 1], [], []>} : vector<16x144xf32>, vector<144x256xf32>, vector<16x256xf32> -> vector<16x256xf32>
    %46 = arith.addf %41, %45 : vector<16x256xf32>
    %c0_25 = arith.constant 0 : index
    %c112 = arith.constant 112 : index
    %47 = vector.load %arg11[%c0_25, %c112] : memref<144x512xf32, #tpu.memory_space<vmem>>, vector<144x256xf32>
    %c1 = arith.constant 1 : index
    %c0_26 = arith.constant 0 : index
    %c0_27 = arith.constant 0 : index
    %48 = vector.load %arg3[%c1, %c0_26, %c0_27] : memref<9x16x144xf32, #tpu.memory_space<vmem>>, vector<1x16x144xf32>
    %49 = vector.shape_cast %48 : vector<1x16x144xf32> to vector<16x144xf32>
    %cst_28 = arith.constant dense<0.000000e+00> : vector<16x256xf32>
    %50 = tpu.matmul %49, %47, %cst_28 {dimension_numbers = #tpu.dot_dimension_numbers<[1], [0], [0], [1], [0, 0, 1, 1], [], []>} : vector<16x144xf32>, vector<144x256xf32>, vector<16x256xf32> -> vector<16x256xf32>
    %c0_29 = arith.constant 0 : index
    %c128_30 = arith.constant 128 : index
    %51 = vector.load %arg11[%c0_29, %c128_30] : memref<144x512xf32, #tpu.memory_space<vmem>>, vector<144x256xf32>
    %c4 = arith.constant 4 : index
    %c0_31 = arith.constant 0 : index
    %c0_32 = arith.constant 0 : index
    %52 = vector.load %arg3[%c4, %c0_31, %c0_32] : memref<9x16x144xf32, #tpu.memory_space<vmem>>, vector<1x16x144xf32>
    %53 = vector.shape_cast %52 : vector<1x16x144xf32> to vector<16x144xf32>
    %cst_33 = arith.constant dense<0.000000e+00> : vector<16x256xf32>
    %54 = tpu.matmul %53, %51, %cst_33 {dimension_numbers = #tpu.dot_dimension_numbers<[1], [0], [0], [1], [0, 0, 1, 1], [], []>} : vector<16x144xf32>, vector<144x256xf32>, vector<16x256xf32> -> vector<16x256xf32>
    %55 = arith.addf %50, %54 : vector<16x256xf32>
    %c0_34 = arith.constant 0 : index
    %c144 = arith.constant 144 : index
    %56 = vector.load %arg11[%c0_34, %c144] : memref<144x512xf32, #tpu.memory_space<vmem>>, vector<144x256xf32>
    %c7 = arith.constant 7 : index
    %c0_35 = arith.constant 0 : index
    %c0_36 = arith.constant 0 : index
    %57 = vector.load %arg3[%c7, %c0_35, %c0_36] : memref<9x16x144xf32, #tpu.memory_space<vmem>>, vector<1x16x144xf32>
    %58 = vector.shape_cast %57 : vector<1x16x144xf32> to vector<16x144xf32>
    %cst_37 = arith.constant dense<0.000000e+00> : vector<16x256xf32>
    %59 = tpu.matmul %58, %56, %cst_37 {dimension_numbers = #tpu.dot_dimension_numbers<[1], [0], [0], [1], [0, 0, 1, 1], [], []>} : vector<16x144xf32>, vector<144x256xf32>, vector<16x256xf32> -> vector<16x256xf32>
    %60 = arith.addf %55, %59 : vector<16x256xf32>
    %c0_38 = arith.constant 0 : index
    %c113 = arith.constant 113 : index
    %61 = vector.load %arg11[%c0_38, %c113] : memref<144x512xf32, #tpu.memory_space<vmem>>, vector<144x256xf32>
    %c2 = arith.constant 2 : index
    %c0_39 = arith.constant 0 : index
    %c0_40 = arith.constant 0 : index
    %62 = vector.load %arg3[%c2, %c0_39, %c0_40] : memref<9x16x144xf32, #tpu.memory_space<vmem>>, vector<1x16x144xf32>
    %63 = vector.shape_cast %62 : vector<1x16x144xf32> to vector<16x144xf32>
    %cst_41 = arith.constant dense<0.000000e+00> : vector<16x256xf32>
    %64 = tpu.matmul %63, %61, %cst_41 {dimension_numbers = #tpu.dot_dimension_numbers<[1], [0], [0], [1], [0, 0, 1, 1], [], []>} : vector<16x144xf32>, vector<144x256xf32>, vector<16x256xf32> -> vector<16x256xf32>
    %c0_42 = arith.constant 0 : index
    %c129 = arith.constant 129 : index
    %65 = vector.load %arg11[%c0_42, %c129] : memref<144x512xf32, #tpu.memory_space<vmem>>, vector<144x256xf32>
    %c5 = arith.constant 5 : index
    %c0_43 = arith.constant 0 : index
    %c0_44 = arith.constant 0 : index
    %66 = vector.load %arg3[%c5, %c0_43, %c0_44] : memref<9x16x144xf32, #tpu.memory_space<vmem>>, vector<1x16x144xf32>
    %67 = vector.shape_cast %66 : vector<1x16x144xf32> to vector<16x144xf32>
    %cst_45 = arith.constant dense<0.000000e+00> : vector<16x256xf32>
    %68 = tpu.matmul %67, %65, %cst_45 {dimension_numbers = #tpu.dot_dimension_numbers<[1], [0], [0], [1], [0, 0, 1, 1], [], []>} : vector<16x144xf32>, vector<144x256xf32>, vector<16x256xf32> -> vector<16x256xf32>
    %69 = arith.addf %64, %68 : vector<16x256xf32>
    %c0_46 = arith.constant 0 : index
    %c145 = arith.constant 145 : index
    %70 = vector.load %arg11[%c0_46, %c145] : memref<144x512xf32, #tpu.memory_space<vmem>>, vector<144x256xf32>
    %c8 = arith.constant 8 : index
    %c0_47 = arith.constant 0 : index
    %c0_48 = arith.constant 0 : index
    %71 = vector.load %arg3[%c8, %c0_47, %c0_48] : memref<9x16x144xf32, #tpu.memory_space<vmem>>, vector<1x16x144xf32>
    %72 = vector.shape_cast %71 : vector<1x16x144xf32> to vector<16x144xf32>
    %cst_49 = arith.constant dense<0.000000e+00> : vector<16x256xf32>
    %73 = tpu.matmul %72, %70, %cst_49 {dimension_numbers = #tpu.dot_dimension_numbers<[1], [0], [0], [1], [0, 0, 1, 1], [], []>} : vector<16x144xf32>, vector<144x256xf32>, vector<16x256xf32> -> vector<16x256xf32>
    %74 = arith.addf %69, %73 : vector<16x256xf32>
    %75 = vector.broadcast %21 : vector<1x256xf32> to vector<16x256xf32>
    %76 = arith.mulf %46, %75 : vector<16x256xf32>
    %77 = arith.addf %60, %76 : vector<16x256xf32>
    %78 = vector.broadcast %25 : vector<1x256xf32> to vector<16x256xf32>
    %79 = arith.mulf %74, %78 : vector<16x256xf32>
    %80 = arith.addf %77, %79 : vector<16x256xf32>
    %c0_50 = arith.constant 0 : index
    %c0_51 = arith.constant 0 : index
    %81 = vector.load %arg4[%c0_50, %c0_51] : memref<16x1xf32, #tpu.memory_space<vmem>>, vector<16x1xf32>
    %82 = vector.broadcast %81 : vector<16x1xf32> to vector<16x256xf32>
    %83 = arith.addf %80, %82 : vector<16x256xf32>
    %84 = vector.broadcast %0 : f32 to vector<16x256xf32>
    %85 = arith.mulf %83, %84 : vector<16x256xf32>
    %86 = vector.shape_cast %85 : vector<16x256xf32> to vector<1x16x256xf32>
    %c0_52 = arith.constant 0 : index
    %c0_53 = arith.constant 0 : index
    %c0_54 = arith.constant 0 : index
    %87 = vector.load %arg10[%c0_52, %c0_53, %c0_54] : memref<1x16x256xf32, #tpu.memory_space<vmem>>, vector<1x16x256xf32>
    tpu.vector_store %arg10[%c0_52, %c0_53, %c0_54], %86 {strides = array<i32>} : memref<1x16x256xf32, #tpu.memory_space<vmem>>, vector<1x16x256xf32>,
    %cst_55 = arith.constant 0.000000e+00 : f32
    %88 = vector.broadcast %cst_55 : f32 to vector<16x256xf32>
    %89 = arith.maximumf %85, %88 : vector<16x256xf32>
    %c0_56 = arith.constant 0 : index
    %c128_57 = arith.constant 128 : index
    %90 = vector.load %arg11[%c0_56, %c128_57] : memref<144x512xf32, #tpu.memory_space<vmem>>, vector<16x256xf32>
    tpu.vector_store %arg11[%c0_56, %c128_57], %89 {strides = array<i32>} : memref<144x512xf32, #tpu.memory_space<vmem>>, vector<16x256xf32>,
    %c0_58 = arith.constant 0 : index
    %c111_59 = arith.constant 111 : index
    %91 = vector.load %arg11[%c0_58, %c111_59] : memref<144x512xf32, #tpu.memory_space<vmem>>, vector<16x256xf32>
    %c0_60 = arith.constant 0 : index
    %c0_61 = arith.constant 0 : index
    %c0_62 = arith.constant 0 : index
    %92 = vector.load %arg5[%c0_60, %c0_61, %c0_62] : memref<9x8x16xf32, #tpu.memory_space<vmem>>, vector<1x8x16xf32>
    %93 = vector.shape_cast %92 : vector<1x8x16xf32> to vector<8x16xf32>
    %cst_63 = arith.constant dense<0.000000e+00> : vector<8x256xf32>
    %94 = tpu.matmul %93, %91, %cst_63 {dimension_numbers = #tpu.dot_dimension_numbers<[1], [0], [0], [1], [0, 0, 1, 1], [], []>} : vector<8x16xf32>, vector<16x256xf32>, vector<8x256xf32> -> vector<8x256xf32>
    %c0_64 = arith.constant 0 : index
    %c127_65 = arith.constant 127 : index
    %95 = vector.load %arg11[%c0_64, %c127_65] : memref<144x512xf32, #tpu.memory_space<vmem>>, vector<16x256xf32>
    %c3_66 = arith.constant 3 : index
    %c0_67 = arith.constant 0 : index
    %c0_68 = arith.constant 0 : index
    %96 = vector.load %arg5[%c3_66, %c0_67, %c0_68] : memref<9x8x16xf32, #tpu.memory_space<vmem>>, vector<1x8x16xf32>
    %97 = vector.shape_cast %96 : vector<1x8x16xf32> to vector<8x16xf32>
    %cst_69 = arith.constant dense<0.000000e+00> : vector<8x256xf32>
    %98 = tpu.matmul %97, %95, %cst_69 {dimension_numbers = #tpu.dot_dimension_numbers<[1], [0], [0], [1], [0, 0, 1, 1], [], []>} : vector<8x16xf32>, vector<16x256xf32>, vector<8x256xf32> -> vector<8x256xf32>
    %99 = arith.addf %94, %98 : vector<8x256xf32>
    %c0_70 = arith.constant 0 : index
    %c143_71 = arith.constant 143 : index
    %100 = vector.load %arg11[%c0_70, %c143_71] : memref<144x512xf32, #tpu.memory_space<vmem>>, vector<16x256xf32>
    %c6_72 = arith.constant 6 : index
    %c0_73 = arith.constant 0 : index
    %c0_74 = arith.constant 0 : index
    %101 = vector.load %arg5[%c6_72, %c0_73, %c0_74] : memref<9x8x16xf32, #tpu.memory_space<vmem>>, vector<1x8x16xf32>
    %102 = vector.shape_cast %101 : vector<1x8x16xf32> to vector<8x16xf32>
    %cst_75 = arith.constant dense<0.000000e+00> : vector<8x256xf32>
    %103 = tpu.matmul %102, %100, %cst_75 {dimension_numbers = #tpu.dot_dimension_numbers<[1], [0], [0], [1], [0, 0, 1, 1], [], []>} : vector<8x16xf32>, vector<16x256xf32>, vector<8x256xf32> -> vector<8x256xf32>
    %104 = arith.addf %99, %103 : vector<8x256xf32>
    %c0_76 = arith.constant 0 : index
    %c112_77 = arith.constant 112 : index
    %105 = vector.load %arg11[%c0_76, %c112_77] : memref<144x512xf32, #tpu.memory_space<vmem>>, vector<16x256xf32>
    %c1_78 = arith.constant 1 : index
    %c0_79 = arith.constant 0 : index
    %c0_80 = arith.constant 0 : index
    %106 = vector.load %arg5[%c1_78, %c0_79, %c0_80] : memref<9x8x16xf32, #tpu.memory_space<vmem>>, vector<1x8x16xf32>
    %107 = vector.shape_cast %106 : vector<1x8x16xf32> to vector<8x16xf32>
    %cst_81 = arith.constant dense<0.000000e+00> : vector<8x256xf32>
    %108 = tpu.matmul %107, %105, %cst_81 {dimension_numbers = #tpu.dot_dimension_numbers<[1], [0], [0], [1], [0, 0, 1, 1], [], []>} : vector<8x16xf32>, vector<16x256xf32>, vector<8x256xf32> -> vector<8x256xf32>
    %c0_82 = arith.constant 0 : index
    %c128_83 = arith.constant 128 : index
    %109 = vector.load %arg11[%c0_82, %c128_83] : memref<144x512xf32, #tpu.memory_space<vmem>>, vector<16x256xf32>
    %c4_84 = arith.constant 4 : index
    %c0_85 = arith.constant 0 : index
    %c0_86 = arith.constant 0 : index
    %110 = vector.load %arg5[%c4_84, %c0_85, %c0_86] : memref<9x8x16xf32, #tpu.memory_space<vmem>>, vector<1x8x16xf32>
    %111 = vector.shape_cast %110 : vector<1x8x16xf32> to vector<8x16xf32>
    %cst_87 = arith.constant dense<0.000000e+00> : vector<8x256xf32>
    %112 = tpu.matmul %111, %109, %cst_87 {dimension_numbers = #tpu.dot_dimension_numbers<[1], [0], [0], [1], [0, 0, 1, 1], [], []>} : vector<8x16xf32>, vector<16x256xf32>, vector<8x256xf32> -> vector<8x256xf32>
    %113 = arith.addf %108, %112 : vector<8x256xf32>
    %c0_88 = arith.constant 0 : index
    %c144_89 = arith.constant 144 : index
    %114 = vector.load %arg11[%c0_88, %c144_89] : memref<144x512xf32, #tpu.memory_space<vmem>>, vector<16x256xf32>
    %c7_90 = arith.constant 7 : index
    %c0_91 = arith.constant 0 : index
    %c0_92 = arith.constant 0 : index
    %115 = vector.load %arg5[%c7_90, %c0_91, %c0_92] : memref<9x8x16xf32, #tpu.memory_space<vmem>>, vector<1x8x16xf32>
    %116 = vector.shape_cast %115 : vector<1x8x16xf32> to vector<8x16xf32>
    %cst_93 = arith.constant dense<0.000000e+00> : vector<8x256xf32>
    %117 = tpu.matmul %116, %114, %cst_93 {dimension_numbers = #tpu.dot_dimension_numbers<[1], [0], [0], [1], [0, 0, 1, 1], [], []>} : vector<8x16xf32>, vector<16x256xf32>, vector<8x256xf32> -> vector<8x256xf32>
    %118 = arith.addf %113, %117 : vector<8x256xf32>
    %c0_94 = arith.constant 0 : index
    %c113_95 = arith.constant 113 : index
    %119 = vector.load %arg11[%c0_94, %c113_95] : memref<144x512xf32, #tpu.memory_space<vmem>>, vector<16x256xf32>
    %c2_96 = arith.constant 2 : index
    %c0_97 = arith.constant 0 : index
    %c0_98 = arith.constant 0 : index
    %120 = vector.load %arg5[%c2_96, %c0_97, %c0_98] : memref<9x8x16xf32, #tpu.memory_space<vmem>>, vector<1x8x16xf32>
    %121 = vector.shape_cast %120 : vector<1x8x16xf32> to vector<8x16xf32>
    %cst_99 = arith.constant dense<0.000000e+00> : vector<8x256xf32>
    %122 = tpu.matmul %121, %119, %cst_99 {dimension_numbers = #tpu.dot_dimension_numbers<[1], [0], [0], [1], [0, 0, 1, 1], [], []>} : vector<8x16xf32>, vector<16x256xf32>, vector<8x256xf32> -> vector<8x256xf32>
    %c0_100 = arith.constant 0 : index
    %c129_101 = arith.constant 129 : index
    %123 = vector.load %arg11[%c0_100, %c129_101] : memref<144x512xf32, #tpu.memory_space<vmem>>, vector<16x256xf32>
    %c5_102 = arith.constant 5 : index
    %c0_103 = arith.constant 0 : index
    %c0_104 = arith.constant 0 : index
    %124 = vector.load %arg5[%c5_102, %c0_103, %c0_104] : memref<9x8x16xf32, #tpu.memory_space<vmem>>, vector<1x8x16xf32>
    %125 = vector.shape_cast %124 : vector<1x8x16xf32> to vector<8x16xf32>
    %cst_105 = arith.constant dense<0.000000e+00> : vector<8x256xf32>
    %126 = tpu.matmul %125, %123, %cst_105 {dimension_numbers = #tpu.dot_dimension_numbers<[1], [0], [0], [1], [0, 0, 1, 1], [], []>} : vector<8x16xf32>, vector<16x256xf32>, vector<8x256xf32> -> vector<8x256xf32>
    %127 = arith.addf %122, %126 : vector<8x256xf32>
    %c0_106 = arith.constant 0 : index
    %c145_107 = arith.constant 145 : index
    %128 = vector.load %arg11[%c0_106, %c145_107] : memref<144x512xf32, #tpu.memory_space<vmem>>, vector<16x256xf32>
    %c8_108 = arith.constant 8 : index
    %c0_109 = arith.constant 0 : index
    %c0_110 = arith.constant 0 : index
    %129 = vector.load %arg5[%c8_108, %c0_109, %c0_110] : memref<9x8x16xf32, #tpu.memory_space<vmem>>, vector<1x8x16xf32>
    %130 = vector.shape_cast %129 : vector<1x8x16xf32> to vector<8x16xf32>
    %cst_111 = arith.constant dense<0.000000e+00> : vector<8x256xf32>
    %131 = tpu.matmul %130, %128, %cst_111 {dimension_numbers = #tpu.dot_dimension_numbers<[1], [0], [0], [1], [0, 0, 1, 1], [], []>} : vector<8x16xf32>, vector<16x256xf32>, vector<8x256xf32> -> vector<8x256xf32>
    %132 = arith.addf %127, %131 : vector<8x256xf32>
    %133 = vector.broadcast %21 : vector<1x256xf32> to vector<8x256xf32>
    %134 = arith.mulf %104, %133 : vector<8x256xf32>
    %135 = arith.addf %118, %134 : vector<8x256xf32>
    %136 = vector.broadcast %25 : vector<1x256xf32> to vector<8x256xf32>
    %137 = arith.mulf %132, %136 : vector<8x256xf32>
    %138 = arith.addf %135, %137 : vector<8x256xf32>
    %c0_112 = arith.constant 0 : index
    %c0_113 = arith.constant 0 : index
    %139 = vector.load %arg6[%c0_112, %c0_113] : memref<8x1xf32, #tpu.memory_space<vmem>>, vector<8x1xf32>
    %140 = vector.broadcast %139 : vector<8x1xf32> to vector<8x256xf32>
    %141 = arith.addf %138, %140 : vector<8x256xf32>
    %cst_114 = arith.constant 0.000000e+00 : f32
    %142 = vector.broadcast %cst_114 : f32 to vector<8x256xf32>
    %143 = arith.maximumf %141, %142 : vector<8x256xf32>
    %c0_115 = arith.constant 0 : index
    %c128_116 = arith.constant 128 : index
    %144 = vector.load %arg11[%c0_115, %c128_116] : memref<144x512xf32, #tpu.memory_space<vmem>>, vector<8x256xf32>
    tpu.vector_store %arg11[%c0_115, %c128_116], %143 {strides = array<i32>} : memref<144x512xf32, #tpu.memory_space<vmem>>, vector<8x256xf32>,
    %c0_117 = arith.constant 0 : index
    %c111_118 = arith.constant 111 : index
    %145 = vector.load %arg11[%c0_117, %c111_118] : memref<144x512xf32, #tpu.memory_space<vmem>>, vector<8x256xf32>
    %c0_119 = arith.constant 0 : index
    %c0_120 = arith.constant 0 : index
    %c0_121 = arith.constant 0 : index
    %146 = vector.load %arg7[%c0_119, %c0_120, %c0_121] : memref<9x2x8xf32, #tpu.memory_space<vmem>>, vector<1x2x8xf32>
    %147 = vector.shape_cast %146 : vector<1x2x8xf32> to vector<2x8xf32>
    %cst_122 = arith.constant dense<0.000000e+00> : vector<2x256xf32>
    %148 = tpu.matmul %147, %145, %cst_122 {dimension_numbers = #tpu.dot_dimension_numbers<[1], [0], [0], [1], [0, 0, 1, 1], [], []>} : vector<2x8xf32>, vector<8x256xf32>, vector<2x256xf32> -> vector<2x256xf32>
    %c0_123 = arith.constant 0 : index
    %c127_124 = arith.constant 127 : index
    %149 = vector.load %arg11[%c0_123, %c127_124] : memref<144x512xf32, #tpu.memory_space<vmem>>, vector<8x256xf32>
    %c3_125 = arith.constant 3 : index
    %c0_126 = arith.constant 0 : index
    %c0_127 = arith.constant 0 : index
    %150 = vector.load %arg7[%c3_125, %c0_126, %c0_127] : memref<9x2x8xf32, #tpu.memory_space<vmem>>, vector<1x2x8xf32>
    %151 = vector.shape_cast %150 : vector<1x2x8xf32> to vector<2x8xf32>
    %cst_128 = arith.constant dense<0.000000e+00> : vector<2x256xf32>
    %152 = tpu.matmul %151, %149, %cst_128 {dimension_numbers = #tpu.dot_dimension_numbers<[1], [0], [0], [1], [0, 0, 1, 1], [], []>} : vector<2x8xf32>, vector<8x256xf32>, vector<2x256xf32> -> vector<2x256xf32>
    %153 = arith.addf %148, %152 : vector<2x256xf32>
    %c0_129 = arith.constant 0 : index
    %c143_130 = arith.constant 143 : index
    %154 = vector.load %arg11[%c0_129, %c143_130] : memref<144x512xf32, #tpu.memory_space<vmem>>, vector<8x256xf32>
    %c6_131 = arith.constant 6 : index
    %c0_132 = arith.constant 0 : index
    %c0_133 = arith.constant 0 : index
    %155 = vector.load %arg7[%c6_131, %c0_132, %c0_133] : memref<9x2x8xf32, #tpu.memory_space<vmem>>, vector<1x2x8xf32>
    %156 = vector.shape_cast %155 : vector<1x2x8xf32> to vector<2x8xf32>
    %cst_134 = arith.constant dense<0.000000e+00> : vector<2x256xf32>
    %157 = tpu.matmul %156, %154, %cst_134 {dimension_numbers = #tpu.dot_dimension_numbers<[1], [0], [0], [1], [0, 0, 1, 1], [], []>} : vector<2x8xf32>, vector<8x256xf32>, vector<2x256xf32> -> vector<2x256xf32>
    %158 = arith.addf %153, %157 : vector<2x256xf32>
    %c0_135 = arith.constant 0 : index
    %c112_136 = arith.constant 112 : index
    %159 = vector.load %arg11[%c0_135, %c112_136] : memref<144x512xf32, #tpu.memory_space<vmem>>, vector<8x256xf32>
    %c1_137 = arith.constant 1 : index
    %c0_138 = arith.constant 0 : index
    %c0_139 = arith.constant 0 : index
    %160 = vector.load %arg7[%c1_137, %c0_138, %c0_139] : memref<9x2x8xf32, #tpu.memory_space<vmem>>, vector<1x2x8xf32>
    %161 = vector.shape_cast %160 : vector<1x2x8xf32> to vector<2x8xf32>
    %cst_140 = arith.constant dense<0.000000e+00> : vector<2x256xf32>
    %162 = tpu.matmul %161, %159, %cst_140 {dimension_numbers = #tpu.dot_dimension_numbers<[1], [0], [0], [1], [0, 0, 1, 1], [], []>} : vector<2x8xf32>, vector<8x256xf32>, vector<2x256xf32> -> vector<2x256xf32>
    %c0_141 = arith.constant 0 : index
    %c128_142 = arith.constant 128 : index
    %163 = vector.load %arg11[%c0_141, %c128_142] : memref<144x512xf32, #tpu.memory_space<vmem>>, vector<8x256xf32>
    %c4_143 = arith.constant 4 : index
    %c0_144 = arith.constant 0 : index
    %c0_145 = arith.constant 0 : index
    %164 = vector.load %arg7[%c4_143, %c0_144, %c0_145] : memref<9x2x8xf32, #tpu.memory_space<vmem>>, vector<1x2x8xf32>
    %165 = vector.shape_cast %164 : vector<1x2x8xf32> to vector<2x8xf32>
    %cst_146 = arith.constant dense<0.000000e+00> : vector<2x256xf32>
    %166 = tpu.matmul %165, %163, %cst_146 {dimension_numbers = #tpu.dot_dimension_numbers<[1], [0], [0], [1], [0, 0, 1, 1], [], []>} : vector<2x8xf32>, vector<8x256xf32>, vector<2x256xf32> -> vector<2x256xf32>
    %167 = arith.addf %162, %166 : vector<2x256xf32>
    %c0_147 = arith.constant 0 : index
    %c144_148 = arith.constant 144 : index
    %168 = vector.load %arg11[%c0_147, %c144_148] : memref<144x512xf32, #tpu.memory_space<vmem>>, vector<8x256xf32>
    %c7_149 = arith.constant 7 : index
    %c0_150 = arith.constant 0 : index
    %c0_151 = arith.constant 0 : index
    %169 = vector.load %arg7[%c7_149, %c0_150, %c0_151] : memref<9x2x8xf32, #tpu.memory_space<vmem>>, vector<1x2x8xf32>
    %170 = vector.shape_cast %169 : vector<1x2x8xf32> to vector<2x8xf32>
    %cst_152 = arith.constant dense<0.000000e+00> : vector<2x256xf32>
    %171 = tpu.matmul %170, %168, %cst_152 {dimension_numbers = #tpu.dot_dimension_numbers<[1], [0], [0], [1], [0, 0, 1, 1], [], []>} : vector<2x8xf32>, vector<8x256xf32>, vector<2x256xf32> -> vector<2x256xf32>
    %172 = arith.addf %167, %171 : vector<2x256xf32>
    %c0_153 = arith.constant 0 : index
    %c113_154 = arith.constant 113 : index
    %173 = vector.load %arg11[%c0_153, %c113_154] : memref<144x512xf32, #tpu.memory_space<vmem>>, vector<8x256xf32>
    %c2_155 = arith.constant 2 : index
    %c0_156 = arith.constant 0 : index
    %c0_157 = arith.constant 0 : index
    %174 = vector.load %arg7[%c2_155, %c0_156, %c0_157] : memref<9x2x8xf32, #tpu.memory_space<vmem>>, vector<1x2x8xf32>
    %175 = vector.shape_cast %174 : vector<1x2x8xf32> to vector<2x8xf32>
    %cst_158 = arith.constant dense<0.000000e+00> : vector<2x256xf32>
    %176 = tpu.matmul %175, %173, %cst_158 {dimension_numbers = #tpu.dot_dimension_numbers<[1], [0], [0], [1], [0, 0, 1, 1], [], []>} : vector<2x8xf32>, vector<8x256xf32>, vector<2x256xf32> -> vector<2x256xf32>
    %c0_159 = arith.constant 0 : index
    %c129_160 = arith.constant 129 : index
    %177 = vector.load %arg11[%c0_159, %c129_160] : memref<144x512xf32, #tpu.memory_space<vmem>>, vector<8x256xf32>
    %c5_161 = arith.constant 5 : index
    %c0_162 = arith.constant 0 : index
    %c0_163 = arith.constant 0 : index
    %178 = vector.load %arg7[%c5_161, %c0_162, %c0_163] : memref<9x2x8xf32, #tpu.memory_space<vmem>>, vector<1x2x8xf32>
    %179 = vector.shape_cast %178 : vector<1x2x8xf32> to vector<2x8xf32>
    %cst_164 = arith.constant dense<0.000000e+00> : vector<2x256xf32>
    %180 = tpu.matmul %179, %177, %cst_164 {dimension_numbers = #tpu.dot_dimension_numbers<[1], [0], [0], [1], [0, 0, 1, 1], [], []>} : vector<2x8xf32>, vector<8x256xf32>, vector<2x256xf32> -> vector<2x256xf32>
    %181 = arith.addf %176, %180 : vector<2x256xf32>
    %c0_165 = arith.constant 0 : index
    %c145_166 = arith.constant 145 : index
    %182 = vector.load %arg11[%c0_165, %c145_166] : memref<144x512xf32, #tpu.memory_space<vmem>>, vector<8x256xf32>
    %c8_167 = arith.constant 8 : index
    %c0_168 = arith.constant 0 : index
    %c0_169 = arith.constant 0 : index
    %183 = vector.load %arg7[%c8_167, %c0_168, %c0_169] : memref<9x2x8xf32, #tpu.memory_space<vmem>>, vector<1x2x8xf32>
    %184 = vector.shape_cast %183 : vector<1x2x8xf32> to vector<2x8xf32>
    %cst_170 = arith.constant dense<0.000000e+00> : vector<2x256xf32>
    %185 = tpu.matmul %184, %182, %cst_170 {dimension_numbers = #tpu.dot_dimension_numbers<[1], [0], [0], [1], [0, 0, 1, 1], [], []>} : vector<2x8xf32>, vector<8x256xf32>, vector<2x256xf32> -> vector<2x256xf32>
    %186 = arith.addf %181, %185 : vector<2x256xf32>
    %187 = vector.broadcast %21 : vector<1x256xf32> to vector<2x256xf32>
    %188 = arith.mulf %158, %187 : vector<2x256xf32>
    %189 = arith.addf %172, %188 : vector<2x256xf32>
    %190 = vector.broadcast %25 : vector<1x256xf32> to vector<2x256xf32>
    %191 = arith.mulf %186, %190 : vector<2x256xf32>
    %192 = arith.addf %189, %191 : vector<2x256xf32>
    %c0_171 = arith.constant 0 : index
    %c0_172 = arith.constant 0 : index
    %193 = vector.load %arg8[%c0_171, %c0_172] : memref<2x1xf32, #tpu.memory_space<vmem>>, vector<2x1xf32>
    %194 = vector.broadcast %193 : vector<2x1xf32> to vector<2x256xf32>
    %195 = arith.addf %192, %194 : vector<2x256xf32>
    %196 = vector.shape_cast %195 : vector<2x256xf32> to vector<1x2x256xf32>
    %c0_173 = arith.constant 0 : index
    %c0_174 = arith.constant 0 : index
    %c0_175 = arith.constant 0 : index
    %197 = vector.load %arg9[%c0_173, %c0_174, %c0_175] : memref<1x2x256xf32, #tpu.memory_space<vmem>>, vector<1x2x256xf32>
    tpu.vector_store %arg9[%c0_173, %c0_174, %c0_175], %196 {strides = array<i32>} : memref<1x2x256xf32, #tpu.memory_space<vmem>>, vector<1x2x256xf32>,
    return
  }
  func.func @transform_0(%arg0: i32) -> i32 {
    %c0_i32 = arith.constant 0 : i32
    %c0_i32_0 = arith.constant 0 : i32
    return %c0_i32 : i32
  }
  func.func @transform_1(%arg0: i32) -> (i32, i32, i32) {
    %c0_i32 = arith.constant 0 : i32
    %c0_i32_0 = arith.constant 0 : i32
    %c0_i32_1 = arith.constant 0 : i32
    return %arg0, %c0_i32, %c0_i32_0 : i32, i32, i32
  }
  func.func @transform_2(%arg0: i32) -> (i32, i32, i32) {
    %c0_i32 = arith.constant 0 : i32
    %c0_i32_0 = arith.constant 0 : i32
    %c0_i32_1 = arith.constant 0 : i32
    %c0_i32_2 = arith.constant 0 : i32
    return %c0_i32, %c0_i32_0, %c0_i32_1 : i32, i32, i32
  }
  func.func @transform_3(%arg0: i32) -> (i32, i32) {
    %c0_i32 = arith.constant 0 : i32
    %c0_i32_0 = arith.constant 0 : i32
    %c0_i32_1 = arith.constant 0 : i32
    return %c0_i32, %c0_i32_0 : i32, i32
  }
  func.func @transform_4(%arg0: i32) -> (i32, i32, i32) {
    %c0_i32 = arith.constant 0 : i32
    %c0_i32_0 = arith.constant 0 : i32
    %c0_i32_1 = arith.constant 0 : i32
    %c0_i32_2 = arith.constant 0 : i32
    return %c0_i32, %c0_i32_0, %c0_i32_1 : i32, i32, i32
  }
  func.func @transform_5(%arg0: i32) -> (i32, i32) {
    %c0_i32 = arith.constant 0 : i32
    %c0_i32_0 = arith.constant 0 : i32
    %c0_i32_1 = arith.constant 0 : i32
    return %c0_i32, %c0_i32_0 : i32, i32
  }
  func.func @transform_6(%arg0: i32) -> (i32, i32, i32) {
    %c0_i32 = arith.constant 0 : i32
    %c0_i32_0 = arith.constant 0 : i32
    %c0_i32_1 = arith.constant 0 : i32
    %c0_i32_2 = arith.constant 0 : i32
    return %c0_i32, %c0_i32_0, %c0_i32_1 : i32, i32, i32
  }
  func.func @transform_7(%arg0: i32) -> (i32, i32) {
    %c0_i32 = arith.constant 0 : i32
    %c0_i32_0 = arith.constant 0 : i32
    %c0_i32_1 = arith.constant 0 : i32
    return %c0_i32, %c0_i32_0 : i32, i32
  }
  func.func @transform_8(%arg0: i32) -> (i32, i32, i32) {
    %c0_i32 = arith.constant 0 : i32
    %c0_i32_0 = arith.constant 0 : i32
    %c0_i32_1 = arith.constant 0 : i32
    return %arg0, %c0_i32, %c0_i32_0 : i32, i32, i32
  }
  func.func @transform_9(%arg0: i32) -> (i32, i32, i32) {
    %c0_i32 = arith.constant 0 : i32
    %c0_i32_0 = arith.constant 0 : i32
    %c0_i32_1 = arith.constant 0 : i32
    return %arg0, %c0_i32, %c0_i32_0 : i32, i32, i32
  }
}

</mosaic_0001>

<bundles_post_ra>
// kernel: tpu_custom_call.1
= control target key start
LH: loop header
LB: loop body
LE: loop exit
PB: predicated region body
PF: predicated region fallthrough
CT: control target
= control target key end

     0   :  { %s8766_s0 = inlined_call_operand.<no memory space> [shape: f32[1], index: 0, kind: input, shape index: {}]   ;;  %s8767_s1 = inlined_call_operand.hbm [shape: f32[2,144,256], index: 1, kind: input, shape index: {}]   ;;  %s8768_s2 = inlined_call_operand.hbm [shape: f32[9,16,144], index: 2, kind: input, shape index: {}]   ;;  %s8769_s3 = inlined_call_operand.vmem [shape: f32[16,1], index: 3, kind: input, shape index: {}]   ;;  %s8770_s4 = inlined_call_operand.vmem [shape: f32[9,8,16], index: 4, kind: input, shape index: {}]   ;;  %s8771_s5 = inlined_call_operand.vmem [shape: f32[8,1], index: 5, kind: input, shape index: {}]   ;;  %s8772_s6 = inlined_call_operand.vmem [shape: f32[9,2,8], index: 6, kind: input, shape index: {}]   ;;  %s8773_s7 = inlined_call_operand.vmem [shape: f32[2,1], index: 7, kind: input, shape index: {}]   ;;  %s8774_s8 = inlined_call_operand.hbm [shape: f32[2,2,256], index: 8, kind: output, shape index: {0}]   ;;  %s8775_s9 = inlined_call_operand.hbm [shape: f32[2,16,256], index: 9, kind: output, shape index: {1}]  }
   0x1   :  { %8797 = sst [smem:[#allocation30_spill]] %s8768_s2 }
   0x2   :  { %15 = sst [smem:[#allocation3]] %s8766_s0 }
   0x3   :  { %16 = vsyncpa [#allocation5], 0 }
   0x4   :  { %18 = vsyncpa [#allocation5 + $0x1], 0 }
   0x5   :  { %19 = vsyncpa [#allocation8], 0 }
   0x6   :  { %20 = vsyncpa [#allocation6], 0 }
   0x7   :  { %22 = vsyncpa [#allocation6 + $0x1], 0 }
   0x8   :  { %23 = vsyncpa [#allocation11], 0 }
   0x9   :  { %25 = vsyncpa [#allocation11 + $0x1], 0  ;;  %s6966_s11 = smov 0   ;;  %s6968_s12 = smov 0  }
   0xa   :  { %s6970_s13 = smov 0   ;;  %s6972_s14 = smov 0  }
   0xb LB: > { %s6987_s0 = sadd.s32 4294967295, %s6894_s14   ;;  %s4893_s15 = sadd.s32 4294967294, %s6894_s14   ;;  %s6894_s14 = sphi %s6972_s14, %s8848_s14   ;;  %s6890_s13 = sphi %s6970_s13, %s8847_s13   ;;  %s6886_s12 = sphi %s6968_s12, %s8846_s12   ;;  %s6882_s11 = sphi %s6966_s11, %s8845_s11  }
   0xc   : > { %p72_p0 = scmp.ne.s32.totalorder %s6886_s12, %s6882_s11  ;;  %p8776_p1 = scmp.eq.s32.totalorder %s6987_s0, 0 }
   0xd   : > { %p228_p3 = scmp.eq.s32.totalorder %s4893_s15, 1  ;;  %p4894_p5 = scmp.ge.s32.totalorder %s6894_s14, 1 }
   0xe   : > { %p6996_p4 = por %p8776_p1, %p72_p0  ;;  %p261_p7 = scmp.lt.s32.totalorder %s6894_s14, 3 }
   0xf   : > { %p7001_p6 = por %p228_p3, %p72_p0  ;;  %s6896_s19 = smov [#allocation7]  }
  0x10   : > { %s8798_s16 = scalar_select %p6996_p4, 1, 0 }
  0x11   : > { %s8799_s17 = scalar_select %p7001_p6, 1, 0 }
  0x12   : > { %p7006_p8 = pnand %p4894_p5, %p261_p7  ;;  %s276_s20 = sshll.u32 %s6896_s19, 4  ;;  %s7010_s20 = int_to_ptr.vmem [resolvable:$true] %s276_s20 }
  0x13   : > { %s7022_s22 = sadd.s32 1, %s6894_s14   ;;  %s59_s23 = sadd.s32 1, %s6890_s13 }
  0x14   : > { %s8800_s18 = scalar_select %p7006_p8, 1, 0 }
  0x15   : > { %p5408_p9 = pneg %p7006_p8  ;;  %s56_s24 = ssub.s32 %s6894_s14, %s7022_s22 }
  0x16   : > { %s8802_s2 = sld [smem:[#allocation30_spill]] }
  0x17   : > { %p7017_p11 = pnand %p5408_p9, %p8776_p1 }
  0x19   : > { %p6736_p13 = pneg %p7017_p11 }
  0x1c   : > { %s6734_s27 = scalar_lea.hbm %s8802_s2, 4608 }
  0x1d   : > { %p6735_p12 = scmp.ne.s32.totalorder %s8802_s2, %s6734_s27  ;;  %p6741_p5 = scmp.lt.u32.totalorder %s6734_s27, %s8802_s2 }
  0x1f   : > { %p6737_p0 = pnand %p6736_p13, %p6735_p12 }
  0x21   : > { %p6738_p3 = pneg %p6737_p0 }
  0x23   : > { %p6743_p7 = pnand %p6741_p5, %p6738_p3 }
  0x25   : > { %6746 = shalt.err (!%p6743_p7)
}
  0x26   : > { %s6747_s15 = scalar_lea.vmem %s7010_s20, 4608  ;;  %p6755_p2 = scmp.lt.s32.totalorder %s7010_s20, %s7010_s20 }
  0x27   : > { %p6748_p9 = scmp.ne.s32.totalorder %s7010_s20, %s6747_s15  ;;  %p6756_p6 = scmp.lt.s32.totalorder %s6747_s15, %s6747_s15 }
  0x29   : > { %p6750_p10 = pnand %p6748_p9, %p6736_p13  ;;  %p6757_p4 = por %p6756_p6, %p6755_p2 }
  0x2b   : > { %p6751_p1 = pneg %p6750_p10 }
  0x2d   : > { %p6758_p8 = pnand %p6757_p4, %p6751_p1 }
  0x2f   : > { %6761 = shalt.err (!%p6758_p8)
}
  0x30   : > { %s8779_s19 = smov 256   ;;  %s8780_s25 = smov 16  }
  0x31   : > { %5411 = dma.hbm_to_vmem [thread:$0]  (!%p7017_p11), %s8802_s2, 4608, %s7010_s20, [#allocation8], %s8779_s19, %s8779_s19, %s8780_s25  }
  0x32   : > { %p57_p1 = scmp.eq.s32.totalorder %s56_s24, 0  ;;  %p66_p2 = scmp.ne.s32.totalorder %s6890_s13, %s6886_s12 }
  0x33   : > { %p67_p4 = scmp.eq.s32.totalorder %s6894_s14, 0  ;;  %p5424_p6 = scmp.lt.s32.totalorder %s6894_s14, 2 }
  0x34   : > { %s7056_s28 = scalar_select %p57_p1, %s6890_s13, %s59_s23  }
  0x35   : > { %p68_p8 = por %p67_p4, %p66_p2  ;;  %p8804_p10 = scmp.eq.s32.totalorder %s6987_s0, 1 }
  0x36   : > { %8803 = sst [smem:[#allocation16_spill]] %s7056_s28  ;;  %s305_s21 = sand.u32 1, %s6890_s13  }
  0x37   : > { %p7060_p12 = por %p8804_p10, %p66_p2  ;;  %s5396_s30 = smul.u32 4608, %s6894_s14 }
  0x38   : > { %s5395_s10 = smul.u32 288, %s305_s21  ;;  %p7066_p13 = pnand %p5424_p6, %p68_p8 }
  0x39   : > { %s7073_s23 = scalar_lea.hbm %s8767_s1, %s5396_s30  ;;  %s7077_s19 = scalar_lea.sflag [#allocation5], %s305_s21 }
  0x3a   : > { %s309_s26 = scalar_lea.vmem [#allocation4], %s5395_s10  ;;  %s6762_s25 = scalar_lea.hbm %s7073_s23, 4608 }
  0x3b   : > { %s316_s27 = sshll.u32 %s309_s26, 4  ;;  %p6763_p11 = scmp.ne.s32.totalorder %s7073_s23, %s6762_s25  ;;  %s7075_s27 = int_to_ptr.vmem [resolvable:$true] %s316_s27 }
  0x3c   : > { %p6764_p0 = pneg %p7066_p13  ;;  %s6767_s24 = scalar_lea.hbm %s8767_s1, 9216 }
  0x3d   : > { %p6768_p7 = scmp.lt.u32.totalorder %s7073_s23, %s8767_s1  ;;  %p6769_p9 = scmp.lt.u32.totalorder %s6767_s24, %s6762_s25 }
  0x3e   : > { %p6765_p3 = pnand %p6764_p0, %p6763_p11  ;;  %p6771_p2 = scmp.lt.u32.totalorder %s6762_s25, %s7073_s23 }
  0x3f   : > { %p6770_p1 = por %p6769_p9, %p6768_p7 }
  0x40   : > { %p6766_p5 = pneg %p6765_p3 }
  0x41   : > { %p6772_p4 = por %p6771_p2, %p6770_p1 }
  0x43   : > { %p6773_p6 = pnand %p6772_p4, %p6766_p5 }
  0x45   : > { %6776 = shalt.err (!%p6773_p6)
}
  0x46   : > { %s6777_s21 = scalar_lea.vmem %s7075_s27, 4608  ;;  %s6899_s10 = smov [#allocation4]  }
  0x47   : > { %p6778_p8 = scmp.ne.s32.totalorder %s7075_s27, %s6777_s21  ;;  %s6782_s26 = sshll.u32 %s6899_s10, 4  ;;  %s6783_s26 = int_to_ptr.vmem [resolvable:$false] %s6782_s26 }
  0x48   : > { %s6784_s2 = scalar_lea.vmem %s6783_s26, 9216  ;;  %p6785_p3 = scmp.lt.s32.totalorder %s7075_s27, %s6783_s26 }
  0x49   : > { %p6780_p10 = pnand %p6778_p8, %p6764_p0  ;;  %p6786_p7 = scmp.lt.s32.totalorder %s6784_s2, %s6777_s21 }
  0x4b   : > { %p6781_p11 = pneg %p6780_p10  ;;  %p6787_p9 = por %p6786_p7, %p6785_p3 }
  0x4d   : > { %p6788_p1 = pnand %p6787_p9, %p6781_p11 }
  0x4f   : > { %6791 = shalt.err (!%p6788_p1)
}
  0x50   : > { %s8807_s25 = smov 16   ;;  %s8808_s28 = smov 256  }
  0x51   : > { %5415 = dma.hbm_to_vmem [thread:$0]  (!%p7066_p13), %s7073_s23, 4608, %s7075_s27, %s7077_s19, %s8808_s28, %s8808_s28, %s8807_s25  }
  0x52   : > { %p8809_p0 = scmp.ne.s32.totalorder %s8800_s18, 0 }
  0x54   : > { %328 = sbr.rel (%p8809_p0) target bundleno = 1695 (0x69f), region = 52 }
  0x5b   : > { %s7111_s30 = sand.u32 1, %s6886_s12   ;;  %p8810_p5 = scmp.ne.s32.totalorder %s8798_s16, 0 }
  0x5c   : > { %s5397_s20 = smul.u32 288, %s7111_s30  ;;  %s331_s24 = scalar_lea.sflag [#allocation5], %s7111_s30 }
  0x5e   : > { %s7115_s21 = scalar_lea.vmem [#allocation4], %s5397_s20 }
  0x5f   : > { %6865 = dma.done.wait (%p8810_p5), %s331_s24, 4608  }
  0x60   : > { %6867 = vsyncadd (%p8810_p5), %s331_s24, 4294962688  ;;  %p8811_p13 = scmp.eq.s32.totalorder %s6987_s0, 0 }
  0x62   : > { %6869 = dma.done.wait (%p8811_p13), [#allocation8], 4608   ;;  %p8812_p2 = pmov %p8811_p13 }
  0x63   : > { %v8785_v0 = vmov 0.0   ;;  %s6901_s18 = smov 1   ;;  %v7128_v1 = vld [vmem:[%s7115_s21] sm:$0xff]  ;;  %v7131_v2 = vld [vmem:[%s7115_s21 + $0x8] sm:$0xff]  ;;  %v7136_v3 = vld [vmem:[%s7115_s21 + $0x10] sm:$0xff]  ;;  %s6902_s16 = smov 17  }
  0x64   : > { %6871 = vsyncadd (%p8812_p2), [#allocation8], 4294962688  ;;  %5474 = vrot.lane.b32.xlu1 %v8785_v0, %s6901_s18  ;;  %v7140_v4 = vpack.i.bf16 %v7131_v2, %v7128_v1  ;;  %v7143_v5 = vld [vmem:[%s7115_s21 + $0x18] sm:$0xff]  ;;  %v7146_v6 = vld [vmem:[%s7115_s21 + $0x20] sm:$0xff]  ;;  %vm824_vm0 = vcmask 130048   ;;  %s6903_s19 = smov 113   ;;  %v7394_v58 = vpack.i.bf16 %v8785_v0, %v7131_v2  ;;  %v7406_v61 = vpack.i.bf16 %v7136_v3, %v7128_v1 }
  0x65   : > { %v7149_v7 = vld [vmem:[%s7115_s21 + $0x28] sm:$0xff]  ;;  %v7156_v9 = vld [vmem:[%s7115_s21 + $0x50] sm:$0xff]  ;;  %v7162_v10 = vpack.i.bf16 %v7143_v5, %v7136_v3  ;;  %v7165_v11 = vld [vmem:[%s7115_s21 + $0x58] sm:$0xff]  ;;  %v7381_v56 = vpack.i.bf16 %v8785_v0, %v7143_v5  ;;  %vm751_vm1 = vcmask 7168   ;;  %s6904_s15 = smov 16   ;;  %s6905_s23 = smov 127  }
  0x66   : > { %v7153_v8 = vpack.i.bf16 %v7149_v7, %v7146_v6  ;;  %5484 = vrot.lane.b32.xlu0 %v7140_v4, %s6901_s18  ;;  %v7170_v12 = vld [vmem:[%s7115_s21 + $0x30] sm:$0xff]  ;;  %v7173_v13 = vld [vmem:[%s7115_s21 + $0x38] sm:$0xff]  ;;  %v7177_v14 = vpack.i.bf16 %v7165_v11, %v7156_v9  ;;  %v7180_v15 = vld [vmem:[%s7115_s21 + $0x60] sm:$0xff]  ;;  %v7389_v57 = vpack.i.bf16 %v8785_v0, %v7149_v7  ;;  %8820 = vst [vmem:[#allocation24_spill] sm:$0xff] %v7394_v58  ;;  %vm1016_vm2 = vcmask 138240   ;;  %s6906_s27 = smov 112  }
  0x67   : > { %v7183_v16 = vld [vmem:[%s7115_s21 + $0x68] sm:$0xff]  ;;  %v7189_v17 = vpack.i.bf16 %v7173_v13, %v7170_v12  ;;  %v7194_v18 = vld [vmem:[%s7115_s21 + $0x40] sm:$0xff]  ;;  %v7212_v22 = vld [vmem:[%s7115_s21 + $0x90] sm:$0xff]  ;;  %v7400_v59 = vpack.i.bf16 %v7170_v12, %v7146_v6  ;;  %8822 = vst [vmem:[#allocation26_spill] sm:$0xff] %v7406_v61  ;;  %v7412_v62 = vpack.i.bf16 %v8785_v0, %v7165_v11  ;;  %vm1393_vm3 = vcmask 924672   ;;  %s6907_s10 = smov 15  }
  0x68   : > { %5479 = vrot.lane.b32.xlu1 %v8785_v0, %s6901_s18  ;;  %8813 = vst [vmem:[#allocation17_spill] sm:$0xff] %v7177_v14  ;;  %v7197_v19 = vld [vmem:[%s7115_s21 + $0x48] sm:$0xff]  ;;  %v7201_v20 = vpack.i.bf16 %v7183_v16, %v7180_v15  ;;  %v7215_v23 = vld [vmem:[%s7115_s21 + $0x98] sm:$0xff]  ;;  %v7222_v24 = vld [vmem:[%s7115_s21 + $0x70] sm:$0xff]  ;;  %vm2300_vm4 = vcmask 1039360   ;;  %s6908_s26 = smov 111  }
  0x69   : > { %8814 = vst [vmem:[#allocation18_spill] sm:$0xff] %v7189_v17  ;;  %v7207_v21 = vpack.i.bf16 %v7197_v19, %v7194_v18  ;;  %v7225_v25 = vld [vmem:[%s7115_s21 + $0x78] sm:$0xff]  ;;  %v7229_v26 = vpack.i.bf16 %v7215_v23, %v7212_v22  ;;  %v7232_v27 = vld [vmem:[%s7115_s21 + $0xa0] sm:$0xff]  ;;  %v7235_v28 = vld [vmem:[%s7115_s21 + $0xa8] sm:$0xff]  ;;  %vm2022_vm5 = vcmask 916480   ;;  %vm2564_vm6 = vcmask 121856  }
  0x6a   : > { %5489 = vrot.lane.b32.xlu0 %v7162_v10, %s6901_s18  ;;  %8815 = vst [vmem:[#allocation19_spill] sm:$0xff] %v7201_v20  ;;  %v7241_v29 = vpack.i.bf16 %v7225_v25, %v7222_v24  ;;  %v7246_v30 = vld [vmem:[%s7115_s21 + $0x80] sm:$0xff]  ;;  %v7249_v31 = vld [vmem:[%s7115_s21 + $0x88] sm:$0xff]  ;;  %v5548_v32 = vpack.i.bf16 %v7235_v28, %v7232_v27  ;;  %v7261_v34 = vld [vmem:[%s7115_s21 + $0xd0] sm:$0xff]  ;;  %vm2833_vm7 = vcmask 908288   ;;  %s378_s24 = sld [smem:[#allocation3]] }
  0x6b   : > { %8816 = vst [vmem:[#allocation20_spill] sm:$0xff] %v7207_v21  ;;  %v7257_v33 = vpack.i.bf16 %v7249_v31, %v7246_v30  ;;  %v7264_v35 = vld [vmem:[%s7115_s21 + $0xd8] sm:$0xff]  ;;  %v7271_v36 = vld [vmem:[%s7115_s21 + $0xb0] sm:$0xff]  ;;  %v7279_v39 = vld [vmem:[%s7115_s21 + $0xe0] sm:$0xff]  ;;  %vm3954_vm12 = vcmask 64512   ;;  %s4968_s20 = sshll.u32 %s6987_s0, 9 }
  0x6c   : > { %5494 = vrot.lane.b32.xlu1 %v7153_v8, %s6901_s18  ;;  %8817 = vst [vmem:[#allocation21_spill] sm:$0xff] %v7241_v29  ;;  %v7274_v37 = vld [vmem:[%s7115_s21 + $0xb8] sm:$0xff]  ;;  %v5568_v38 = vpack.i.bf16 %v7264_v35, %v7261_v34  ;;  %v7282_v40 = vld [vmem:[%s7115_s21 + $0xe8] sm:$0xff]  ;;  %v7290_v42 = vld [vmem:[%s7115_s21 + $0xc0] sm:$0xff] }
  0x6d   : > { %8818 = vst [vmem:[#allocation22_spill] sm:$0xff] %v7257_v33  ;;  %v5553_v41 = vpack.i.bf16 %v7274_v37, %v7271_v36  ;;  %v7293_v43 = vld [vmem:[%s7115_s21 + $0xc8] sm:$0xff]  ;;  %v5578_v44 = vpack.i.bf16 %v7282_v40, %v7279_v39  ;;  %v7302_v46 = vld [vmem:[%s7115_s21 + $0x110] sm:$0xff]  ;;  %v7305_v47 = vld [vmem:[%s7115_s21 + $0x118] sm:$0xff] }
  0x6e   : > { %5499 = vrot.lane.b32.xlu0 %v7189_v17, %s6901_s18  ;;  %v5563_v45 = vpack.i.bf16 %v7293_v43, %v7290_v42  ;;  %v7311_v48 = vld [vmem:[%s7115_s21 + $0xf0] sm:$0xff]  ;;  %v7314_v49 = vld [vmem:[%s7115_s21 + $0xf8] sm:$0xff]  ;;  %v5598_v50 = vpack.i.bf16 %v7305_v47, %v7302_v46  ;;  %v7324_v52 = vld [vmem:[%s7115_s21 + $0x100] sm:$0xff]  ;;  %8819 = vst [vmem:[#allocation23_spill] sm:$0xff] %v7389_v57 }
  0x6f   : > { %v5583_v51 = vpack.i.bf16 %v7314_v49, %v7311_v48  ;;  %v7327_v53 = vld [vmem:[%s7115_s21 + $0x108] sm:$0xff]  ;;  %8821 = vst [vmem:[#allocation25_spill] sm:$0xff] %v7400_v59  ;;  %8823 = vst [vmem:[#allocation27_spill] sm:$0xff] %v7412_v62 }
  0x70   : > { %5509 = vrot.lane.b32.xlu1 %v7177_v14, %s6901_s18  ;;  %v5593_v54 = vpack.i.bf16 %v7327_v53, %v7324_v52  ;;  %v586_v55 = vld [vmem:[#allocation7 + $0x68] sm:$0xff] }
  0x71   : > { %4906 = vmatprep.mubr.msk.f32.mxu0 %vm824_vm0, %v586_v55 }
  0x72   : > { %5504 = vrot.lane.b32.xlu0 %v7207_v21, %s6901_s18 }
  0x74   : > { %5519 = vrot.lane.b32.xlu1 %v7201_v20, %s6901_s18 }
  0x76   : > { %5514 = vrot.lane.b32.xlu0 %v8785_v0, %s6901_s18 }
  0x78   : > { %5529 = vrot.lane.b32.xlu1 %v8785_v0, %s6901_s18 }
  0x7a   : > { %5524 = vrot.lane.b32.xlu0 %v7241_v29, %s6901_s18 }
  0x7c   : > { %5539 = vrot.lane.b32.xlu1 %v7229_v26, %s6901_s18 }
  0x7e   : > { %5534 = vrot.lane.b32.xlu0 %v7257_v33, %s6901_s18 }
  0x80   : > { %5549 = vrot.lane.b32.xlu1 %v5548_v32, %s6901_s18 }
  0x82   : > { %5544 = vrot.lane.b32.xlu0 %v8785_v0, %s6901_s18 }
  0x84   : > { %5559 = vrot.lane.b32.xlu1 %v8785_v0, %s6901_s18 }
  0x86   : > { %5554 = vrot.lane.b32.xlu0 %v5553_v41, %s6901_s18 }
  0x88   : > { %5569 = vrot.lane.b32.xlu1 %v5568_v38, %s6901_s18 }
  0x8a   : > { %5564 = vrot.lane.b32.xlu0 %v5563_v45, %s6901_s18 }
  0x8c   : > { %5579 = vrot.lane.b32.xlu1 %v5578_v44, %s6901_s18 }
  0x8e   : > { %5574 = vrot.lane.b32.xlu0 %v8785_v0, %s6901_s18 }
  0x90   : > { %5589 = vrot.lane.b32.xlu1 %v8785_v0, %s6901_s18 }
  0x92   : > { %5584 = vrot.lane.b32.xlu0 %v5583_v51, %s6901_s18 }
  0x94   : > { %5599 = vrot.lane.b32.xlu1 %v5598_v50, %s6901_s18 }
  0x96   : > { %5594 = vrot.lane.b32.xlu0 %v5593_v54, %s6901_s18 }
  0x98   : > { %5609 = vrot.lane.b32.xlu1 %v7140_v4, %s6902_s16 }
  0x9a   : > { %5604 = vrot.lane.b32.xlu0 %v8785_v0, %s6901_s18 }
  0x9c   : > { %5619 = vrot.lane.b32.xlu1 %v8785_v0, %s6902_s16 }
  0x9e   : > { %5614 = vrot.lane.b32.xlu0 %v7162_v10, %s6902_s16 }
  0xa0   : > { %5629 = vrot.lane.b32.xlu1 %v7189_v17, %s6902_s16  ;;  %v8826_v17 = vmov 0.0  }
  0xa2   : > { %5624 = vrot.lane.b32.xlu0 %v7153_v8, %s6902_s16 }
  0xa4   : > { %5639 = vrot.lane.b32.xlu1 %v7207_v21, %s6902_s16 }
  0xa6   : > { %5634 = vrot.lane.b32.xlu0 %v8785_v0, %s6902_s16 }
  0xa8   : > { %5649 = vrot.lane.b32.xlu1 %v8785_v0, %s6902_s16 }
  0xaa   : > { %5644 = vrot.lane.b32.xlu0 %v7177_v14, %s6902_s16 }
  0xac   : > { %5659 = vrot.lane.b32.xlu1 %v7241_v29, %s6902_s16  ;;  %v7435_v29 = vpack.i.bf16 %v7156_v9, %v7194_v18 }
  0xae   : > { %5654 = vrot.lane.b32.xlu0 %v7201_v20, %s6902_s16 }
  0xb0   : > { %5669 = vrot.lane.b32.xlu1 %v7257_v33, %s6902_s16 }
  0xb2   : > { %5664 = vrot.lane.b32.xlu0 %v8785_v0, %s6902_s16 }
  0xb4   : > { %5679 = vrot.lane.b32.xlu1 %v8785_v0, %s6902_s16 }
  0xb6   : > { %5674 = vrot.lane.b32.xlu0 %v7229_v26, %s6902_s16  ;;  %v7418_v26 = vpack.i.bf16 %v8785_v0, %v7173_v13 }
  0xb8   : > { %5689 = vrot.lane.b32.xlu1 %v5553_v41, %s6902_s16  ;;  %8824 = vst [vmem:[#allocation28_spill] sm:$0xff] %v7418_v26 }
  0xba   : > { %5684 = vrot.lane.b32.xlu0 %v5548_v32, %s6902_s16  ;;  %v5788_v32 = vpack.i.bf16 %v8785_v0, %v7183_v16 }
  0xbc   : > { %5699 = vrot.lane.b32.xlu1 %v5563_v45, %s6902_s16 }
  0xbe   : > { %5694 = vrot.lane.b32.xlu0 %v8785_v0, %s6902_s16 }
  0xc0   : > { %5709 = vrot.lane.b32.xlu1 %v8785_v0, %s6902_s16 }
  0xc2   : > { %5704 = vrot.lane.b32.xlu0 %v5568_v38, %s6902_s16 }
  0xc4   : > { %5719 = vrot.lane.b32.xlu1 %v5583_v51, %s6902_s16 }
  0xc6   : > { %5714 = vrot.lane.b32.xlu0 %v5578_v44, %s6902_s16 }
  0xc8   : > { %5729 = vrot.lane.b32.xlu1 %v5593_v54, %s6902_s16  ;;  %v5798_v54 = vpack.i.bf16 %v7222_v24, %v7180_v15 }
  0xca   : > { %5724 = vrot.lane.b32.xlu0 %v8785_v0, %s6902_s16 }
  0xcc   : > { %5739 = vrot.lane.b32.xlu1 %v8785_v0, %s6902_s16 }
  0xce   : > { %5734 = vrot.lane.b32.xlu0 %v5598_v50, %s6902_s16  ;;  %v7428_v50 = vpack.i.bf16 %v8785_v0, %v7197_v19 }
  0xd0   : > { %5749 = vrot.lane.b32.xlu1 %v7381_v56, %s6903_s19  ;;  %8825 = vst [vmem:[#allocation29_spill] sm:$0xff] %v7428_v50 }
  0xd2   : > { %5744 = vrot.lane.b32.xlu0 %v7394_v58, %s6903_s19 }
  0xd4   : > { %5759 = vrot.lane.b32.xlu1 %v7389_v57, %s6903_s19 }
  0xd6   : > { %v5475_v60 = vpop.permute.xlu1 %5474  ;;  %5754 = vrot.lane.b32.xlu0 %v7406_v61, %s6903_s19 }
  0xd7   : > { %v5476_v51 = vunpack.i.l.bf16 %v5475_v60  ;;  %v5477_v20 = vunpack.i.h.bf16 %v5475_v60 }
  0xd8   : > { %5769 = vrot.lane.b32.xlu1 %v7400_v59, %s6903_s19  ;;  %v5485_v38 = vpop.permute.xlu0 %5484 }
  0xd9   : > { %v5487_v44 = vunpack.i.h.bf16 %v5485_v38  ;;  %v5486_v45 = vunpack.i.l.bf16 %v5485_v38  ;;  %v5077_v38 = vpack.c.bf16 %v7143_v5, %v7131_v2 }
  0xda   : > { %v5480_v63 = vpop.permute.xlu1 %5479  ;;  %5764 = vrot.lane.b32.xlu0 %v7418_v26, %s6903_s19  ;;  %v5808_v26 = vpack.i.bf16 %v8826_v17, %v7215_v23 }
  0xdb   : > { %v5482_v59 = vunpack.i.h.bf16 %v5480_v63  ;;  %v753_v21 = vsel %vm751_vm1, %v5486_v45, %v5487_v44  ;;  %5078 = vmatprep.subr.bf16.mxu1 %v5077_v38  ;;  %v5481_v2 = vunpack.i.l.bf16 %v5480_v63  ;;  %v752_v60 = vsel %vm751_vm1, %v5476_v51, %v5486_v45 }
  0xdc   : > { %5779 = vrot.lane.b32.xlu1 %v7412_v62, %s6903_s19  ;;  %v5490_v55 = vpop.permute.xlu0 %5489 }
  0xdd   : > { %v5492_v14 = vunpack.i.h.bf16 %v5490_v55  ;;  %v5491_v0 = vunpack.i.l.bf16 %v5490_v55 }
  0xde   : > { %v5495_v41 = vpop.permute.xlu1 %5494  ;;  %5774 = vrot.lane.b32.xlu0 %v7428_v50, %s6903_s19 }
  0xdf   : > { %v5497_v33 = vunpack.i.h.bf16 %v5495_v41  ;;  %v5496_v57 = vunpack.i.l.bf16 %v5495_v41  ;;  %v755_v5 = vsel %vm751_vm1, %v5491_v0, %v5492_v14  ;;  %v5081_v14 = vpack.c.bf16 %v7173_v13, %v7149_v7 }
  0xe0   : > { %5789 = vrot.lane.b32.xlu1 %v5788_v32, %s6903_s19  ;;  %v5079_v32 = vpack.c.bf16 %v7136_v3, %v7128_v1  ;;  %v754_v1 = vsel %vm751_vm1, %v5477_v20, %v5491_v0  ;;  %v5500_v3 = vpop.permute.xlu0 %5499  ;;  %v4969_v55 = vpack.c.bf16 %v755_v5, %v753_v21  ;;  %v7463_v0 = vpack.i.bf16 %v8826_v17, %v7225_v25 }
  0xe1   : > { %v4971_v50 = vpack.c.bf16 %v754_v1, %v752_v60  ;;  %v757_v44 = vsel %vm751_vm1, %v5496_v57, %v5497_v33  ;;  %v5502_v61 = vunpack.i.h.bf16 %v5500_v3  ;;  %v5501_v58 = vunpack.i.l.bf16 %v5500_v3 }
  0xe2   : > { %v7439_v62 = vpop.permute.xlu1 %5509  ;;  %5080 = vmatpush1.bf16.msra.mxu1 %v5079_v32  ;;  %5784 = vrot.lane.b32.xlu0 %v7435_v29, %s6903_s19  ;;  %v5818_v20 = vpack.i.bf16 %v8826_v17, %v7235_v28  ;;  %v5083_v21 = vpack.c.bf16 %v7170_v12, %v7146_v6  ;;  %v756_v7 = vsel %vm751_vm1, %v5481_v2, %v5496_v57 }
  0xe3   : > { %v5512_v41 = vunpack.i.h.bf16 %v7439_v62  ;;  %v5511_v63 = vunpack.i.l.bf16 %v7439_v62  ;;  %4970 = vmatprep.subr.bf16.mxu0 %v4969_v55  ;;  %v759_v33 = vsel %vm751_vm1, %v5501_v58, %v5502_v61  ;;  %v758_v13 = vsel %vm751_vm1, %v5482_v59, %v5501_v58  ;;  %5082 = vmatprep.subr.bf16.mxu1 %v5081_v14 }
  0xe4   : > { %5799 = vrot.lane.b32.xlu1 %v5798_v54, %s6903_s19  ;;  %4972 = vmatpush1.bf16.msra.mxu0 %v4971_v50  ;;  %v5505_v62 = vpop.permute.xlu0 %5504  ;;  %v4973_v45 = vpack.c.bf16 %v759_v33, %v757_v44  ;;  %v4975_v51 = vpack.c.bf16 %v758_v13, %v756_v7  ;;  %v5085_v6 = vpack.c.bf16 %v7165_v11, %v7197_v19 }
  0xe5   : > { %v5507_v54 = vunpack.i.h.bf16 %v5505_v62  ;;  %v5506_v32 = vunpack.i.l.bf16 %v5505_v62  ;;  %v763_v60 = vsel %vm751_vm1, %v5511_v63, %v5512_v41  ;;  %v5803_v12 = vpack.i.bf16 %v8826_v17, %v7249_v31 }
  0xe6   : > { %v7455_v38 = vpop.permute.xlu1 %5519  ;;  %5084 = vmatpush1.bf16.msra.mxu1 %v5083_v21  ;;  %5794 = vrot.lane.b32.xlu0 %v7463_v0, %s6903_s19  ;;  %v5087_v57 = vpack.c.bf16 %v7156_v9, %v7194_v18  ;;  %v5828_v59 = vpack.i.bf16 %v7271_v36, %v7232_v27  ;;  %v5089_v19 = vpack.c.bf16 %v7225_v25, %v7183_v16 }
  0xe7   : > { %4974 = vmatprep.subr.bf16.mxu0 %v4973_v45  ;;  %v761_v58 = vsel %vm751_vm1, %v5506_v32, %v5507_v54  ;;  %5086 = vmatprep.subr.bf16.mxu1 %v5085_v6  ;;  %v5091_v9 = vpack.c.bf16 %v7222_v24, %v7180_v15  ;;  %v5522_v18 = vunpack.i.h.bf16 %v7455_v38  ;;  %v5521_v1 = vunpack.i.l.bf16 %v7455_v38 }
  0xe8   : > { %5809 = vrot.lane.b32.xlu1 %v5808_v26, %s6903_s19  ;;  %4976 = vmatpush1.bf16.msra.mxu0 %v4975_v51  ;;  %v5515_v61 = vpop.permute.xlu0 %5514  ;;  %v4977_v11 = vpack.c.bf16 %v763_v60, %v761_v58  ;;  %v5813_v3 = vpack.i.bf16 %v7212_v22, %v7246_v30  ;;  %v5838_v16 = vpack.i.bf16 %v8826_v17, %v7264_v35 }
  0xe9   : > { %v5517_v26 = vunpack.i.h.bf16 %v5515_v61  ;;  %v5516_v50 = vunpack.i.l.bf16 %v5515_v61  ;;  %v5093_v14 = vpack.c.bf16 %v7215_v23, %v7249_v31  ;;  %v5823_v13 = vpack.i.bf16 %v8826_v17, %v7274_v37 }
  0xea   : > { %v5530_v5 = vpop.permute.xlu1 %5529  ;;  %5088 = vmatpush1.bf16.msra.mxu1 %v5087_v57  ;;  %5804 = vrot.lane.b32.xlu0 %v5803_v12, %s6903_s19  ;;  %v765_v62 = vsel %vm751_vm1, %v5521_v1, %v5522_v18  ;;  %v5848_v23 = vpack.i.bf16 %v8826_v17, %v7282_v40  ;;  %v5097_v12 = vpack.c.bf16 %v7274_v37, %v7235_v28 }
  0xeb   : > { %4978 = vmatprep.subr.bf16.mxu0 %v4977_v11  ;;  %v5532_v25 = vunpack.i.h.bf16 %v5530_v5  ;;  %v5531_v41 = vunpack.i.l.bf16 %v5530_v5  ;;  %v760_v55 = vsel %vm751_vm1, %v5516_v50, %v5506_v32  ;;  %v762_v44 = vsel %vm751_vm1, %v5517_v26, %v5511_v63  ;;  %5090 = vmatprep.subr.bf16.mxu1 %v5089_v19 }
  0xec   : > { %5819 = vrot.lane.b32.xlu1 %v5818_v20, %s6903_s19  ;;  %v5525_v15 = vpop.permute.xlu0 %5524  ;;  %v4979_v38 = vpack.c.bf16 %v762_v44, %v760_v55  ;;  %v5095_v63 = vpack.c.bf16 %v7212_v22, %v7246_v30  ;;  %v5833_v57 = vpack.i.bf16 %v8826_v17, %v7293_v43  ;;  %v5099_v58 = vpack.c.bf16 %v7271_v36, %v7232_v27 }
  0xed   : > { %v5527_v20 = vunpack.i.h.bf16 %v5525_v15  ;;  %v5526_v21 = vunpack.i.l.bf16 %v5525_v15  ;;  %v764_v45 = vsel %vm751_vm1, %v5531_v41, %v5521_v1  ;;  %v5858_v61 = vpack.i.bf16 %v7311_v48, %v7279_v39 }
  0xee   : > { %v7488_v2 = vpop.permute.xlu1 %5539  ;;  %5092 = vmatpush1.bf16.msra.mxu1 %v5091_v9  ;;  %5814 = vrot.lane.b32.xlu0 %v5813_v3, %s6903_s19  ;;  %v5101_v28 = vpack.c.bf16 %v7264_v35, %v7293_v43  ;;  %v5103_v27 = vpack.c.bf16 %v7261_v34, %v7290_v42  ;;  %v5843_v9 = vpack.i.bf16 %v7261_v34, %v7290_v42 }
  0xef   : > { %v5542_v24 = vunpack.i.h.bf16 %v7488_v2  ;;  %v5541_v33 = vunpack.i.l.bf16 %v7488_v2  ;;  %4980 = vmatpush1.bf16.msra.mxu0 %v4979_v38  ;;  %v767_v31 = vsel %vm751_vm1, %v5526_v21, %v5527_v20  ;;  %v766_v51 = vsel %vm751_vm1, %v5532_v25, %v5526_v21  ;;  %5094 = vmatprep.subr.bf16.mxu1 %v5093_v14 }
  0xf0   : > { %5829 = vrot.lane.b32.xlu1 %v5828_v59, %s6903_s19  ;;  %v5535_v22 = vpop.permute.xlu0 %5534  ;;  %v4981_v30 = vpack.c.bf16 %v767_v31, %v765_v62  ;;  %v4983_v54 = vpack.c.bf16 %v766_v51, %v764_v45  ;;  %v5868_v35 = vpack.i.bf16 %v8826_v17, %v7305_v47  ;;  %v5105_v55 = vpack.c.bf16 %v7314_v49, %v7282_v40 }
  0xf1   : > { %v5537_v32 = vunpack.i.h.bf16 %v5535_v22  ;;  %v5536_v5 = vunpack.i.l.bf16 %v5535_v22  ;;  %v771_v6 = vsel %vm751_vm1, %v5541_v33, %v5542_v24  ;;  %v5107_v24 = vpack.c.bf16 %v7311_v48, %v7279_v39 }
  0xf2   : > { %v7506_v7 = vpop.permute.xlu1 %5549  ;;  %5096 = vmatpush1.bf16.msra.mxu1 %v5095_v63  ;;  %5824 = vrot.lane.b32.xlu0 %v5823_v13, %s6903_s19  ;;  %v5853_v38 = vpack.i.bf16 %v8826_v17, %v7314_v49  ;;  %v5109_v49 = vpack.c.bf16 %v7305_v47, %v7327_v53  ;;  %v5111_v31 = vpack.c.bf16 %v7302_v46, %v7324_v52 }
  0xf3   : > { %4982 = vmatprep.subr.bf16.mxu0 %v4981_v30  ;;  %v769_v59 = vsel %vm751_vm1, %v5536_v5, %v5537_v32  ;;  %5098 = vmatprep.subr.bf16.mxu1 %v5097_v12  ;;  %v5552_v36 = vunpack.i.h.bf16 %v7506_v7  ;;  %v5551_v2 = vunpack.i.l.bf16 %v7506_v7  ;;  %v1560_v32 = vld [vmem:[#allocation7 + $0x88] sm:$0xff] }
  0xf4   : > { %5839 = vrot.lane.b32.xlu1 %v5838_v16, %s6903_s19  ;;  %4984 = vmatpush1.bf16.msra.mxu0 %v4983_v54  ;;  %v5545_v11 = vpop.permute.xlu0 %5544  ;;  %v4985_v19 = vpack.c.bf16 %v771_v6, %v769_v59  ;;  %v1559_v6 = vld [vmem:[#allocation7 + $0x80] sm:$0xff] }
  0xf5   : > { %v5547_v37 = vunpack.i.h.bf16 %v5545_v11  ;;  %v5546_v26 = vunpack.i.l.bf16 %v5545_v11  ;;  %v773_v14 = vsel %vm751_vm1, %v5551_v2, %v5552_v36  ;;  %4912 = vmatprep.mubr.msk.f32.mxu1 %vm824_vm0, %v1560_v32  ;;  %v588_v32 = vld [vmem:[#allocation7 + $0x78] sm:$0xff] }
  0xf6   : > { %v5560_v60 = vpop.permute.xlu1 %5559  ;;  %5100 = vmatpush1.bf16.msra.mxu1 %v5099_v58  ;;  %5834 = vrot.lane.b32.xlu0 %v5833_v57, %s6903_s19 }
  0xf7   : > { %4986 = vmatprep.subr.bf16.mxu0 %v4985_v19  ;;  %v5562_v43 = vunpack.i.h.bf16 %v5560_v60  ;;  %v5561_v18 = vunpack.i.l.bf16 %v5560_v60  ;;  %v768_v1 = vsel %vm751_vm1, %v5546_v26, %v5536_v5  ;;  %v770_v3 = vsel %vm751_vm1, %v5547_v37, %v5541_v33  ;;  %5102 = vmatprep.subr.bf16.mxu1 %v5101_v28 }
  0xf8   : > { %5849 = vrot.lane.b32.xlu1 %v5848_v23, %s6903_s19  ;;  %v5555_v16 = vpop.permute.xlu0 %5554  ;;  %v4987_v41 = vpack.c.bf16 %v770_v3, %v768_v1  ;;  %v5863_v23 = vpack.i.bf16 %v8826_v17, %v7327_v53  ;;  %v5873_v60 = vpack.i.bf16 %v7302_v46, %v7324_v52 }
  0xf9   : > { %v5557_v34 = vunpack.i.h.bf16 %v5555_v16  ;;  %v5556_v42 = vunpack.i.l.bf16 %v5555_v16  ;;  %v772_v20 = vsel %vm751_vm1, %v5561_v18, %v5551_v2 }
  0xfa   : > { %v7534_v50 = vpop.permute.xlu1 %5569  ;;  %5104 = vmatpush1.bf16.msra.mxu1 %v5103_v27  ;;  %5844 = vrot.lane.b32.xlu0 %v5843_v9, %s6903_s19 }
  0xfb   : > { %v5572_v25 = vunpack.i.h.bf16 %v7534_v50  ;;  %v5571_v44 = vunpack.i.l.bf16 %v7534_v50  ;;  %4988 = vmatpush1.bf16.msra.mxu0 %v4987_v41  ;;  %v775_v40 = vsel %vm751_vm1, %v5556_v42, %v5557_v34  ;;  %v774_v21 = vsel %vm751_vm1, %v5562_v43, %v5556_v42  ;;  %5106 = vmatprep.subr.bf16.mxu1 %v5105_v55 }
  0xfc   : > { %5859 = vrot.lane.b32.xlu1 %v5858_v61, %s6903_s19  ;;  %v5565_v33 = vpop.permute.xlu0 %5564  ;;  %v4989_v7 = vpack.c.bf16 %v775_v40, %v773_v14  ;;  %v4991_v39 = vpack.c.bf16 %v774_v21, %v772_v20 }
  0xfd   : > { %v5567_v48 = vunpack.i.h.bf16 %v5565_v33  ;;  %v5566_v63 = vunpack.i.l.bf16 %v5565_v33  ;;  %v779_v62 = vsel %vm751_vm1, %v5571_v44, %v5572_v25 }
  0xfe   : > { %v7552_v15 = vpop.permute.xlu1 %5579  ;;  %5108 = vmatpush1.bf16.msra.mxu1 %v5107_v24  ;;  %5854 = vrot.lane.b32.xlu0 %v5853_v38, %s6903_s19 }
  0xff   : > { %4990 = vmatprep.subr.bf16.mxu0 %v4989_v7  ;;  %v777_v45 = vsel %vm751_vm1, %v5566_v63, %v5567_v48  ;;  %5110 = vmatprep.subr.bf16.mxu1 %v5109_v49  ;;  %v5582_v53 = vunpack.i.h.bf16 %v7552_v15  ;;  %v5581_v5 = vunpack.i.l.bf16 %v7552_v15  ;;  %v585_v48 = vld [vmem:[#allocation7 + $0x60] sm:$0xff] }
 0x100   : > { %5869 = vrot.lane.b32.xlu1 %v5868_v35, %s6903_s19  ;;  %4992 = vmatpush1.bf16.msra.mxu0 %v4991_v39  ;;  %v5575_v51 = vpop.permute.xlu0 %5574  ;;  %v4993_v22 = vpack.c.bf16 %v779_v62, %v777_v45  ;;  %v8828_v39 = vld [vmem:[#allocation26_spill] sm:$0xff] }
 0x101   : > { %v5577_v47 = vunpack.i.h.bf16 %v5575_v51  ;;  %v5576_v30 = vunpack.i.l.bf16 %v5575_v51  ;;  %v781_v52 = vsel %vm751_vm1, %v5581_v5, %v5582_v53  ;;  %v8830_v53 = vld [vmem:[#allocation18_spill] sm:$0xff] }
 0x102   : > { %v5590_v13 = vpop.permute.xlu1 %5589  ;;  %5112 = vmatpush1.bf16.msra.mxu1 %v5111_v31  ;;  %5864 = vrot.lane.b32.xlu0 %v5863_v23, %s6903_s19  ;;  %v8829_v23 = vld [vmem:[#allocation28_spill] sm:$0xff] }
 0x103   : > { %4994 = vmatprep.subr.bf16.mxu0 %v4993_v22  ;;  %v5591_v12 = vunpack.i.l.bf16 %v5590_v13  ;;  %v776_v57 = vsel %vm751_vm1, %v5576_v30, %v5566_v63  ;;  %v778_v58 = vsel %vm751_vm1, %v5577_v47, %v5571_v44  ;;  %v8827_v44 = vld [vmem:[#allocation24_spill] sm:$0xff] }
 0x104   : > { %5879 = vrot.lane.b32.xlu1 %v7140_v4, %s6904_s15  ;;  %v5592_v4 = vunpack.i.h.bf16 %v5590_v13  ;;  %v5585_v59 = vpop.permute.xlu0 %5584  ;;  %v4995_v61 = vpack.c.bf16 %v778_v58, %v776_v57  ;;  %v581_v57 = vld [vmem:[#allocation7 + $0x8] sm:$0xff] }
 0x105   : > { %1634 = vmatmul.mubr.f32.vlgmr.msra.gmra.mrb[0].mxu1 %v1559_v6  ;;  %v5587_v11 = vunpack.i.h.bf16 %v5585_v59  ;;  %v5586_v19 = vunpack.i.l.bf16 %v5585_v59  ;;  %v780_v50 = vsel %vm751_vm1, %v5591_v12, %v5581_v5  ;;  %v587_v5 = vld [vmem:[#allocation7 + $0x70] sm:$0xff]  ;;  %v8831_v6 = vld [vmem:[#allocation20_spill] sm:$0xff] }
 0x106   : > { %v5600_v54 = vpop.permute.xlu1 %5599  ;;  %5874 = vrot.lane.b32.xlu0 %v5873_v60, %s6903_s19  ;;  %4996 = vmatpush1.bf16.msra.mxu0 %v4995_v61 }
 0x107   : > { %v5602_v28 = vunpack.i.h.bf16 %v5600_v54  ;;  %v5601_v37 = vunpack.i.l.bf16 %v5600_v54  ;;  %v783_v26 = vsel %vm751_vm1, %v5586_v19, %v5587_v11  ;;  %v782_v27 = vsel %vm751_vm1, %v5592_v4, %v5586_v19 }
 0x108   : > { %5889 = vrot.lane.b32.xlu1 %v8826_v17, %s6904_s15  ;;  %v5595_v36 = vpop.permute.xlu0 %5594  ;;  %v4997_v2 = vpack.c.bf16 %v783_v26, %v781_v52  ;;  %v4999_v9 = vpack.c.bf16 %v782_v27, %v780_v50 }
 0x109   : > { %v5597_v35 = vunpack.i.h.bf16 %v5595_v36  ;;  %v5596_v43 = vunpack.i.l.bf16 %v5595_v36  ;;  %v787_v1 = vsel %vm751_vm1, %v5601_v37, %v5602_v28  ;;  %v8832_v28 = vld [vmem:[#allocation23_spill] sm:$0xff] }
 0x10a   : > { %v5610_v46 = vpop.permute.xlu1 %5609  ;;  %5884 = vrot.lane.b32.xlu0 %v7162_v10, %s6904_s15  ;;  %4998 = vmatprep.subr.bf16.mxu0 %v4997_v2 }
 0x10b   : > { %5000 = vmatpush1.bf16.msra.mxu0 %v4999_v9  ;;  %v785_v3 = vsel %vm751_vm1, %v5596_v43, %v5597_v35  ;;  %v5612_v34 = vunpack.i.h.bf16 %v5610_v46  ;;  %v5611_v42 = vunpack.i.l.bf16 %v5610_v46 }
 0x10c   : > { %5899 = vrot.lane.b32.xlu1 %v7381_v56, %s6905_s23  ;;  %v5605_v56 = vpop.permute.xlu0 %5604  ;;  %v5001_v16 = vpack.c.bf16 %v787_v1, %v785_v3 }
 0x10d   : > { %v5607_v25 = vunpack.i.h.bf16 %v5605_v56  ;;  %v5606_v41 = vunpack.i.l.bf16 %v5605_v56  ;;  %v1018_v62 = vsel %vm1016_vm2, %v5611_v42, %v5612_v34 }
 0x10e   : > { %v5620_v18 = vpop.permute.xlu1 %5619  ;;  %5894 = vrot.lane.b32.xlu0 %v8827_v44, %s6905_s23  ;;  %5002 = vmatprep.subr.bf16.mxu0 %v5001_v16 }
 0x10f   : > { %v5622_v15 = vunpack.i.h.bf16 %v5620_v18  ;;  %v5621_v10 = vunpack.i.l.bf16 %v5620_v18  ;;  %v784_v24 = vsel %vm751_vm1, %v5606_v41, %v5596_v43  ;;  %v786_v38 = vsel %vm751_vm1, %v5607_v25, %v5601_v37  ;;  %v8833_v18 = vld [vmem:[#allocation25_spill] sm:$0xff]  ;;  %v8834_v25 = vld [vmem:[#allocation27_spill] sm:$0xff] }
 0x110   : > { %5909 = vrot.lane.b32.xlu1 %v7153_v8, %s6904_s15  ;;  %v5615_v8 = vpop.permute.xlu0 %5614  ;;  %v5003_v14 = vpack.c.bf16 %v786_v38, %v784_v24  ;;  %v8835_v24 = vld [vmem:[#allocation17_spill] sm:$0xff] }
 0x111   : > { %v5617_v40 = vunpack.i.h.bf16 %v5615_v8  ;;  %v5616_v20 = vunpack.i.l.bf16 %v5615_v8  ;;  %v1017_v63 = vsel %vm1016_vm2, %v5621_v10, %v5611_v42  ;;  %v8836_v8 = vld [vmem:[#allocation19_spill] sm:$0xff] }
 0x112   : > { %v5630_v55 = vpop.permute.xlu1 %5629  ;;  %5904 = vrot.lane.b32.xlu0 %v8828_v39, %s6905_s23  ;;  %5004 = vmatpush1.bf16.msra.mxu0 %v5003_v14 }
 0x113   : > { %v5632_v21 = vunpack.i.h.bf16 %v5630_v55  ;;  %v5631_v33 = vunpack.i.l.bf16 %v5630_v55  ;;  %v1019_v13 = vsel %vm1016_vm2, %v5622_v15, %v5616_v20  ;;  %v1020_v49 = vsel %vm1016_vm2, %v5616_v20, %v5617_v40 }
 0x114   : > { %5919 = vrot.lane.b32.xlu1 %v8826_v17, %s6904_s15  ;;  %v5625_v31 = vpop.permute.xlu0 %5624  ;;  %v5005_v45 = vpack.c.bf16 %v1020_v49, %v1018_v62  ;;  %v5007_v51 = vpack.c.bf16 %v1019_v13, %v1017_v63 }
 0x115   : > { %v5627_v22 = vunpack.i.h.bf16 %v5625_v31  ;;  %v5626_v47 = vunpack.i.l.bf16 %v5625_v31  ;;  %896 = vmatmul.mubr.f32.vlgmr.msra.gmra.mrb[0].mxu0 %v585_v48  ;;  %v1024_v54 = vsel %vm1016_vm2, %v5631_v33, %v5632_v21  ;;  %v8837_v48 = vld [vmem:[#allocation29_spill] sm:$0xff] }
 0x116   : > { %v5640_v7 = vpop.permute.xlu1 %5639  ;;  %5914 = vrot.lane.b32.xlu0 %v8830_v53, %s6904_s15  ;;  %5006 = vmatprep.subr.bf16.mxu0 %v5005_v45 }
 0x117   : > { %5008 = vmatpush1.bf16.msra.mxu0 %v5007_v51  ;;  %v1022_v60 = vsel %vm1016_vm2, %v5626_v47, %v5627_v22  ;;  %4907 = vmatprep.mubr.msk.f32.mxu0 %vm824_vm0, %v588_v32  ;;  %v5642_v11 = vunpack.i.h.bf16 %v5640_v7  ;;  %v5641_v19 = vunpack.i.l.bf16 %v5640_v7 }
 0x118   : > { %5929 = vrot.lane.b32.xlu1 %v8829_v23, %s6905_s23  ;;  %v5635_v4 = vpop.permute.xlu0 %5634  ;;  %v5009_v12 = vpack.c.bf16 %v1024_v54, %v1022_v60 }
 0x119   : > { %v5637_v58 = vunpack.i.h.bf16 %v5635_v4  ;;  %v5636_v59 = vunpack.i.l.bf16 %v5635_v4  ;;  %902 = vmatmul.mubr.f32.gmra.mrb[2].mxu0 %v587_v5  ;;  %v1026_v56 = vsel %vm1016_vm2, %v5641_v19, %v5642_v11 }
 0x11a   : > { %v5650_v30 = vpop.permute.xlu1 %5649  ;;  %5924 = vrot.lane.b32.xlu0 %v8832_v28, %s6905_s23  ;;  %5010 = vmatprep.subr.bf16.mxu0 %v5009_v12 }
 0x11b   : > { %v1023_v37 = vsel %vm1016_vm2, %v5637_v58, %v5631_v33  ;;  %v1021_v46 = vsel %vm1016_vm2, %v5636_v59, %v5626_v47  ;;  %v5652_v52 = vunpack.i.h.bf16 %v5650_v30  ;;  %v5651_v26 = vunpack.i.l.bf16 %v5650_v30  ;;  %4908 = vmatprep.mubr.msk.f32.mxu0 %vm824_vm0, %v581_v57  ;;  %v8838_v59 = vld [vmem:[#allocation21_spill] sm:$0xff] }
 0x11c   : > { %5939 = vrot.lane.b32.xlu1 %v8831_v6, %s6904_s15  ;;  %v5645_v50 = vpop.permute.xlu0 %5644  ;;  %v5011_v27 = vpack.c.bf16 %v1023_v37, %v1021_v46 }
 0x11d   : > { %v5647_v36 = vunpack.i.h.bf16 %v5645_v50  ;;  %v5646_v2 = vunpack.i.l.bf16 %v5645_v50  ;;  %v1025_v1 = vsel %vm1016_vm2, %v5651_v26, %v5641_v19  ;;  %v8839_v19 = vld [vmem:[#allocation22_spill] sm:$0xff] }
 0x11e   : > { %v5660_v61 = vpop.permute.xlu1 %5659  ;;  %5934 = vrot.lane.b32.xlu0 %v8833_v18, %s6905_s23  ;;  %5012 = vmatpush1.bf16.msra.mxu0 %v5011_v27 }
 0x11f   : > { %v5662_v9 = vunpack.i.h.bf16 %v5660_v61  ;;  %v5661_v35 = vunpack.i.l.bf16 %v5660_v61  ;;  %v1027_v3 = vsel %vm1016_vm2, %v5652_v52, %v5646_v2  ;;  %v1028_v16 = vsel %vm1016_vm2, %v5646_v2, %v5647_v36  ;;  %v7658_v61 = vld [vmem:[%s7115_s21 + $0x68] sm:$0xff]  ;;  %v7672_v36 = vld [vmem:[%s7115_s21 + $0x60] sm:$0xff]  ;;  %v7675_v2 = vld [vmem:[%s7115_s21 + $0x70] sm:$0xff] }
 0x120   : > { %5949 = vrot.lane.b32.xlu1 %v8826_v17, %s6904_s15  ;;  %v5655_v41 = vpop.permute.xlu0 %5654  ;;  %v5013_v55 = vpack.c.bf16 %v1028_v16, %v1026_v56  ;;  %v5015_v34 = vpack.c.bf16 %v1027_v3, %v1025_v1  ;;  %v7662_v11 = vpack.i.bf16 %v8826_v17, %v7658_v61 }
 0x121   : > { %v5657_v42 = vunpack.i.h.bf16 %v5655_v41  ;;  %v5656_v44 = vunpack.i.l.bf16 %v5655_v41  ;;  %v1032_v10 = vsel %vm1016_vm2, %v5661_v35, %v5662_v9  ;;  %v7679_v9 = vpack.i.bf16 %v7675_v2, %v7672_v36 }
 0x122   : > { %v5670_v43 = vpop.permute.xlu1 %5669  ;;  %5944 = vrot.lane.b32.xlu0 %v8835_v24, %s6904_s15  ;;  %5014 = vmatprep.subr.bf16.mxu0 %v5013_v55  ;;  %v7699_v24 = vld [vmem:[%s7115_s21 + $0xa0] sm:$0xff] }
 0x123   : > { %5016 = vmatpush1.bf16.msra.mxu0 %v5015_v34  ;;  %v1030_v38 = vsel %vm1016_vm2, %v5656_v44, %v5657_v42  ;;  %v5672_v7 = vunpack.i.h.bf16 %v5670_v43  ;;  %v5671_v39 = vunpack.i.l.bf16 %v5670_v43 }
 0x124   : > { %5959 = vrot.lane.b32.xlu1 %v8834_v25, %s6905_s23  ;;  %v5665_v14 = vpop.permute.xlu0 %5664  ;;  %v5017_v40 = vpack.c.bf16 %v1032_v10, %v1030_v38  ;;  %v7702_v38 = vld [vmem:[%s7115_s21 + $0xa8] sm:$0xff] }
 0x125   : > { %v5667_v20 = vunpack.i.h.bf16 %v5665_v14  ;;  %v5666_v21 = vunpack.i.l.bf16 %v5665_v14  ;;  %v1034_v53 = vsel %vm1016_vm2, %v5671_v39, %v5672_v7 }
 0x126   : > { %v5680_v15 = vpop.permute.xlu1 %5679  ;;  %5954 = vrot.lane.b32.xlu0 %v8837_v48, %s6905_s23  ;;  %5018 = vmatprep.subr.bf16.mxu0 %v5017_v40 }
 0x127   : > { %v1031_v63 = vsel %vm1016_vm2, %v5667_v20, %v5661_v35  ;;  %v1029_v13 = vsel %vm1016_vm2, %v5666_v21, %v5656_v44  ;;  %v5682_v62 = vunpack.i.h.bf16 %v5680_v15  ;;  %v5681_v49 = vunpack.i.l.bf16 %v5680_v15  ;;  %v6678_v35 = vld [vmem:[%s7115_s21 + $0x98] sm:$0xff]  ;;  %v6679_v15 = vld [vmem:[%s7115_s21 + $0x90] sm:$0xff] }
 0x128   : > { %5969 = vrot.lane.b32.xlu1 %v8836_v8, %s6904_s15  ;;  %v5675_v23 = vpop.permute.xlu0 %5674  ;;  %v5019_v31 = vpack.c.bf16 %v1031_v63, %v1029_v13  ;;  %v7683_v43 = vpack.i.bf16 %v8826_v17, %v6678_v35  ;;  %v7696_v10 = vpack.i.bf16 %v6678_v35, %v6679_v15  ;;  %v7706_v8 = vpack.i.bf16 %v7702_v38, %v7699_v24 }
 0x129   : > { %v5677_v45 = vunpack.i.h.bf16 %v5675_v23  ;;  %v5676_v51 = vunpack.i.l.bf16 %v5675_v23  ;;  %v1033_v54 = vsel %vm1016_vm2, %v5681_v49, %v5671_v39  ;;  %v7718_v49 = vld [vmem:[%s7115_s21 + $0x88] sm:$0xff] }
 0x12a   : > { %v5690_v33 = vpop.permute.xlu1 %5689  ;;  %5964 = vrot.lane.b32.xlu0 %v7435_v29, %s6905_s23  ;;  %5020 = vmatpush1.bf16.msra.mxu0 %v5019_v31  ;;  %v7722_v23 = vpack.i.bf16 %v8826_v17, %v7718_v49 }
 0x12b   : > { %v5692_v22 = vunpack.i.h.bf16 %v5690_v33  ;;  %v5691_v47 = vunpack.i.l.bf16 %v5690_v33  ;;  %v1035_v32 = vsel %vm1016_vm2, %v5682_v62, %v5676_v51  ;;  %v1036_v5 = vsel %vm1016_vm2, %v5676_v51, %v5677_v45 }
 0x12c   : > { %5979 = vrot.lane.b32.xlu1 %v8826_v17, %s6904_s15  ;;  %v5685_v60 = vpop.permute.xlu0 %5684  ;;  %v5021_v6 = vpack.c.bf16 %v1036_v5, %v1034_v53  ;;  %v5023_v4 = vpack.c.bf16 %v1035_v32, %v1033_v54  ;;  %v7734_v53 = vld [vmem:[%s7115_s21 + $0x80] sm:$0xff] }
 0x12d   : > { %v5687_v12 = vunpack.i.h.bf16 %v5685_v60  ;;  %v5686_v57 = vunpack.i.l.bf16 %v5685_v60  ;;  %v1040_v29 = vsel %vm1016_vm2, %v5691_v47, %v5692_v22  ;;  %v7737_v5 = vpack.i.bf16 %v6679_v15, %v7734_v53  ;;  %v6684_v60 = vld [vmem:[%s7115_s21 + $0xb8] sm:$0xff] }
 0x12e   : > { %v5700_v30 = vpop.permute.xlu1 %5699  ;;  %5974 = vrot.lane.b32.xlu0 %v8838_v59, %s6904_s15  ;;  %5022 = vmatprep.subr.bf16.mxu0 %v5021_v6  ;;  %v7741_v6 = vpack.i.bf16 %v8826_v17, %v6684_v60  ;;  %v7777_v15 = vpack.i.bf16 %v8826_v17, %v7702_v38 }
 0x12f   : > { %5024 = vmatpush1.bf16.msra.mxu0 %v5023_v4  ;;  %v5702_v50 = vunpack.i.h.bf16 %v5700_v30  ;;  %v5701_v27 = vunpack.i.l.bf16 %v5700_v30 }
 0x130   : > { %5989 = vrot.lane.b32.xlu1 %v7463_v0, %s6905_s23  ;;  %v1038_v0 = vsel %vm1016_vm2, %v5686_v57, %v5687_v12  ;;  %v5695_v28 = vpop.permute.xlu0 %5694 }
 0x131   : > { %v5025_v37 = vpack.c.bf16 %v1040_v29, %v1038_v0  ;;  %v5697_v46 = vunpack.i.h.bf16 %v5695_v28  ;;  %v5696_v52 = vunpack.i.l.bf16 %v5695_v28  ;;  %v1042_v20 = vsel %vm1016_vm2, %v5701_v27, %v5702_v50  ;;  %v7757_v50 = vld [vmem:[%s7115_s21 + $0xc0] sm:$0xff] }
 0x132   : > { %v5710_v58 = vpop.permute.xlu1 %5709  ;;  %5984 = vrot.lane.b32.xlu0 %v7662_v11, %s6905_s23 }
 0x133   : > { %5026 = vmatprep.subr.bf16.mxu0 %v5025_v37  ;;  %v1039_v18 = vsel %vm1016_vm2, %v5697_v46, %v5691_v47  ;;  %v1037_v1 = vsel %vm1016_vm2, %v5696_v52, %v5686_v57  ;;  %v5712_v3 = vunpack.i.h.bf16 %v5710_v58  ;;  %v5711_v56 = vunpack.i.l.bf16 %v5710_v58  ;;  %v6685_v52 = vld [vmem:[%s7115_s21 + $0xb0] sm:$0xff] }
 0x134   : > { %5999 = vrot.lane.b32.xlu1 %v8839_v19, %s6904_s15  ;;  %v5705_v16 = vpop.permute.xlu0 %5704  ;;  %v5027_v25 = vpack.c.bf16 %v1039_v18, %v1037_v1 }
 0x135   : > { %v5707_v41 = vunpack.i.h.bf16 %v5705_v16  ;;  %v5706_v55 = vunpack.i.l.bf16 %v5705_v16  ;;  %v1041_v14 = vsel %vm1016_vm2, %v5711_v56, %v5701_v27  ;;  %v7760_v27 = vld [vmem:[%s7115_s21 + $0xc8] sm:$0xff] }
 0x136   : > { %v7667_v26 = vpop.permute.xlu1 %5719  ;;  %5994 = vrot.lane.b32.xlu0 %v7679_v9, %s6905_s23  ;;  %5028 = vmatpush1.bf16.msra.mxu0 %v5027_v25  ;;  %v7764_v35 = vpack.i.bf16 %v7760_v27, %v7757_v50 }
 0x137   : > { %v5722_v34 = vunpack.i.h.bf16 %v7667_v26  ;;  %v5721_v42 = vunpack.i.l.bf16 %v7667_v26  ;;  %v1043_v40 = vsel %vm1016_vm2, %v5712_v3, %v5706_v55  ;;  %v1044_v21 = vsel %vm1016_vm2, %v5706_v55, %v5707_v41 }
 0x138   : > { %6009 = vrot.lane.b32.xlu1 %v8826_v17, %s6904_s15  ;;  %v5715_v33 = vpop.permute.xlu0 %5714  ;;  %v5029_v7 = vpack.c.bf16 %v1044_v21, %v1042_v20  ;;  %v5031_v39 = vpack.c.bf16 %v1043_v40, %v1041_v14  ;;  %v7754_v26 = vpack.i.bf16 %v6684_v60, %v6685_v52  ;;  %v580_v21 = vld [vmem:[#allocation7] sm:$0xff] }
 0x139   : > { %v5717_v48 = vunpack.i.h.bf16 %v5715_v33  ;;  %v5716_v63 = vunpack.i.l.bf16 %v5715_v33  ;;  %v1048_v62 = vsel %vm1016_vm2, %v5721_v42, %v5722_v34 }
 0x13a   : > { %v7691_v44 = vpop.permute.xlu1 %5729  ;;  %6004 = vrot.lane.b32.xlu0 %v7696_v10, %s6904_s15  ;;  %5030 = vmatprep.subr.bf16.mxu0 %v5029_v7 }
 0x13b   : > { %5032 = vmatpush1.bf16.msra.mxu0 %v5031_v39  ;;  %v1046_v31 = vsel %vm1016_vm2, %v5716_v63, %v5717_v48  ;;  %v5732_v54 = vunpack.i.h.bf16 %v7691_v44  ;;  %v5731_v32 = vunpack.i.l.bf16 %v7691_v44  ;;  %v583_v48 = vld [vmem:[#allocation7 + $0x18] sm:$0xff] }
 0x13c   : > { %6019 = vrot.lane.b32.xlu1 %v7683_v43, %s6905_s23  ;;  %v5725_v45 = vpop.permute.xlu0 %5724  ;;  %v5033_v51 = vpack.c.bf16 %v1048_v62, %v1046_v31  ;;  %v6688_v62 = vld [vmem:[%s7115_s21 + $0xd8] sm:$0xff] }
 0x13d   : > { %v5727_v22 = vunpack.i.h.bf16 %v5725_v45  ;;  %v5726_v47 = vunpack.i.l.bf16 %v5725_v45  ;;  %v1050_v3 = vsel %vm1016_vm2, %v5731_v32, %v5732_v54  ;;  %v7793_v31 = vpack.i.bf16 %v8826_v17, %v6688_v62  ;;  %v582_v54 = vld [vmem:[#allocation7 + $0x10] sm:$0xff] }
 0x13e   : > { %v5740_v13 = vpop.permute.xlu1 %5739  ;;  %6014 = vrot.lane.b32.xlu0 %v7722_v23, %s6905_s23  ;;  %5034 = vmatprep.subr.bf16.mxu0 %v5033_v51 }
 0x13f   : > { %v1047_v4 = vsel %vm1016_vm2, %v5727_v22, %v5721_v42  ;;  %v1045_v12 = vsel %vm1016_vm2, %v5726_v47, %v5716_v63  ;;  %v5742_v57 = vunpack.i.h.bf16 %v5740_v13  ;;  %v5741_v58 = vunpack.i.l.bf16 %v5740_v13 }
 0x140   : > { %6029 = vrot.lane.b32.xlu1 %v7706_v8, %s6904_s15  ;;  %v5735_v29 = vpop.permute.xlu0 %5734  ;;  %v5035_v59 = vpack.c.bf16 %v1047_v4, %v1045_v12  ;;  %v7789_v13 = vpack.i.bf16 %v6685_v52, %v7699_v24 }
 0x141   : > { %v5737_v0 = vunpack.i.h.bf16 %v5735_v29  ;;  %v5736_v19 = vunpack.i.l.bf16 %v5735_v29  ;;  %v1049_v18 = vsel %vm1016_vm2, %v5741_v58, %v5731_v32  ;;  %v1228_v58 = vld [vmem:[#allocation7 + $0xc8] sm:$0xff]  ;;  %v6689_v29 = vld [vmem:[%s7115_s21 + $0xd0] sm:$0xff] }
 0x142   : > { %v7727_v30 = vpop.permute.xlu1 %5749  ;;  %6024 = vrot.lane.b32.xlu0 %v7737_v5, %s6905_s23  ;;  %5036 = vmatpush1.bf16.msra.mxu0 %v5035_v59  ;;  %v7807_v59 = vpack.i.bf16 %v6688_v62, %v6689_v29 }
 0x143   : > { %v5752_v28 = vunpack.i.h.bf16 %v7727_v30  ;;  %v5751_v37 = vunpack.i.l.bf16 %v7727_v30  ;;  %v1051_v1 = vsel %vm1016_vm2, %v5742_v57, %v5736_v19  ;;  %v1052_v56 = vsel %vm1016_vm2, %v5736_v19, %v5737_v0  ;;  %v7811_v19 = vld [vmem:[%s7115_s21 + $0xe0] sm:$0xff] }
 0x144   : > { %6039 = vrot.lane.b32.xlu1 %v8826_v17, %s6904_s15  ;;  %v5745_v16 = vpop.permute.xlu0 %5744  ;;  %v5037_v25 = vpack.c.bf16 %v1052_v56, %v1050_v3  ;;  %v5039_v41 = vpack.c.bf16 %v1051_v1, %v1049_v18 }
 0x145   : > { %v5747_v55 = vunpack.i.h.bf16 %v5745_v16  ;;  %v5746_v34 = vunpack.i.l.bf16 %v5745_v16  ;;  %v1397_v44 = vsel %vm1393_vm3, %v5751_v37, %v5752_v28  ;;  %v7814_v28 = vld [vmem:[%s7115_s21 + $0xe8] sm:$0xff] }
 0x146   : > { %v7749_v46 = vpop.permute.xlu1 %5759  ;;  %6034 = vrot.lane.b32.xlu0 %v7754_v26, %s6904_s15  ;;  %5038 = vmatprep.subr.bf16.mxu0 %v5037_v25 }
 0x147   : > { %5040 = vmatpush1.bf16.msra.mxu0 %v5039_v41  ;;  %v1395_v14 = vsel %vm1393_vm3, %v5746_v34, %v5747_v55  ;;  %v5762_v63 = vunpack.i.h.bf16 %v7749_v46  ;;  %v5761_v38 = vunpack.i.l.bf16 %v7749_v46 }
 0x148   : > { %6049 = vrot.lane.b32.xlu1 %v7741_v6, %s6905_s23  ;;  %v5755_v40 = vpop.permute.xlu0 %5754  ;;  %v5041_v20 = vpack.c.bf16 %v1397_v44, %v1395_v14 }
 0x149   : > { %v5757_v33 = vunpack.i.h.bf16 %v5755_v40  ;;  %v5756_v7 = vunpack.i.l.bf16 %v5755_v40  ;;  %v1399_v0 = vsel %vm1393_vm3, %v5761_v38, %v5762_v63 }
 0x14a   : > { %v5770_v42 = vpop.permute.xlu1 %5769  ;;  %6044 = vrot.lane.b32.xlu0 %v7777_v15, %s6905_s23  ;;  %5042 = vmatprep.subr.bf16.mxu0 %v5041_v20 }
 0x14b   : > { %v1396_v45 = vsel %vm1393_vm3, %v5757_v33, %v5751_v37  ;;  %v1394_v51 = vsel %vm1393_vm3, %v5756_v7, %v5746_v34  ;;  %v5772_v22 = vunpack.i.h.bf16 %v5770_v42  ;;  %v5771_v47 = vunpack.i.l.bf16 %v5770_v42  ;;  %1160 = vmatmul.mubr.f32.vlgmr.msra.gmra.mrb[0].mxu0 %v580_v21 }
 0x14c   : > { %6059 = vrot.lane.b32.xlu1 %v7764_v35, %s6904_s15  ;;  %v5765_v30 = vpop.permute.xlu0 %5764  ;;  %v5043_v24 = vpack.c.bf16 %v1396_v45, %v1394_v51  ;;  %4909 = vmatprep.mubr.msk.f32.mxu0 %vm824_vm0, %v583_v48  ;;  %v7818_v37 = vpack.i.bf16 %v7814_v28, %v7811_v19  ;;  %v7831_v34 = vpack.i.bf16 %v8826_v17, %v7760_v27 }
 0x14d   : > { %v5767_v32 = vunpack.i.h.bf16 %v5765_v30  ;;  %v5766_v60 = vunpack.i.l.bf16 %v5765_v30  ;;  %v1398_v46 = vsel %vm1393_vm3, %v5771_v47, %v5761_v38  ;;  %v7841_v27 = vpack.i.bf16 %v6689_v29, %v7757_v50 }
 0x14e   : > { %v7782_v39 = vpop.permute.xlu1 %5779  ;;  %6054 = vrot.lane.b32.xlu0 %v7789_v13, %s6905_s23  ;;  %5044 = vmatpush1.bf16.msra.mxu0 %v5043_v24 }
 0x14f   : > { %v5782_v4 = vunpack.i.h.bf16 %v7782_v39  ;;  %v5781_v12 = vunpack.i.l.bf16 %v7782_v39  ;;  %v1400_v52 = vsel %vm1393_vm3, %v5772_v22, %v5766_v60  ;;  %v1401_v18 = vsel %vm1393_vm3, %v5766_v60, %v5767_v32  ;;  %1166 = vmatmul.mubr.f32.gmra.mrb[2].mxu0 %v582_v54  ;;  %v6692_v39 = vld [vmem:[%s7115_s21 + $0xf8] sm:$0xff]  ;;  %v6693_v32 = vld [vmem:[%s7115_s21 + $0xf0] sm:$0xff] }
 0x150   : > { %6069 = vrot.lane.b32.xlu1 %v8826_v17, %s6904_s15  ;;  %v5775_v1 = vpop.permute.xlu0 %5774  ;;  %v5045_v3 = vpack.c.bf16 %v1401_v18, %v1399_v0  ;;  %v5047_v56 = vpack.c.bf16 %v1400_v52, %v1398_v46  ;;  %4910 = vmatprep.mubr.msk.f32.mxu0 %vm824_vm0, %v1228_v58  ;;  %v7845_v48 = vpack.i.bf16 %v8826_v17, %v6692_v39 }
 0x151   : > { %v5777_v16 = vunpack.i.h.bf16 %v5775_v1  ;;  %v5776_v25 = vunpack.i.l.bf16 %v5775_v1  ;;  %v1405_v55 = vsel %vm1393_vm3, %v5781_v12, %v5782_v4  ;;  %v7854_v60 = vpack.i.bf16 %v6692_v39, %v6693_v32  ;;  %v7857_v4 = vld [vmem:[%s7115_s21 + $0x100] sm:$0xff] }
 0x152   : > { %v7802_v57 = vpop.permute.xlu1 %5789  ;;  %6064 = vrot.lane.b32.xlu0 %v7807_v59, %s6904_s15  ;;  %5046 = vmatprep.subr.bf16.mxu0 %v5045_v3 }
 0x153   : > { %5048 = vmatpush1.bf16.msra.mxu0 %v5047_v56  ;;  %v1403_v42 = vsel %vm1393_vm3, %v5776_v25, %v5777_v16  ;;  %v5792_v33 = vunpack.i.h.bf16 %v7802_v57  ;;  %v5791_v7 = vunpack.i.l.bf16 %v7802_v57 }
 0x154   : > { %6079 = vrot.lane.b32.xlu1 %v7793_v31, %s6905_s23  ;;  %v5785_v44 = vpop.permute.xlu0 %5784  ;;  %v5049_v14 = vpack.c.bf16 %v1405_v55, %v1403_v42 }
 0x155   : > { %v5787_v40 = vunpack.i.h.bf16 %v5785_v44  ;;  %v5786_v20 = vunpack.i.l.bf16 %v5785_v44  ;;  %v1407_v0 = vsel %vm1393_vm3, %v5791_v7, %v5792_v33 }
 0x156   : > { %v5800_v41 = vpop.permute.xlu1 %5799  ;;  %6074 = vrot.lane.b32.xlu0 %v7831_v34, %s6905_s23  ;;  %5050 = vmatprep.subr.bf16.mxu0 %v5049_v14 }
 0x157   : > { %v1404_v63 = vsel %vm1393_vm3, %v5787_v40, %v5781_v12  ;;  %v1402_v38 = vsel %vm1393_vm3, %v5786_v20, %v5776_v25  ;;  %v5802_v62 = vunpack.i.h.bf16 %v5800_v41  ;;  %v5801_v45 = vunpack.i.l.bf16 %v5800_v41  ;;  %v7860_v12 = vld [vmem:[%s7115_s21 + $0x108] sm:$0xff] }
 0x158   : > { %6089 = vrot.lane.b32.xlu1 %v7818_v37, %s6904_s15  ;;  %v5795_v51 = vpop.permute.xlu0 %5794  ;;  %v5051_v22 = vpack.c.bf16 %v1404_v63, %v1402_v38  ;;  %v7864_v57 = vpack.i.bf16 %v7860_v12, %v7857_v4  ;;  %v7877_v41 = vpack.i.bf16 %v8826_v17, %v7814_v28  ;;  %v7887_v28 = vpack.i.bf16 %v6693_v32, %v7811_v19 }
 0x159   : > { %v5797_v50 = vunpack.i.h.bf16 %v5795_v51  ;;  %v5796_v47 = vunpack.i.l.bf16 %v5795_v51  ;;  %v1406_v58 = vsel %vm1393_vm3, %v5801_v45, %v5791_v7  ;;  %v6696_v7 = vld [vmem:[%s7115_s21 + $0x118] sm:$0xff] }
 0x15a   : > { %v5810_v21 = vpop.permute.xlu1 %5809  ;;  %6084 = vrot.lane.b32.xlu0 %v7841_v27, %s6905_s23  ;;  %5052 = vmatpush1.bf16.msra.mxu0 %v5051_v22  ;;  %v7891_v39 = vpack.i.bf16 %v8826_v17, %v6696_v7 }
 0x15b   : > { %v5812_v30 = vunpack.i.h.bf16 %v5810_v21  ;;  %v5811_v24 = vunpack.i.l.bf16 %v5810_v21  ;;  %v1408_v29 = vsel %vm1393_vm3, %v5802_v62, %v5796_v47  ;;  %v1409_v46 = vsel %vm1393_vm3, %v5796_v47, %v5797_v50 }
 0x15c   : > { %6099 = vrot.lane.b32.xlu1 %v8826_v17, %s6904_s15  ;;  %v5805_v52 = vpop.permute.xlu0 %5804  ;;  %v5053_v18 = vpack.c.bf16 %v1409_v46, %v1407_v0  ;;  %v5055_v1 = vpack.c.bf16 %v1408_v29, %v1406_v58  ;;  %v7907_v58 = vld [vmem:[%s7115_s21 + $0x8] sm:$0xff] }
 0x15d   : > { %v5807_v3 = vunpack.i.h.bf16 %v5805_v52  ;;  %v5806_v56 = vunpack.i.l.bf16 %v5805_v52  ;;  %v1413_v25 = vsel %vm1393_vm3, %v5811_v24, %v5812_v30  ;;  %v7911_v29 = vpack.i.bf16 %v8826_v17, %v7907_v58 }
 0x15e   : > { %v5820_v54 = vpop.permute.xlu1 %5819  ;;  %6094 = vrot.lane.b32.xlu0 %v7854_v60, %s6904_s15  ;;  %5054 = vmatprep.subr.bf16.mxu0 %v5053_v18 }
 0x15f   : > { %5056 = vmatpush1.bf16.msra.mxu0 %v5055_v1  ;;  %v1411_v55 = vsel %vm1393_vm3, %v5806_v56, %v5807_v3  ;;  %v5822_v21 = vunpack.i.h.bf16 %v5820_v54  ;;  %v5821_v33 = vunpack.i.l.bf16 %v5820_v54 }
 0x160   : > { %6109 = vrot.lane.b32.xlu1 %v7845_v48, %s6905_s23  ;;  %v5815_v42 = vpop.permute.xlu0 %5814  ;;  %v5057_v44 = vpack.c.bf16 %v1413_v25, %v1411_v55 }
 0x161   : > { %v5817_v14 = vunpack.i.h.bf16 %v5815_v42  ;;  %v5816_v40 = vunpack.i.l.bf16 %v5815_v42  ;;  %v1415_v52 = vsel %vm1393_vm3, %v5821_v33, %v5822_v21  ;;  %v7930_v21 = vld [vmem:[%s7115_s21] sm:$0xff] }
 0x162   : > { %v5830_v16 = vpop.permute.xlu1 %5829  ;;  %6104 = vrot.lane.b32.xlu0 %v7877_v41, %s6905_s23  ;;  %5058 = vmatprep.subr.bf16.mxu0 %v5057_v44  ;;  %v1562_v44 = vld [vmem:[#allocation7 + $0x98] sm:$0xff] }
 0x163   : > { %v1412_v63 = vsel %vm1393_vm3, %v5817_v14, %v5811_v24  ;;  %v1410_v38 = vsel %vm1393_vm3, %v5816_v40, %v5806_v56  ;;  %v5832_v62 = vunpack.i.h.bf16 %v5830_v16  ;;  %v5831_v45 = vunpack.i.l.bf16 %v5830_v16  ;;  %v6697_v24 = vld [vmem:[%s7115_s21 + $0x110] sm:$0xff]  ;;  %4913 = vmatprep.mubr.msk.f32.mxu1 %vm824_vm0, %v1562_v44 }
 0x164   : > { %6119 = vrot.lane.b32.xlu1 %v7864_v57, %s6904_s15  ;;  %v5825_v51 = vpop.permute.xlu0 %5824  ;;  %v5059_v22 = vpack.c.bf16 %v1412_v63, %v1410_v38  ;;  %v7904_v32 = vpack.i.bf16 %v6696_v7, %v6697_v24  ;;  %v7924_v14 = vpack.i.bf16 %v8826_v17, %v7860_v12  ;;  %v1561_v40 = vld [vmem:[#allocation7 + $0x90] sm:$0xff] }
 0x165   : > { %v5827_v50 = vunpack.i.h.bf16 %v5825_v51  ;;  %v5826_v19 = vunpack.i.l.bf16 %v5825_v51  ;;  %v1414_v0 = vsel %vm1393_vm3, %v5831_v45, %v5821_v33  ;;  %v6700_v33 = vld [vmem:[%s7115_s21 + $0x10] sm:$0xff]  ;;  %1640 = vmatmul.mubr.f32.gmra.mrb[2].mxu1 %v1561_v40  ;;  %v1555_v51 = vld [vmem:[#allocation7 + $0x28] sm:$0xff] }
 0x166   : > { %v7882_v20 = vpop.permute.xlu1 %5839  ;;  %6114 = vrot.lane.b32.xlu0 %v7887_v28, %s6905_s23  ;;  %5060 = vmatpush1.bf16.msra.mxu0 %v5059_v22  ;;  %v7934_v7 = vpack.i.bf16 %v6700_v33, %v7930_v21 }
 0x167   : > { %v5842_v47 = vunpack.i.h.bf16 %v7882_v20  ;;  %v5841_v30 = vunpack.i.l.bf16 %v7882_v20  ;;  %v1416_v46 = vsel %vm1393_vm3, %v5832_v62, %v5826_v19  ;;  %v1417_v18 = vsel %vm1393_vm3, %v5826_v19, %v5827_v50  ;;  %4914 = vmatprep.mubr.msk.f32.mxu1 %vm824_vm0, %v1555_v51 }
 0x168   : > { %6129 = vrot.lane.b32.xlu1 %v8826_v17, %s6904_s15  ;;  %v5835_v1 = vpop.permute.xlu0 %5834  ;;  %v5061_v3 = vpack.c.bf16 %v1417_v18, %v1415_v52  ;;  %v5063_v56 = vpack.c.bf16 %v1416_v46, %v1414_v0  ;;  %v7944_v19 = vpack.i.bf16 %v6697_v24, %v7857_v4 }
 0x169   : > { %v5837_v16 = vunpack.i.h.bf16 %v5835_v1  ;;  %v5836_v25 = vunpack.i.l.bf16 %v5835_v1  ;;  %v1421_v42 = vsel %vm1393_vm3, %v5841_v30, %v5842_v47  ;;  %v6701_v47 = vld [vmem:[%s7115_s21 + $0x18] sm:$0xff] }
 0x16a   : > { %v7899_v54 = vpop.permute.xlu1 %5849  ;;  %6124 = vrot.lane.b32.xlu0 %v7904_v32, %s6904_s15  ;;  %5062 = vmatprep.subr.bf16.mxu0 %v5061_v3  ;;  %v6168_v0 = vpack.i.bf16 %v6701_v47, %v6700_v33 }
 0x16b   : > { %5064 = vmatpush1.bf16.msra.mxu0 %v5063_v56  ;;  %v1419_v20 = vsel %vm1393_vm3, %v5836_v25, %v5837_v16  ;;  %v5852_v22 = vunpack.i.h.bf16 %v7899_v54  ;;  %v5851_v50 = vunpack.i.l.bf16 %v7899_v54 }
 0x16c   : > { %6139 = vrot.lane.b32.xlu1 %v7891_v39, %s6905_s23  ;;  %v5845_v63 = vpop.permute.xlu0 %5844  ;;  %v5065_v38 = vpack.c.bf16 %v1421_v42, %v1419_v20 }
 0x16d   : > { %v5847_v12 = vunpack.i.h.bf16 %v5845_v63  ;;  %v5846_v62 = vunpack.i.l.bf16 %v5845_v63  ;;  %v1423_v20 = vsel %vm1393_vm3, %v5851_v50, %v5852_v22  ;;  %v6163_v22 = vpack.i.bf16 %v7907_v58, %v7930_v21 }
 0x16e   : > { %v5860_v55 = vpop.permute.xlu1 %5859  ;;  %6134 = vrot.lane.b32.xlu0 %v7924_v14, %s6905_s23  ;;  %5066 = vmatprep.subr.bf16.mxu0 %v5065_v38 }
 0x16f   : > { %v1420_v46 = vsel %vm1393_vm3, %v5847_v12, %v5841_v30  ;;  %v1418_v52 = vsel %vm1393_vm3, %v5846_v62, %v5836_v25  ;;  %v5862_v18 = vunpack.i.h.bf16 %v5860_v55  ;;  %v5861_v1 = vunpack.i.l.bf16 %v5860_v55  ;;  %v7960_v25 = vld [vmem:[%s7115_s21 + $0x28] sm:$0xff] }
 0x170   : > { %6149 = vrot.lane.b32.xlu1 %v7911_v29, %s6906_s27  ;;  %v5855_v54 = vpop.permute.xlu0 %5854  ;;  %v5067_v3 = vpack.c.bf16 %v1420_v46, %v1418_v52  ;;  %v7957_v30 = vpack.i.bf16 %v8826_v17, %v6701_v47  ;;  %v7964_v55 = vpack.i.bf16 %v8826_v17, %v7960_v25  ;;  %v6704_v46 = vld [vmem:[%s7115_s21 + $0x30] sm:$0xff] }
 0x171   : > { %v5857_v56 = vunpack.i.h.bf16 %v5855_v54  ;;  %v5856_v16 = vunpack.i.l.bf16 %v5855_v54  ;;  %v1422_v44 = vsel %vm1393_vm3, %v5861_v1, %v5851_v50 }
 0x172   : > { %v7937_v45 = vpop.permute.xlu1 %5869  ;;  %6144 = vrot.lane.b32.xlu0 %v7944_v19, %s6905_s23  ;;  %5068 = vmatpush1.bf16.msra.mxu0 %v5067_v3 }
 0x173   : > { %v5872_v4 = vunpack.i.h.bf16 %v7937_v45  ;;  %v5871_v24 = vunpack.i.l.bf16 %v7937_v45  ;;  %v1424_v40 = vsel %vm1393_vm3, %v5862_v18, %v5856_v16  ;;  %v1425_v33 = vsel %vm1393_vm3, %v5856_v16, %v5857_v56  ;;  %v6705_v16 = vld [vmem:[%s7115_s21 + $0x38] sm:$0xff] }
 0x174   : > { %6159 = vrot.lane.b32.xlu1 %v7934_v7, %s6906_s27  ;;  %v5865_v63 = vpop.permute.xlu0 %5864  ;;  %v5069_v38 = vpack.c.bf16 %v1425_v33, %v1423_v20  ;;  %v5071_v12 = vpack.c.bf16 %v1424_v40, %v1422_v44 }
 0x175   : > { %v5867_v62 = vunpack.i.h.bf16 %v5865_v63  ;;  %v5866_v45 = vunpack.i.l.bf16 %v5865_v63  ;;  %v1429_v47 = vsel %vm1393_vm3, %v5871_v24, %v5872_v4  ;;  %v6198_v4 = vpack.i.bf16 %v6705_v16, %v6704_v46 }
 0x176   : > { %v5880_v42 = vpop.permute.xlu1 %5879  ;;  %6154 = vrot.lane.b32.xlu0 %v7957_v30, %s6906_s27  ;;  %5070 = vmatprep.subr.bf16.mxu0 %v5069_v38 }
 0x177   : > { %5072 = vmatpush1.bf16.msra.mxu0 %v5071_v12  ;;  %v1427_v50 = vsel %vm1393_vm3, %v5866_v45, %v5867_v62  ;;  %v5882_v58 = vunpack.i.h.bf16 %v5880_v42  ;;  %v5881_v21 = vunpack.i.l.bf16 %v5880_v42 }
 0x178   : > { %6169 = vrot.lane.b32.xlu1 %v6168_v0, %s6907_s10  ;;  %v7980_v0 = vld [vmem:[%s7115_s21 + $0x20] sm:$0xff]  ;;  %v5875_v18 = vpop.permute.xlu0 %5874  ;;  %v5073_v1 = vpack.c.bf16 %v1429_v47, %v1427_v50 }
 0x179   : > { %v7984_v52 = vpack.i.bf16 %v6704_v46, %v7980_v0  ;;  %v5877_v54 = vunpack.i.h.bf16 %v5875_v18  ;;  %v5876_v3 = vunpack.i.l.bf16 %v5875_v18  ;;  %v1227_v50 = vld [vmem:[#allocation7 + $0xc0] sm:$0xff] }
 0x17a   : > { %v5890_v51 = vpop.permute.xlu1 %5889  ;;  %6164 = vrot.lane.b32.xlu0 %v6163_v22, %s6907_s10  ;;  %5074 = vmatprep.subr.bf16.mxu0 %v5073_v1  ;;  %v1755_v1 = vsel %vm824_vm0, %v5881_v21, %v5882_v58  ;;  %v6193_v58 = vpack.i.bf16 %v7960_v25, %v7980_v0 }
 0x17b   : > { %8840 = vst [vmem:[#allocation24_spill] sm:$0xff] %v7984_v52  ;;  %v1428_v44 = vsel %vm1393_vm3, %v5877_v54, %v5871_v24  ;;  %v1426_v40 = vsel %vm1393_vm3, %v5876_v3, %v5866_v45  ;;  %v5892_v20 = vunpack.i.h.bf16 %v5890_v51  ;;  %v5891_v33 = vunpack.i.l.bf16 %v5890_v51  ;;  %v8004_v45 = vld [vmem:[%s7115_s21 + $0x48] sm:$0xff] }
 0x17c   : > { %6179 = vrot.lane.b32.xlu1 %v7964_v55, %s6906_s27  ;;  %v5885_v63 = vpop.permute.xlu0 %5884  ;;  %v5075_v38 = vpack.c.bf16 %v1428_v44, %v1426_v40  ;;  %v8001_v24 = vpack.i.bf16 %v8826_v17, %v6705_v16  ;;  %v8008_v51 = vpack.i.bf16 %v8826_v17, %v8004_v45 }
 0x17d   : > { %v5887_v12 = vunpack.i.h.bf16 %v5885_v63  ;;  %v5886_v62 = vunpack.i.l.bf16 %v5885_v63  ;;  %v1754_v46 = vsel %vm824_vm0, %v5891_v33, %v5881_v21  ;;  %v1230_v33 = vld [vmem:[#allocation7 + $0xd8] sm:$0xff]  ;;  %v1229_v21 = vld [vmem:[#allocation7 + $0xd0] sm:$0xff] }
 0x17e   : > { %v7986_v56 = vpop.permute.xlu1 %5899  ;;  %6174 = vrot.lane.b32.xlu0 %v8826_v17, %s6907_s10  ;;  %5076 = vmatpush1.bf16.msra.mxu0 %v5075_v38 }
 0x17f   : > { %v5902_v42 = vunpack.i.h.bf16 %v7986_v56  ;;  %v5901_v47 = vunpack.i.l.bf16 %v7986_v56  ;;  %v1756_v18 = vsel %vm824_vm0, %v5892_v20, %v5886_v62  ;;  %v1757_v54 = vsel %vm824_vm0, %v5886_v62, %v5887_v12  ;;  %v6707_v20 = vld [vmem:[%s7115_s21 + $0x50] sm:$0xff]  ;;  %v6708_v12 = vld [vmem:[%s7115_s21 + $0x40] sm:$0xff] }
 0x180   : > { %6189 = vrot.lane.b32.xlu1 %v7984_v52, %s6906_s27  ;;  %v5895_v3 = vpop.permute.xlu0 %5894  ;;  %v5113_v56 = vpack.c.bf16 %v1757_v54, %v1755_v1  ;;  %v5115_v16 = vpack.c.bf16 %v1756_v18, %v1754_v46  ;;  %v8025_v62 = vpack.i.bf16 %v6707_v20, %v6708_v12  ;;  %v2189_v46 = vld [vmem:[#allocation7 + $0xa8] sm:$0xff] }
 0x181   : > { %v5897_v44 = vunpack.i.h.bf16 %v5895_v3  ;;  %v5896_v40 = vunpack.i.l.bf16 %v5895_v3  ;;  %v2304_v38 = vsel %vm2300_vm4, %v5901_v47, %v5902_v42  ;;  %1537 = vmatmul.mubr.f32.vlgmr.msra.gmra.mrb[0].mxu0 %v1227_v50  ;;  %v6709_v3 = vld [vmem:[%s7115_s21 + $0x58] sm:$0xff] }
 0x182   : > { %v7996_v22 = vpop.permute.xlu1 %5909  ;;  %6184 = vrot.lane.b32.xlu0 %v8001_v24, %s6906_s27  ;;  %5114 = vmatprep.subr.bf16.mxu1 %v5113_v56  ;;  %v6228_v56 = vpack.i.bf16 %v6709_v3, %v6707_v20 }
 0x183   : > { %5116 = vmatpush1.bf16.msra.mxu1 %v5115_v16  ;;  %4911 = vmatprep.mubr.msk.f32.mxu0 %vm824_vm0, %v1230_v33  ;;  %v5912_v0 = vunpack.i.h.bf16 %v7996_v22  ;;  %v5911_v54 = vunpack.i.l.bf16 %v7996_v22 }
 0x184   : > { %6199 = vrot.lane.b32.xlu1 %v6198_v4, %s6907_s10  ;;  %v2302_v4 = vsel %vm2300_vm4, %v5896_v40, %v5897_v44  ;;  %v5905_v42 = vpop.permute.xlu0 %5904 }
 0x185   : > { %v5185_v50 = vpack.c.bf16 %v2304_v38, %v2302_v4  ;;  %v5907_v18 = vunpack.i.h.bf16 %v5905_v42  ;;  %v5906_v1 = vunpack.i.l.bf16 %v5905_v42  ;;  %1543 = vmatmul.mubr.f32.gmra.mrb[2].mxu0 %v1229_v21  ;;  %v1759_v20 = vsel %vm824_vm0, %v5911_v54, %v5912_v0 }
 0x186   : > { %v5920_v63 = vpop.permute.xlu1 %5919  ;;  %6194 = vrot.lane.b32.xlu0 %v6193_v58, %s6907_s10  ;;  %4918 = vmatprep.mubr.msk.f32.mxu0 %vm824_vm0, %v2189_v46 }
 0x187   : > { %5186 = vmatprep.subr.bf16.mxu0 %v5185_v50  ;;  %v2303_v16 = vsel %vm2300_vm4, %v5907_v18, %v5901_v47  ;;  %v2301_v44 = vsel %vm2300_vm4, %v5906_v1, %v5896_v40  ;;  %v5922_v38 = vunpack.i.h.bf16 %v5920_v63  ;;  %v5921_v33 = vunpack.i.l.bf16 %v5920_v63 }
 0x188   : > { %6209 = vrot.lane.b32.xlu1 %v8008_v51, %s6906_s27  ;;  %v5915_v21 = vpop.permute.xlu0 %5914  ;;  %v5187_v4 = vpack.c.bf16 %v2303_v16, %v2301_v44  ;;  %v8040_v47 = vpack.i.bf16 %v8826_v17, %v6709_v3  ;;  %v6223_v3 = vpack.i.bf16 %v8004_v45, %v6708_v12 }
 0x189   : > { %v5917_v42 = vunpack.i.h.bf16 %v5915_v21  ;;  %v5916_v22 = vunpack.i.l.bf16 %v5915_v21  ;;  %v1758_v40 = vsel %vm824_vm0, %v5921_v33, %v5911_v54 }
 0x18a   : > { %v5930_v25 = vpop.permute.xlu1 %5929  ;;  %6204 = vrot.lane.b32.xlu0 %v8826_v17, %s6907_s10  ;;  %5188 = vmatpush1.bf16.msra.mxu0 %v5187_v4 }
 0x18b   : > { %v5932_v52 = vunpack.i.h.bf16 %v5930_v25  ;;  %v5931_v58 = vunpack.i.l.bf16 %v5930_v25  ;;  %v1760_v63 = vsel %vm824_vm0, %v5922_v38, %v5916_v22  ;;  %v1761_v46 = vsel %vm824_vm0, %v5916_v22, %v5917_v42 }
 0x18c   : > { %6219 = vrot.lane.b32.xlu1 %v8025_v62, %s6906_s27  ;;  %v5925_v18 = vpop.permute.xlu0 %5924  ;;  %v5117_v1 = vpack.c.bf16 %v1761_v46, %v1759_v20  ;;  %v5119_v25 = vpack.c.bf16 %v1760_v63, %v1758_v40  ;;  %v6710_v40 = vld [vmem:[%s7115_s21 + $0x78] sm:$0xff] }
 0x18d   : > { %v5927_v16 = vunpack.i.h.bf16 %v5925_v18  ;;  %v5926_v44 = vunpack.i.l.bf16 %v5925_v18  ;;  %v2308_v4 = vsel %vm2300_vm4, %v5931_v58, %v5932_v52  ;;  %v6258_v63 = vpack.i.bf16 %v6710_v40, %v7675_v2 }
 0x18e   : > { %v5940_v50 = vpop.permute.xlu1 %5939  ;;  %6214 = vrot.lane.b32.xlu0 %v8040_v47, %s6906_s27  ;;  %5118 = vmatprep.subr.bf16.mxu1 %v5117_v1  ;;  %v8064_v2 = vpack.i.bf16 %v8826_v17, %v6710_v40  ;;  %v6253_v40 = vpack.i.bf16 %v7658_v61, %v7672_v36 }
 0x18f   : > { %5120 = vmatpush1.bf16.msra.mxu1 %v5119_v25  ;;  %v2306_v0 = vsel %vm2300_vm4, %v5926_v44, %v5927_v16  ;;  %v5942_v22 = vunpack.i.h.bf16 %v5940_v50  ;;  %v5941_v52 = vunpack.i.l.bf16 %v5940_v50 }
 0x190   : > { %6229 = vrot.lane.b32.xlu1 %v6228_v56, %s6907_s10  ;;  %v5935_v54 = vpop.permute.xlu0 %5934  ;;  %v5189_v56 = vpack.c.bf16 %v2308_v4, %v2306_v0 }
 0x191   : > { %v5937_v38 = vunpack.i.h.bf16 %v5935_v54  ;;  %v5936_v33 = vunpack.i.l.bf16 %v5935_v54 }
 0x192   : > { %v5950_v21 = vpop.permute.xlu1 %5949  ;;  %6224 = vrot.lane.b32.xlu0 %v6223_v3, %s6907_s10  ;;  %5190 = vmatprep.subr.bf16.mxu0 %v5189_v56 }
 0x193   : > { %v2307_v45 = vsel %vm2300_vm4, %v5937_v38, %v5931_v58  ;;  %v2305_v12 = vsel %vm2300_vm4, %v5936_v33, %v5926_v44  ;;  %v5952_v20 = vunpack.i.h.bf16 %v5950_v21  ;;  %v5951_v46 = vunpack.i.l.bf16 %v5950_v21 }
 0x194   : > { %6239 = vrot.lane.b32.xlu1 %v7662_v11, %s6906_s27  ;;  %v5945_v11 = vpop.permute.xlu0 %5944  ;;  %v5191_v18 = vpack.c.bf16 %v2307_v45, %v2305_v12 }
 0x195   : > { %v5947_v1 = vunpack.i.h.bf16 %v5945_v11  ;;  %v5946_v25 = vunpack.i.l.bf16 %v5945_v11  ;;  %v1762_v58 = vsel %vm824_vm0, %v5951_v46, %v5941_v52 }
 0x196   : > { %v5960_v42 = vpop.permute.xlu1 %5959  ;;  %6234 = vrot.lane.b32.xlu0 %v8826_v17, %s6907_s10  ;;  %5192 = vmatpush1.bf16.msra.mxu0 %v5191_v18 }
 0x197   : > { %v5962_v50 = vunpack.i.h.bf16 %v5960_v42  ;;  %v5961_v16 = vunpack.i.l.bf16 %v5960_v42  ;;  %v1764_v44 = vsel %vm824_vm0, %v5952_v20, %v5946_v25  ;;  %v1765_v21 = vsel %vm824_vm0, %v5946_v25, %v5947_v1 }
 0x198   : > { %6249 = vrot.lane.b32.xlu1 %v7679_v9, %s6906_s27  ;;  %v1763_v9 = vsel %vm824_vm0, %v5941_v52, %v5942_v22  ;;  %v5955_v3 = vpop.permute.xlu0 %5954  ;;  %v5123_v54 = vpack.c.bf16 %v1764_v44, %v1762_v58 }
 0x199   : > { %v5121_v0 = vpack.c.bf16 %v1765_v21, %v1763_v9  ;;  %v5957_v56 = vunpack.i.h.bf16 %v5955_v3  ;;  %v5956_v38 = vunpack.i.l.bf16 %v5955_v3  ;;  %v2312_v42 = vsel %vm2300_vm4, %v5961_v16, %v5962_v50 }
 0x19a   : > { %v5970_v4 = vpop.permute.xlu1 %5969  ;;  %6244 = vrot.lane.b32.xlu0 %v8064_v2, %s6906_s27 }
 0x19b   : > { %5122 = vmatprep.subr.bf16.mxu1 %v5121_v0  ;;  %v2310_v22 = vsel %vm2300_vm4, %v5956_v38, %v5957_v56  ;;  %v5972_v46 = vunpack.i.h.bf16 %v5970_v4  ;;  %v5971_v11 = vunpack.i.l.bf16 %v5970_v4 }
 0x19c   : > { %6259 = vrot.lane.b32.xlu1 %v6258_v63, %s6907_s10  ;;  %5124 = vmatpush1.bf16.msra.mxu1 %v5123_v54  ;;  %v5965_v52 = vpop.permute.xlu0 %5964  ;;  %v5193_v63 = vpack.c.bf16 %v2312_v42, %v2310_v22  ;;  %v6283_v22 = vpack.i.bf16 %v7718_v49, %v7734_v53 }
 0x19d   : > { %v5967_v45 = vunpack.i.h.bf16 %v5965_v52  ;;  %v5966_v12 = vunpack.i.l.bf16 %v5965_v52  ;;  %v1767_v3 = vsel %vm824_vm0, %v5971_v11, %v5972_v46 }
 0x19e   : > { %v5980_v33 = vpop.permute.xlu1 %5979  ;;  %6254 = vrot.lane.b32.xlu0 %v6253_v40, %s6907_s10  ;;  %5194 = vmatprep.subr.bf16.mxu0 %v5193_v63 }
 0x19f   : > { %v2311_v18 = vsel %vm2300_vm4, %v5967_v45, %v5961_v16  ;;  %v2309_v61 = vsel %vm2300_vm4, %v5966_v12, %v5956_v38  ;;  %v5982_v36 = vunpack.i.h.bf16 %v5980_v33  ;;  %v5981_v1 = vunpack.i.l.bf16 %v5980_v33 }
 0x1a0   : > { %6269 = vrot.lane.b32.xlu1 %v7722_v23, %s6906_s27  ;;  %v5975_v23 = vpop.permute.xlu0 %5974  ;;  %v5195_v25 = vpack.c.bf16 %v2311_v18, %v2309_v61 }
 0x1a1   : > { %v5977_v50 = vunpack.i.h.bf16 %v5975_v23  ;;  %v5976_v58 = vunpack.i.l.bf16 %v5975_v23  ;;  %v1766_v16 = vsel %vm824_vm0, %v5981_v1, %v5971_v11 }
 0x1a2   : > { %v5990_v20 = vpop.permute.xlu1 %5989  ;;  %6264 = vrot.lane.b32.xlu0 %v8826_v17, %s6907_s10  ;;  %5196 = vmatpush1.bf16.msra.mxu0 %v5195_v25 }
 0x1a3   : > { %v5992_v44 = vunpack.i.h.bf16 %v5990_v20  ;;  %v5991_v9 = vunpack.i.l.bf16 %v5990_v20  ;;  %v1768_v4 = vsel %vm824_vm0, %v5982_v36, %v5976_v58  ;;  %v1769_v0 = vsel %vm824_vm0, %v5976_v58, %v5977_v50 }
 0x1a4   : > { %6279 = vrot.lane.b32.xlu1 %v7737_v5, %s6906_s27  ;;  %v5985_v5 = vpop.permute.xlu0 %5984  ;;  %v5125_v54 = vpack.c.bf16 %v1769_v0, %v1767_v3  ;;  %v5127_v56 = vpack.c.bf16 %v1768_v4, %v1766_v16 }
 0x1a5   : > { %v5987_v38 = vunpack.i.h.bf16 %v5985_v5  ;;  %v5986_v33 = vunpack.i.l.bf16 %v5985_v5  ;;  %v2316_v40 = vsel %vm2300_vm4, %v5991_v9, %v5992_v44 }
 0x1a6   : > { %v6000_v21 = vpop.permute.xlu1 %5999  ;;  %6274 = vrot.lane.b32.xlu0 %v7683_v43, %s6906_s27  ;;  %5126 = vmatprep.subr.bf16.mxu1 %v5125_v54 }
 0x1a7   : > { %5128 = vmatpush1.bf16.msra.mxu1 %v5127_v56  ;;  %v2314_v52 = vsel %vm2300_vm4, %v5986_v33, %v5987_v38  ;;  %v6002_v46 = vunpack.i.h.bf16 %v6000_v21  ;;  %v6001_v11 = vunpack.i.l.bf16 %v6000_v21 }
 0x1a8   : > { %6289 = vrot.lane.b32.xlu1 %v7696_v10, %s6907_s10  ;;  %v5995_v10 = vpop.permute.xlu0 %5994  ;;  %v5197_v63 = vpack.c.bf16 %v2316_v40, %v2314_v52 }
 0x1a9   : > { %v5997_v45 = vunpack.i.h.bf16 %v5995_v10  ;;  %v5996_v12 = vunpack.i.l.bf16 %v5995_v10 }
 0x1aa   : > { %v6010_v42 = vpop.permute.xlu1 %6009  ;;  %6284 = vrot.lane.b32.xlu0 %v6283_v22, %s6907_s10  ;;  %5198 = vmatprep.subr.bf16.mxu0 %v5197_v63 }
 0x1ab   : > { %v2315_v43 = vsel %vm2300_vm4, %v5997_v45, %v5991_v9  ;;  %v2313_v49 = vsel %vm2300_vm4, %v5996_v12, %v5986_v33  ;;  %v6012_v53 = vunpack.i.h.bf16 %v6010_v42  ;;  %v6011_v18 = vunpack.i.l.bf16 %v6010_v42 }
 0x1ac   : > { %6299 = vrot.lane.b32.xlu1 %v7777_v15, %s6906_s27  ;;  %v6005_v15 = vpop.permute.xlu0 %6004  ;;  %v5199_v61 = vpack.c.bf16 %v2315_v43, %v2313_v49  ;;  %v1771_v9 = vsel %vm824_vm0, %v6001_v11, %v6002_v46 }
 0x1ad   : > { %v6007_v36 = vunpack.i.h.bf16 %v6005_v15  ;;  %v6006_v1 = vunpack.i.l.bf16 %v6005_v15  ;;  %v1770_v58 = vsel %vm824_vm0, %v6011_v18, %v6001_v11 }
 0x1ae   : > { %v6020_v20 = vpop.permute.xlu1 %6019  ;;  %6294 = vrot.lane.b32.xlu0 %v8826_v17, %s6907_s10  ;;  %5200 = vmatpush1.bf16.msra.mxu0 %v5199_v61 }
 0x1af   : > { %v6022_v23 = vunpack.i.h.bf16 %v6020_v20  ;;  %v6021_v25 = vunpack.i.l.bf16 %v6020_v20  ;;  %v1772_v44 = vsel %vm824_vm0, %v6012_v53, %v6006_v1  ;;  %v1773_v21 = vsel %vm824_vm0, %v6006_v1, %v6007_v36 }
 0x1b0   : > { %6309 = vrot.lane.b32.xlu1 %v7789_v13, %s6906_s27  ;;  %v6015_v13 = vpop.permute.xlu0 %6014  ;;  %v5129_v16 = vpack.c.bf16 %v1773_v21, %v1771_v9  ;;  %v5131_v4 = vpack.c.bf16 %v1772_v44, %v1770_v58 }
 0x1b1   : > { %v6017_v3 = vunpack.i.h.bf16 %v6015_v13  ;;  %v6016_v0 = vunpack.i.l.bf16 %v6015_v13  ;;  %v2320_v54 = vsel %vm2300_vm4, %v6021_v25, %v6022_v23 }
 0x1b2   : > { %v6030_v50 = vpop.permute.xlu1 %6029  ;;  %6304 = vrot.lane.b32.xlu0 %v7741_v6, %s6906_s27  ;;  %5130 = vmatprep.subr.bf16.mxu1 %v5129_v16 }
 0x1b3   : > { %5132 = vmatpush1.bf16.msra.mxu1 %v5131_v4  ;;  %v2318_v56 = vsel %vm2300_vm4, %v6016_v0, %v6017_v3  ;;  %v6032_v22 = vunpack.i.h.bf16 %v6030_v50  ;;  %v6031_v52 = vunpack.i.l.bf16 %v6030_v50 }
 0x1b4   : > { %6319 = vrot.lane.b32.xlu1 %v7754_v26, %s6907_s10  ;;  %v6025_v38 = vpop.permute.xlu0 %6024  ;;  %v5201_v26 = vpack.c.bf16 %v2320_v54, %v2318_v56 }
 0x1b5   : > { %v6027_v33 = vunpack.i.h.bf16 %v6025_v38  ;;  %v6026_v42 = vunpack.i.l.bf16 %v6025_v38  ;;  %v1775_v18 = vsel %vm824_vm0, %v6031_v52, %v6032_v22 }
 0x1b6   : > { %v6040_v5 = vpop.permute.xlu1 %6039  ;;  %6314 = vrot.lane.b32.xlu0 %v7706_v8, %s6907_s10  ;;  %5202 = vmatprep.subr.bf16.mxu0 %v5201_v26 }
 0x1b7   : > { %v2319_v6 = vsel %vm2300_vm4, %v6027_v33, %v6021_v25  ;;  %v2317_v10 = vsel %vm2300_vm4, %v6026_v42, %v6016_v0  ;;  %v6042_v63 = vunpack.i.h.bf16 %v6040_v5  ;;  %v6041_v45 = vunpack.i.l.bf16 %v6040_v5 }
 0x1b8   : > { %6329 = vrot.lane.b32.xlu1 %v7831_v34, %s6906_s27  ;;  %v6035_v34 = vpop.permute.xlu0 %6034  ;;  %v5203_v12 = vpack.c.bf16 %v2319_v6, %v2317_v10 }
 0x1b9   : > { %v6037_v20 = vunpack.i.h.bf16 %v6035_v34  ;;  %v6036_v46 = vunpack.i.l.bf16 %v6035_v34  ;;  %v1774_v8 = vsel %vm824_vm0, %v6041_v45, %v6031_v52 }
 0x1ba   : > { %v6050_v40 = vpop.permute.xlu1 %6049  ;;  %6324 = vrot.lane.b32.xlu0 %v8826_v17, %s6907_s10  ;;  %5204 = vmatpush1.bf16.msra.mxu0 %v5203_v12 }
 0x1bb   : > { %v6052_v11 = vunpack.i.h.bf16 %v6050_v40  ;;  %v6051_v43 = vunpack.i.l.bf16 %v6050_v40  ;;  %v1776_v53 = vsel %vm824_vm0, %v6042_v63, %v6036_v46  ;;  %v1777_v15 = vsel %vm824_vm0, %v6036_v46, %v6037_v20 }
 0x1bc   : > { %6339 = vrot.lane.b32.xlu1 %v7841_v27, %s6906_s27  ;;  %v6045_v27 = vpop.permute.xlu0 %6044  ;;  %v5133_v61 = vpack.c.bf16 %v1777_v15, %v1775_v18  ;;  %v5135_v36 = vpack.c.bf16 %v1776_v53, %v1774_v8 }
 0x1bd   : > { %v6047_v1 = vunpack.i.h.bf16 %v6045_v27  ;;  %v6046_v23 = vunpack.i.l.bf16 %v6045_v27  ;;  %v2324_v50 = vsel %vm2300_vm4, %v6051_v43, %v6052_v11 }
 0x1be   : > { %v6060_v49 = vpop.permute.xlu1 %6059  ;;  %6334 = vrot.lane.b32.xlu0 %v7793_v31, %s6906_s27  ;;  %5134 = vmatprep.subr.bf16.mxu1 %v5133_v61 }
 0x1bf   : > { %5136 = vmatpush1.bf16.msra.mxu1 %v5135_v36  ;;  %v2322_v58 = vsel %vm2300_vm4, %v6046_v23, %v6047_v1  ;;  %v6062_v16 = vunpack.i.h.bf16 %v6060_v49  ;;  %v6061_v4 = vunpack.i.l.bf16 %v6060_v49 }
 0x1c0   : > { %6349 = vrot.lane.b32.xlu1 %v7807_v59, %s6907_s10  ;;  %v6055_v44 = vpop.permute.xlu0 %6054  ;;  %v5205_v59 = vpack.c.bf16 %v2324_v50, %v2322_v58 }
 0x1c1   : > { %v6057_v9 = vunpack.i.h.bf16 %v6055_v44  ;;  %v6056_v21 = vunpack.i.l.bf16 %v6055_v44  ;;  %v1779_v22 = vsel %vm824_vm0, %v6061_v4, %v6062_v16 }
 0x1c2   : > { %v6070_v25 = vpop.permute.xlu1 %6069  ;;  %6344 = vrot.lane.b32.xlu0 %v7764_v35, %s6907_s10  ;;  %5206 = vmatprep.subr.bf16.mxu0 %v5205_v59 }
 0x1c3   : > { %v2323_v31 = vsel %vm2300_vm4, %v6057_v9, %v6051_v43  ;;  %v2321_v3 = vsel %vm2300_vm4, %v6056_v21, %v6046_v23  ;;  %v6072_v0 = vunpack.i.h.bf16 %v6070_v25  ;;  %v6071_v5 = vunpack.i.l.bf16 %v6070_v25 }
 0x1c4   : > { %6359 = vrot.lane.b32.xlu1 %v7877_v41, %s6906_s27  ;;  %v6065_v41 = vpop.permute.xlu0 %6064  ;;  %v5207_v54 = vpack.c.bf16 %v2323_v31, %v2321_v3 }
 0x1c5   : > { %v6067_v56 = vunpack.i.h.bf16 %v6065_v41  ;;  %v6066_v38 = vunpack.i.l.bf16 %v6065_v41  ;;  %v1778_v35 = vsel %vm824_vm0, %v6071_v5, %v6061_v4 }
 0x1c6   : > { %v6080_v13 = vpop.permute.xlu1 %6079  ;;  %6354 = vrot.lane.b32.xlu0 %v8826_v17, %s6907_s10  ;;  %5208 = vmatpush1.bf16.msra.mxu0 %v5207_v54 }
 0x1c7   : > { %v6082_v26 = vunpack.i.h.bf16 %v6080_v13  ;;  %v6081_v33 = vunpack.i.l.bf16 %v6080_v13  ;;  %v1780_v40 = vsel %vm824_vm0, %v6072_v0, %v6066_v38  ;;  %v1781_v52 = vsel %vm824_vm0, %v6066_v38, %v6067_v56 }
 0x1c8   : > { %6369 = vrot.lane.b32.xlu1 %v7887_v28, %s6906_s27  ;;  %v6075_v28 = vpop.permute.xlu0 %6074  ;;  %v5137_v6 = vpack.c.bf16 %v1781_v52, %v1779_v22  ;;  %v5139_v10 = vpack.c.bf16 %v1780_v40, %v1778_v35 }
 0x1c9   : > { %v6077_v63 = vunpack.i.h.bf16 %v6075_v28  ;;  %v6076_v45 = vunpack.i.l.bf16 %v6075_v28  ;;  %v2328_v12 = vsel %vm2300_vm4, %v6081_v33, %v6082_v26 }
 0x1ca   : > { %v6090_v42 = vpop.permute.xlu1 %6089  ;;  %6364 = vrot.lane.b32.xlu0 %v7845_v48, %s6906_s27  ;;  %5138 = vmatprep.subr.bf16.mxu1 %v5137_v6 }
 0x1cb   : > { %5140 = vmatpush1.bf16.msra.mxu1 %v5139_v10  ;;  %v2326_v20 = vsel %vm2300_vm4, %v6076_v45, %v6077_v63  ;;  %v6092_v8 = vunpack.i.h.bf16 %v6090_v42  ;;  %v6091_v53 = vunpack.i.l.bf16 %v6090_v42 }
 0x1cc   : > { %6379 = vrot.lane.b32.xlu1 %v7854_v60, %s6907_s10  ;;  %v6085_v46 = vpop.permute.xlu0 %6084  ;;  %v5209_v60 = vpack.c.bf16 %v2328_v12, %v2326_v20 }
 0x1cd   : > { %v6087_v11 = vunpack.i.h.bf16 %v6085_v46  ;;  %v6086_v43 = vunpack.i.l.bf16 %v6085_v46  ;;  %v1783_v44 = vsel %vm824_vm0, %v6091_v53, %v6092_v8  ;;  %v1554_v8 = vld [vmem:[#allocation7 + $0x20] sm:$0xff] }
 0x1ce   : > { %v6100_v34 = vpop.permute.xlu1 %6099  ;;  %6374 = vrot.lane.b32.xlu0 %v7818_v37, %s6907_s10  ;;  %5210 = vmatprep.subr.bf16.mxu0 %v5209_v60 }
 0x1cf   : > { %v2327_v48 = vsel %vm2300_vm4, %v6087_v11, %v6081_v33  ;;  %v2325_v18 = vsel %vm2300_vm4, %v6086_v43, %v6076_v45  ;;  %v6102_v15 = vunpack.i.h.bf16 %v6100_v34  ;;  %v6101_v27 = vunpack.i.l.bf16 %v6100_v34 }
 0x1d0   : > { %6389 = vrot.lane.b32.xlu1 %v7924_v14, %s6906_s27  ;;  %v6095_v14 = vpop.permute.xlu0 %6094  ;;  %v5211_v61 = vpack.c.bf16 %v2327_v48, %v2325_v18 }
 0x1d1   : > { %v6097_v36 = vunpack.i.h.bf16 %v6095_v14  ;;  %v6096_v1 = vunpack.i.l.bf16 %v6095_v14  ;;  %v1782_v37 = vsel %vm824_vm0, %v6101_v27, %v6091_v53 }
 0x1d2   : > { %v6110_v49 = vpop.permute.xlu1 %6109  ;;  %6384 = vrot.lane.b32.xlu0 %v8826_v17, %s6907_s10  ;;  %5212 = vmatpush1.bf16.msra.mxu0 %v5211_v61 }
 0x1d3   : > { %v6112_v23 = vunpack.i.h.bf16 %v6110_v49  ;;  %v6111_v25 = vunpack.i.l.bf16 %v6110_v49  ;;  %v1784_v58 = vsel %vm824_vm0, %v6102_v15, %v6096_v1  ;;  %v1785_v59 = vsel %vm824_vm0, %v6096_v1, %v6097_v36  ;;  %v1557_v15 = vld [vmem:[#allocation7 + $0x38] sm:$0xff] }
 0x1d4   : > { %6399 = vrot.lane.b32.xlu1 %v7944_v19, %s6906_s27  ;;  %v6105_v19 = vpop.permute.xlu0 %6104  ;;  %v5141_v9 = vpack.c.bf16 %v1785_v59, %v1783_v44  ;;  %v5143_v21 = vpack.c.bf16 %v1784_v58, %v1782_v37  ;;  %v1911_v59 = vld [vmem:[#allocation7 + $0xe8] sm:$0xff] }
 0x1d5   : > { %v6107_v13 = vunpack.i.h.bf16 %v6105_v19  ;;  %v6106_v16 = vunpack.i.l.bf16 %v6105_v19  ;;  %v2332_v31 = vsel %vm2300_vm4, %v6111_v25, %v6112_v23  ;;  %v8841_v19 = vld [vmem:[#allocation24_spill] sm:$0xff] }
 0x1d6   : > { %v6120_v50 = vpop.permute.xlu1 %6119  ;;  %6394 = vrot.lane.b32.xlu0 %v7891_v39, %s6906_s27  ;;  %5142 = vmatprep.subr.bf16.mxu1 %v5141_v9  ;;  %v6711_v9 = vld [vmem:[%s7115_s21 + $0x88] sm:$0xff] }
 0x1d7   : > { %5144 = vmatpush1.bf16.msra.mxu1 %v5143_v21  ;;  %v2330_v3 = vsel %vm2300_vm4, %v6106_v16, %v6107_v13  ;;  %v6122_v56 = vunpack.i.h.bf16 %v6120_v50  ;;  %v6121_v38 = vunpack.i.l.bf16 %v6120_v50  ;;  %v6478_v21 = vpack.i.bf16 %v8826_v17, %v6711_v9  ;;  %v2188_v13 = vld [vmem:[#allocation7 + $0xa0] sm:$0xff]  ;;  %v6721_v9 = vld [vmem:[%s7115_s21 + $0xd0] sm:$0xff] }
 0x1d8   : > { %6409 = vrot.lane.b32.xlu1 %v7904_v32, %s6907_s10  ;;  %v6115_v32 = vpop.permute.xlu0 %6114  ;;  %v5213_v0 = vpack.c.bf16 %v2332_v31, %v2330_v3 }
 0x1d9   : > { %v6117_v5 = vunpack.i.h.bf16 %v6115_v32  ;;  %v6116_v41 = vunpack.i.l.bf16 %v6115_v32  ;;  %v1787_v63 = vsel %vm824_vm0, %v6121_v38, %v6122_v56 }
 0x1da   : > { %v6130_v4 = vpop.permute.xlu1 %6129  ;;  %6404 = vrot.lane.b32.xlu0 %v7864_v57, %s6907_s10  ;;  %5214 = vmatprep.subr.bf16.mxu0 %v5213_v0 }
 0x1db   : > { %v2331_v39 = vsel %vm2300_vm4, %v6117_v5, %v6111_v25  ;;  %v2329_v26 = vsel %vm2300_vm4, %v6116_v41, %v6106_v16  ;;  %v6132_v33 = vunpack.i.h.bf16 %v6130_v4  ;;  %v6131_v42 = vunpack.i.l.bf16 %v6130_v4  ;;  %v1556_v25 = vld [vmem:[#allocation7 + $0x30] sm:$0xff] }
 0x1dc   : > { %6419 = vrot.lane.b32.xlu1 %v7911_v29, %s6908_s26  ;;  %v6125_v29 = vpop.permute.xlu0 %6124  ;;  %v5215_v35 = vpack.c.bf16 %v2331_v39, %v2329_v26  ;;  %v2190_v26 = vld [vmem:[#allocation7 + $0xb0] sm:$0xff] }
 0x1dd   : > { %v6127_v40 = vunpack.i.h.bf16 %v6125_v29  ;;  %v6126_v22 = vunpack.i.l.bf16 %v6125_v29  ;;  %v1786_v57 = vsel %vm824_vm0, %v6131_v42, %v6121_v38  ;;  %v2191_v38 = vld [vmem:[#allocation7 + $0xb8] sm:$0xff]  ;;  %v6713_v42 = vld [vmem:[%s7115_s21 + $0x90] sm:$0xff]  ;;  %v6714_v29 = vld [vmem:[%s7115_s21 + $0x80] sm:$0xff] }
 0x1de   : > { %v6140_v54 = vpop.permute.xlu1 %6139  ;;  %6414 = vrot.lane.b32.xlu0 %v8826_v17, %s6907_s10  ;;  %5216 = vmatpush1.bf16.msra.mxu0 %v5215_v35  ;;  %v6488_v35 = vpack.i.bf16 %v6713_v42, %v6714_v29 }
 0x1df   : > { %v6142_v52 = vunpack.i.h.bf16 %v6140_v54  ;;  %v6141_v28 = vunpack.i.l.bf16 %v6140_v54  ;;  %v1788_v10 = vsel %vm824_vm0, %v6132_v33, %v6126_v22  ;;  %v1789_v45 = vsel %vm824_vm0, %v6126_v22, %v6127_v40 }
 0x1e0   : > { %6429 = vrot.lane.b32.xlu1 %v7934_v7, %s6908_s26  ;;  %v6135_v7 = vpop.permute.xlu0 %6134  ;;  %v5145_v34 = vpack.c.bf16 %v1789_v45, %v1787_v63  ;;  %v5147_v12 = vpack.c.bf16 %v1788_v10, %v1786_v57  ;;  %v6715_v63 = vld [vmem:[%s7115_s21 + $0x60] sm:$0xff]  ;;  %v6716_v45 = vld [vmem:[%s7115_s21 + $0x70] sm:$0xff] }
 0x1e1   : > { %v6137_v20 = vunpack.i.h.bf16 %v6135_v7  ;;  %v6136_v46 = vunpack.i.l.bf16 %v6135_v7  ;;  %v2336_v11 = vsel %vm2300_vm4, %v6141_v28, %v6142_v52  ;;  %v6473_v7 = vpack.i.bf16 %v6716_v45, %v6715_v63 }
 0x1e2   : > { %v6150_v6 = vpop.permute.xlu1 %6149  ;;  %6424 = vrot.lane.b32.xlu0 %v7957_v30, %s6908_s26  ;;  %5146 = vmatprep.subr.bf16.mxu1 %v5145_v34  ;;  %v6717_v34 = vld [vmem:[%s7115_s21 + $0xb8] sm:$0xff] }
 0x1e3   : > { %5148 = vmatpush1.bf16.msra.mxu1 %v5147_v12  ;;  %v2334_v43 = vsel %vm2300_vm4, %v6136_v46, %v6137_v20  ;;  %v6152_v27 = vunpack.i.h.bf16 %v6150_v6  ;;  %v6151_v14 = vunpack.i.l.bf16 %v6150_v6  ;;  %v6498_v12 = vpack.i.bf16 %v8826_v17, %v6717_v34 }
 0x1e4   : > { %6439 = vrot.lane.b32.xlu1 %v8001_v24, %s6908_s26  ;;  %v6145_v49 = vpop.permute.xlu0 %6144  ;;  %v5217_v24 = vpack.c.bf16 %v2336_v11, %v2334_v43 }
 0x1e5   : > { %v6147_v53 = vunpack.i.h.bf16 %v6145_v49  ;;  %v6146_v48 = vunpack.i.l.bf16 %v6145_v49 }
 0x1e6   : > { %v6160_v60 = vpop.permute.xlu1 %6159  ;;  %6434 = vrot.lane.b32.xlu0 %v7964_v55, %s6908_s26  ;;  %5218 = vmatprep.subr.bf16.mxu0 %v5217_v24 }
 0x1e7   : > { %v2335_v30 = vsel %vm2300_vm4, %v6147_v53, %v6141_v28  ;;  %v2333_v61 = vsel %vm2300_vm4, %v6146_v48, %v6136_v46  ;;  %v6161_v36 = vunpack.i.l.bf16 %v6160_v60  ;;  %1897 = vmatmul.mubr.f32.vlgmr.msra.gmra.mrb[0].mxu1 %v1554_v8 }
 0x1e8   : > { %6449 = vrot.lane.b32.xlu1 %v8008_v51, %s6908_s26  ;;  %v6162_v51 = vunpack.i.h.bf16 %v6160_v60  ;;  %v6155_v1 = vpop.permute.xlu0 %6154  ;;  %v5219_v23 = vpack.c.bf16 %v2335_v30, %v2333_v61  ;;  %4915 = vmatprep.mubr.msk.f32.mxu1 %vm824_vm0, %v1557_v15  ;;  %v6718_v15 = vld [vmem:[%s7115_s21 + $0x98] sm:$0xff] }
 0x1e9   : > { %v6157_v50 = vunpack.i.h.bf16 %v6155_v1  ;;  %v6156_v37 = vunpack.i.l.bf16 %v6155_v1  ;;  %v2023_v16 = vsel %vm2022_vm5, %v6161_v36, %v6151_v14 }
 0x1ea   : > { %v8199_v18 = vpop.permute.xlu1 %6169  ;;  %6444 = vrot.lane.b32.xlu0 %v8841_v19, %s6908_s26  ;;  %5220 = vmatpush1.bf16.msra.mxu0 %v5219_v23 }
 0x1eb   : > { %v6172_v55 = vunpack.i.h.bf16 %v8199_v18  ;;  %v6171_v58 = vunpack.i.l.bf16 %v8199_v18  ;;  %v2025_v4 = vsel %vm2022_vm5, %v6162_v51, %v6156_v37  ;;  %v2026_v31 = vsel %vm2022_vm5, %v6156_v37, %v6157_v50  ;;  %1903 = vmatmul.mubr.f32.gmra.mrb[2].mxu1 %v1556_v25 }
 0x1ec   : > { %6459 = vrot.lane.b32.xlu1 %v8025_v62, %s6908_s26  ;;  %v2024_v62 = vsel %vm2022_vm5, %v6151_v14, %v6152_v27  ;;  %v6165_v3 = vpop.permute.xlu0 %6164  ;;  %v5151_v0 = vpack.c.bf16 %v2025_v4, %v2023_v16  ;;  %4916 = vmatprep.mubr.msk.f32.mxu1 %vm824_vm0, %v1911_v59  ;;  %v6483_v27 = vpack.i.bf16 %v8826_v17, %v6718_v15  ;;  %v6719_v14 = vld [vmem:[%s7115_s21 + $0xc8] sm:$0xff]  ;;  %v6730_v15 = vld [vmem:[%s7115_s21 + $0x100] sm:$0xff] }
 0x1ed   : > { %v5149_v32 = vpack.c.bf16 %v2026_v31, %v2024_v62  ;;  %v6167_v5 = vunpack.i.h.bf16 %v6165_v3  ;;  %v6166_v41 = vunpack.i.l.bf16 %v6165_v3  ;;  %v2568_v56 = vsel %vm2564_vm6, %v6171_v58, %v6172_v55  ;;  %2444 = vmatmul.mubr.f32.vlgmr.msra.gmra.mrb[4].mxu0 %v2188_v13  ;;  %v6720_v59 = vld [vmem:[%s7115_s21 + $0xa8] sm:$0xff] }
 0x1ee   : > { %v8210_v44 = vpop.permute.xlu1 %6179  ;;  %6454 = vrot.lane.b32.xlu0 %v8040_v47, %s6908_s26  ;;  %4919 = vmatprep.mubr.msk.f32.mxu0 %vm824_vm0, %v2191_v38  ;;  %v2184_v47 = vld [vmem:[#allocation7 + $0x48] sm:$0xff]  ;;  %v6508_v30 = vpack.i.bf16 %v8826_v17, %v6719_v14  ;;  %v6493_v19 = vpack.i.bf16 %v8826_v17, %v6720_v59  ;;  %v6725_v38 = vld [vmem:[%s7115_s21 + $0xf8] sm:$0xff] }
 0x1ef   : > { %5150 = vmatprep.subr.bf16.mxu1 %v5149_v32  ;;  %v2566_v33 = vsel %vm2564_vm6, %v6166_v41, %v6167_v5  ;;  %v6182_v57 = vunpack.i.h.bf16 %v8210_v44  ;;  %v6181_v10 = vunpack.i.l.bf16 %v8210_v44 }
 0x1f0   : > { %6469 = vrot.lane.b32.xlu1 %v8064_v2, %s6908_s26  ;;  %v6712_v2 = vld [vmem:[%s7115_s21 + $0x68] sm:$0xff]  ;;  %5152 = vmatpush1.bf16.msra.mxu1 %v5151_v0  ;;  %v6175_v40 = vpop.permute.xlu0 %6174  ;;  %v5221_v22 = vpack.c.bf16 %v2568_v56, %v2566_v33 }
 0x1f1   : > { %v6463_v39 = vpack.i.bf16 %v8826_v17, %v6712_v2  ;;  %v6177_v52 = vunpack.i.h.bf16 %v6175_v40  ;;  %v6176_v28 = vunpack.i.l.bf16 %v6175_v40  ;;  %2450 = vmatmul.mubr.f32.gmra.mrb[6].mxu0 %v2190_v26  ;;  %v2028_v36 = vsel %vm2022_vm5, %v6181_v10, %v6182_v57 }
 0x1f2   : > { %v6190_v54 = vpop.permute.xlu1 %6189  ;;  %5222 = vmatprep.subr.bf16.mxu0 %v5221_v22  ;;  %4920 = vmatprep.mubr.msk.f32.mxu0 %vm824_vm0, %v2184_v47  ;;  %v6528_v2 = vpack.i.bf16 %v8826_v17, %v6725_v38 }
 0x1f3   : > { %6464 = vrot.lane.b32.xlu0 %v6463_v39, %s6908_s26  ;;  %v2567_v20 = vsel %vm2564_vm6, %v6177_v52, %v6171_v58  ;;  %v2565_v46 = vsel %vm2564_vm6, %v6176_v28, %v6166_v41  ;;  %v6192_v60 = vunpack.i.h.bf16 %v6190_v54  ;;  %v6191_v11 = vunpack.i.l.bf16 %v6190_v54  ;;  %v6723_v41 = vld [vmem:[%s7115_s21 + $0xa0] sm:$0xff]  ;;  %v6724_v54 = vld [vmem:[%s7115_s21 + $0xb0] sm:$0xff] }
 0x1f4   : > { %6479 = vrot.lane.b32.xlu1 %v6478_v21, %s6908_s26  ;;  %v6185_v43 = vpop.permute.xlu0 %6184  ;;  %v5223_v49 = vpack.c.bf16 %v2567_v20, %v2565_v46  ;;  %v6722_v21 = vld [vmem:[%s7115_s21 + $0xc0] sm:$0xff]  ;;  %v6503_v56 = vpack.i.bf16 %v6724_v54, %v6723_v41 }
 0x1f5   : > { %v6187_v24 = vunpack.i.h.bf16 %v6185_v43  ;;  %v6186_v8 = vunpack.i.l.bf16 %v6185_v43  ;;  %v2027_v61 = vsel %vm2022_vm5, %v6191_v11, %v6181_v10  ;;  %v6518_v13 = vpack.i.bf16 %v6721_v9, %v6722_v21  ;;  %v6727_v10 = vld [vmem:[%s7115_s21 + $0x108] sm:$0xff] }
 0x1f6   : > { %v8233_v6 = vpop.permute.xlu1 %6199  ;;  %5224 = vmatpush1.bf16.msra.mxu0 %v5223_v49  ;;  %v6538_v63 = vpack.i.bf16 %v8826_v17, %v6727_v10 }
 0x1f7   : > { %v6202_v53 = vunpack.i.h.bf16 %v8233_v6  ;;  %v6201_v48 = vunpack.i.l.bf16 %v8233_v6  ;;  %6474 = vrot.lane.b32.xlu0 %v6473_v7, %s6908_s26  ;;  %v2029_v51 = vsel %vm2022_vm5, %v6192_v60, %v6186_v8  ;;  %v2030_v1 = vsel %vm2022_vm5, %v6186_v8, %v6187_v24  ;;  %v6726_v6 = vld [vmem:[%s7115_s21 + $0xd8] sm:$0xff]  ;;  %v6728_v8 = vld [vmem:[%s7115_s21 + $0xe8] sm:$0xff] }
 0x1f8   : > { %6489 = vrot.lane.b32.xlu1 %v6488_v35, %s6908_s26  ;;  %v6195_v23 = vpop.permute.xlu0 %6194  ;;  %v5153_v25 = vpack.c.bf16 %v2030_v1, %v2028_v36  ;;  %v5155_v50 = vpack.c.bf16 %v2029_v51, %v2027_v61  ;;  %v6513_v57 = vpack.i.bf16 %v8826_v17, %v6726_v6 }
 0x1f9   : > { %v6197_v37 = vunpack.i.h.bf16 %v6195_v23  ;;  %v6196_v55 = vunpack.i.l.bf16 %v6195_v23  ;;  %v2572_v44 = vsel %vm2564_vm6, %v6201_v48, %v6202_v53  ;;  %v6523_v53 = vpack.i.bf16 %v8826_v17, %v6728_v8 }
 0x1fa   : > { %v8248_v18 = vpop.permute.xlu1 %6209  ;;  %5154 = vmatprep.subr.bf16.mxu1 %v5153_v25  ;;  %v6731_v25 = vld [vmem:[%s7115_s21 + $0xe0] sm:$0xff] }
 0x1fb   : > { %6484 = vrot.lane.b32.xlu0 %v6483_v27, %s6908_s26  ;;  %5156 = vmatpush1.bf16.msra.mxu1 %v5155_v50  ;;  %v2570_v62 = vsel %vm2564_vm6, %v6196_v55, %v6197_v37  ;;  %v6212_v0 = vunpack.i.h.bf16 %v8248_v18  ;;  %v6211_v5 = vunpack.i.l.bf16 %v8248_v18  ;;  %v6729_v18 = vld [vmem:[%s7115_s21 + $0x110] sm:$0xff] }
 0x1fc   : > { %6499 = vrot.lane.b32.xlu1 %v6498_v12, %s6908_s26  ;;  %v6205_v16 = vpop.permute.xlu0 %6204  ;;  %v5225_v4 = vpack.c.bf16 %v2572_v44, %v2570_v62  ;;  %v6548_v27 = vpack.i.bf16 %v6729_v18, %v6730_v15  ;;  %v6732_v50 = vld [vmem:[%s7115_s21 + $0xf0] sm:$0xff] }
 0x1fd   : > { %v6207_v31 = vunpack.i.h.bf16 %v6205_v16  ;;  %v6206_v3 = vunpack.i.l.bf16 %v6205_v16  ;;  %v2032_v34 = vsel %vm2022_vm5, %v6211_v5, %v6212_v0  ;;  %v6533_v37 = vpack.i.bf16 %v6732_v50, %v6731_v25  ;;  %v3010_v0 = vld [vmem:[%s8769_s3 + $0x8] sm:$0xff] }
 0x1fe   : > { %v6220_v58 = vpop.permute.xlu1 %6219  ;;  %5226 = vmatprep.subr.bf16.mxu0 %v5225_v4 }
 0x1ff   : > { %6494 = vrot.lane.b32.xlu0 %v6493_v19, %s6908_s26  ;;  %v2571_v39 = vsel %vm2564_vm6, %v6207_v31, %v6201_v48  ;;  %v2569_v26 = vsel %vm2564_vm6, %v6206_v3, %v6196_v55  ;;  %v6222_v33 = vunpack.i.h.bf16 %v6220_v58  ;;  %v6221_v42 = vunpack.i.l.bf16 %v6220_v58  ;;  %v6733_v31 = vld [vmem:[%s7115_s21 + $0x118] sm:$0xff]  ;;  %s4901_s21 = sshll.u32 %s7111_s30, 5 }
 0x200   : > { %6509 = vrot.lane.b32.xlu1 %v6508_v30, %s6908_s26  ;;  %v6215_v29 = vpop.permute.xlu0 %6214  ;;  %v5227_v35 = vpack.c.bf16 %v2571_v39, %v2569_v26  ;;  %v6543_v3 = vpack.i.bf16 %v8826_v17, %v6733_v31  ;;  %s8438_s2 = scalar_lea.vmem [#allocation10], %s4901_s21 }
 0x201   : > { %v6217_v40 = vunpack.i.h.bf16 %v6215_v29  ;;  %v6216_v22 = vunpack.i.l.bf16 %v6215_v29  ;;  %v2031_v45 = vsel %vm2022_vm5, %v6221_v42, %v6211_v5  ;;  %s4778_s28 = sshll.u32 %s8438_s2, 4  ;;  %s8680_s28 = int_to_ptr.vmem [resolvable:$true] %s4778_s28 }
 0x202   : > { %v8268_v32 = vpop.permute.xlu1 %6229  ;;  %5228 = vmatpush1.bf16.msra.mxu0 %v5227_v35 }
 0x203   : > { %v6232_v47 = vunpack.i.h.bf16 %v8268_v32  ;;  %v6231_v52 = vunpack.i.l.bf16 %v8268_v32  ;;  %6504 = vrot.lane.b32.xlu0 %v6503_v56, %s6908_s26  ;;  %v2033_v7 = vsel %vm2022_vm5, %v6222_v33, %v6216_v22  ;;  %v2034_v12 = vsel %vm2022_vm5, %v6216_v22, %v6217_v40  ;;  %v3009_v40 = vld [vmem:[%s8769_s3] sm:$0xff] }
 0x204   : > { %6519 = vrot.lane.b32.xlu1 %v6518_v13, %s6908_s26  ;;  %v6225_v20 = vpop.permute.xlu0 %6224  ;;  %v5157_v46 = vpack.c.bf16 %v2034_v12, %v2032_v34  ;;  %v5159_v60 = vpack.c.bf16 %v2033_v7, %v2031_v45  ;;  %v6909_v56 = vmov 0  }
 0x205   : > { %v6227_v11 = vunpack.i.h.bf16 %v6225_v20  ;;  %v6226_v43 = vunpack.i.l.bf16 %v6225_v20  ;;  %v2576_v24 = vsel %vm2564_vm6, %v6231_v52, %v6232_v47  ;;  %6553 = vset.pattern.permute.xlu0 %v6909_v56  ;;  %6554 = vset.pattern.permute.xlu1 %v6909_v56 }
 0x206   : > { %v6240_v28 = vpop.permute.xlu1 %6239  ;;  %5158 = vmatprep.subr.bf16.mxu1 %v5157_v46 }
 0x207   : > { %6514 = vrot.lane.b32.xlu0 %v6513_v57, %s6908_s26  ;;  %5160 = vmatpush1.bf16.msra.mxu1 %v5159_v60  ;;  %v2574_v48 = vsel %vm2564_vm6, %v6226_v43, %v6227_v11  ;;  %v6242_v1 = vunpack.i.h.bf16 %v6240_v28  ;;  %v6241_v23 = vunpack.i.l.bf16 %v6240_v28 }
 0x208   : > { %6529 = vrot.lane.b32.xlu1 %v6528_v2, %s6908_s26  ;;  %v6235_v14 = vpop.permute.xlu0 %6234  ;;  %v5229_v30 = vpack.c.bf16 %v2576_v24, %v2574_v48 }
 0x209   : > { %v6237_v61 = vunpack.i.h.bf16 %v6235_v14  ;;  %v6236_v51 = vunpack.i.l.bf16 %v6235_v14  ;;  %v2036_v32 = vsel %vm2022_vm5, %v6241_v23, %v6242_v1 }
 0x20a   : > { %v6250_v49 = vpop.permute.xlu1 %6249  ;;  %5230 = vmatprep.subr.bf16.mxu0 %v5229_v30 }
 0x20b   : > { %6524 = vrot.lane.b32.xlu0 %v6523_v53, %s6908_s26  ;;  %v2575_v55 = vsel %vm2564_vm6, %v6237_v61, %v6231_v52  ;;  %v2573_v58 = vsel %vm2564_vm6, %v6236_v51, %v6226_v43  ;;  %v6252_v44 = vunpack.i.h.bf16 %v6250_v49  ;;  %v6251_v59 = vunpack.i.l.bf16 %v6250_v49 }
 0x20c   : > { %6539 = vrot.lane.b32.xlu1 %v6538_v63, %s6908_s26  ;;  %v6245_v19 = vpop.permute.xlu0 %6244  ;;  %v5231_v62 = vpack.c.bf16 %v2575_v55, %v2573_v58 }
 0x20d   : > { %v6247_v9 = vunpack.i.h.bf16 %v6245_v19  ;;  %v6246_v21 = vunpack.i.l.bf16 %v6245_v19  ;;  %v2035_v5 = vsel %vm2022_vm5, %v6251_v59, %v6241_v23 }
 0x20e   : > { %v6260_v36 = vpop.permute.xlu1 %6259  ;;  %5232 = vmatpush1.bf16.msra.mxu0 %v5231_v62 }
 0x20f   : > { %v6262_v13 = vunpack.i.h.bf16 %v6260_v36  ;;  %v6261_v16 = vunpack.i.l.bf16 %v6260_v36  ;;  %6534 = vrot.lane.b32.xlu0 %v6533_v37, %s6908_s26  ;;  %v2037_v41 = vsel %vm2022_vm5, %v6252_v44, %v6246_v21  ;;  %v2038_v54 = vsel %vm2022_vm5, %v6246_v21, %v6247_v9 }
 0x210   : > { %6549 = vrot.lane.b32.xlu1 %v6548_v27, %s6908_s26  ;;  %v6255_v38 = vpop.permute.xlu0 %6254  ;;  %v5161_v2 = vpack.c.bf16 %v2038_v54, %v2036_v32  ;;  %v5163_v39 = vpack.c.bf16 %v2037_v41, %v2035_v5 }
 0x211   : > { %v6257_v26 = vunpack.i.h.bf16 %v6255_v38  ;;  %v6256_v33 = vunpack.i.l.bf16 %v6255_v38  ;;  %v2580_v29 = vsel %vm2564_vm6, %v6261_v16, %v6262_v13 }
 0x212   : > { %v6270_v4 = vpop.permute.xlu1 %6269  ;;  %5162 = vmatprep.subr.bf16.mxu1 %v5161_v2 }
 0x213   : > { %6544 = vrot.lane.b32.xlu0 %v6543_v3, %s6908_s26  ;;  %5164 = vmatpush1.bf16.msra.mxu1 %v5163_v39  ;;  %v2578_v35 = vsel %vm2564_vm6, %v6256_v33, %v6257_v26  ;;  %v6272_v57 = vunpack.i.h.bf16 %v6270_v4  ;;  %v6271_v10 = vunpack.i.l.bf16 %v6270_v4 }
 0x214   : > { %3018 = vperm.xlu1 %6554, %v3010_v0   ;;  %v6265_v22 = vpop.permute.xlu0 %6264  ;;  %v5233_v47 = vpack.c.bf16 %v2580_v29, %v2578_v35 }
 0x215   : > { %v6267_v52 = vunpack.i.h.bf16 %v6265_v22  ;;  %v6266_v28 = vunpack.i.l.bf16 %v6265_v22  ;;  %v2040_v53 = vsel %vm2022_vm5, %v6271_v10, %v6272_v57 }
 0x216   : > { %v6280_v42 = vpop.permute.xlu1 %6279  ;;  %5234 = vmatprep.subr.bf16.mxu0 %v5233_v47 }
 0x217   : > { %3013 = vperm.xlu0 %6553, %v3009_v40   ;;  %v2579_v63 = vsel %vm2564_vm6, %v6267_v52, %v6261_v16  ;;  %v2577_v45 = vsel %vm2564_vm6, %v6266_v28, %v6256_v33  ;;  %v6282_v7 = vunpack.i.h.bf16 %v6280_v42  ;;  %v6281_v34 = vunpack.i.l.bf16 %v6280_v42 }
 0x218   : > { %v6275_v12 = vpop.permute.xlu0 %6274  ;;  %v5235_v20 = vpack.c.bf16 %v2579_v63, %v2577_v45 }
 0x219   : > { %v6277_v46 = vunpack.i.h.bf16 %v6275_v12  ;;  %v6276_v60 = vunpack.i.l.bf16 %v6275_v12  ;;  %v2039_v24 = vsel %vm2022_vm5, %v6281_v34, %v6271_v10 }
 0x21a   : > { %v6290_v6 = vpop.permute.xlu1 %6289  ;;  %5236 = vmatpush1.bf16.msra.mxu0 %v5235_v20 }
 0x21b   : > { %v6292_v11 = vunpack.i.h.bf16 %v6290_v6  ;;  %v6291_v43 = vunpack.i.l.bf16 %v6290_v6  ;;  %v2041_v8 = vsel %vm2022_vm5, %v6282_v7, %v6276_v60  ;;  %v2042_v48 = vsel %vm2022_vm5, %v6276_v60, %v6277_v46 }
 0x21c   : > { %v6285_v18 = vpop.permute.xlu0 %6284  ;;  %v5165_v15 = vpack.c.bf16 %v2042_v48, %v2040_v53  ;;  %v5167_v27 = vpack.c.bf16 %v2041_v8, %v2039_v24 }
 0x21d   : > { %v6287_v14 = vunpack.i.h.bf16 %v6285_v18  ;;  %v6286_v30 = vunpack.i.l.bf16 %v6285_v18  ;;  %v2584_v51 = vsel %vm2564_vm6, %v6291_v43, %v6292_v11 }
 0x21e   : > { %v6300_v49 = vpop.permute.xlu1 %6299  ;;  %5166 = vmatprep.subr.bf16.mxu1 %v5165_v15 }
 0x21f   : > { %5168 = vmatpush1.bf16.msra.mxu1 %v5167_v27  ;;  %v2582_v36 = vsel %vm2564_vm6, %v6286_v30, %v6287_v14  ;;  %v6302_v55 = vunpack.i.h.bf16 %v6300_v49  ;;  %v6301_v58 = vunpack.i.l.bf16 %v6300_v49 }
 0x220   : > { %v6295_v1 = vpop.permute.xlu0 %6294  ;;  %v5237_v23 = vpack.c.bf16 %v2584_v51, %v2582_v36 }
 0x221   : > { %v6297_v25 = vunpack.i.h.bf16 %v6295_v1  ;;  %v6296_v50 = vunpack.i.l.bf16 %v6295_v1  ;;  %v2044_v5 = vsel %vm2022_vm5, %v6301_v58, %v6302_v55 }
 0x222   : > { %v6310_v61 = vpop.permute.xlu1 %6309  ;;  %5238 = vmatprep.subr.bf16.mxu0 %v5237_v23 }
 0x223   : > { %v2583_v44 = vsel %vm2564_vm6, %v6297_v25, %v6291_v43  ;;  %v2581_v59 = vsel %vm2564_vm6, %v6296_v50, %v6286_v30  ;;  %v6312_v19 = vunpack.i.h.bf16 %v6310_v61  ;;  %v6311_v62 = vunpack.i.l.bf16 %v6310_v61 }
 0x224   : > { %v6305_v9 = vpop.permute.xlu0 %6304  ;;  %v5239_v21 = vpack.c.bf16 %v2583_v44, %v2581_v59 }
 0x225   : > { %v6307_v13 = vunpack.i.h.bf16 %v6305_v9  ;;  %v6306_v16 = vunpack.i.l.bf16 %v6305_v9  ;;  %v2043_v32 = vsel %vm2022_vm5, %v6311_v62, %v6301_v58 }
 0x226   : > { %v6320_v37 = vpop.permute.xlu1 %6319  ;;  %5240 = vmatpush1.bf16.msra.mxu0 %v5239_v21 }
 0x227   : > { %v6322_v4 = vunpack.i.h.bf16 %v6320_v37  ;;  %v6321_v31 = vunpack.i.l.bf16 %v6320_v37  ;;  %v2045_v0 = vsel %vm2022_vm5, %v6312_v19, %v6306_v16  ;;  %v2046_v41 = vsel %vm2022_vm5, %v6306_v16, %v6307_v13 }
 0x228   : > { %v6315_v54 = vpop.permute.xlu0 %6314  ;;  %v5169_v56 = vpack.c.bf16 %v2046_v41, %v2044_v5  ;;  %v5171_v38 = vpack.c.bf16 %v2045_v0, %v2043_v32 }
 0x229   : > { %v6317_v2 = vunpack.i.h.bf16 %v6315_v54  ;;  %v6316_v39 = vunpack.i.l.bf16 %v6315_v54  ;;  %v2588_v33 = vsel %vm2564_vm6, %v6321_v31, %v6322_v4 }
 0x22a   : > { %v6330_v3 = vpop.permute.xlu1 %6329  ;;  %5170 = vmatprep.subr.bf16.mxu1 %v5169_v56 }
 0x22b   : > { %5172 = vmatpush1.bf16.msra.mxu1 %v5171_v38  ;;  %v2586_v42 = vsel %vm2564_vm6, %v6316_v39, %v6317_v2  ;;  %v6332_v52 = vunpack.i.h.bf16 %v6330_v3  ;;  %v6331_v28 = vunpack.i.l.bf16 %v6330_v3 }
 0x22c   : > { %v6325_v29 = vpop.permute.xlu0 %6324  ;;  %v5241_v35 = vpack.c.bf16 %v2588_v33, %v2586_v42 }
 0x22d   : > { %v6327_v40 = vunpack.i.h.bf16 %v6325_v29  ;;  %v6326_v22 = vunpack.i.l.bf16 %v6325_v29  ;;  %v2048_v49 = vsel %vm2022_vm5, %v6331_v28, %v6332_v52 }
 0x22e   : > { %v6340_v26 = vpop.permute.xlu1 %6339  ;;  %5242 = vmatprep.subr.bf16.mxu0 %v5241_v35 }
 0x22f   : > { %v2587_v6 = vsel %vm2564_vm6, %v6327_v40, %v6321_v31  ;;  %v2585_v57 = vsel %vm2564_vm6, %v6326_v22, %v6316_v39  ;;  %v6342_v10 = vunpack.i.h.bf16 %v6340_v26  ;;  %v6341_v63 = vunpack.i.l.bf16 %v6340_v26 }
 0x230   : > { %v5243_v45 = vpack.c.bf16 %v2587_v6, %v2585_v57  ;;  %v6335_v7 = vpop.permute.xlu0 %6334 }
 0x231   : > { %v6337_v34 = vunpack.i.h.bf16 %v6335_v7  ;;  %v6336_v12 = vunpack.i.l.bf16 %v6335_v7  ;;  %v2047_v11 = vsel %vm2022_vm5, %v6341_v63, %v6331_v28 }
 0x232   : > { %v6350_v47 = vpop.permute.xlu1 %6349  ;;  %5244 = vmatpush1.bf16.msra.mxu0 %v5243_v45 }
 0x233   : > { %v6352_v20 = vunpack.i.h.bf16 %v6350_v47  ;;  %v6351_v46 = vunpack.i.l.bf16 %v6350_v47  ;;  %v2049_v43 = vsel %vm2022_vm5, %v6342_v10, %v6336_v12  ;;  %v2050_v24 = vsel %vm2022_vm5, %v6336_v12, %v6337_v34 }
 0x234   : > { %v5175_v8 = vpack.c.bf16 %v2049_v43, %v2047_v11  ;;  %v6345_v53 = vpop.permute.xlu0 %6344  ;;  %v5173_v48 = vpack.c.bf16 %v2050_v24, %v2048_v49 }
 0x235   : > { %v6347_v18 = vunpack.i.h.bf16 %v6345_v53  ;;  %v6346_v15 = vunpack.i.l.bf16 %v6345_v53  ;;  %v2592_v14 = vsel %vm2564_vm6, %v6351_v46, %v6352_v20 }
 0x236   : > { %v6360_v60 = vpop.permute.xlu1 %6359  ;;  %5174 = vmatprep.subr.bf16.mxu1 %v5173_v48 }
 0x237   : > { %5176 = vmatpush1.bf16.msra.mxu1 %v5175_v8  ;;  %v2590_v30 = vsel %vm2564_vm6, %v6346_v15, %v6347_v18  ;;  %v6362_v25 = vunpack.i.h.bf16 %v6360_v60  ;;  %v6361_v50 = vunpack.i.l.bf16 %v6360_v60 }
 0x238   : > { %v6355_v61 = vpop.permute.xlu0 %6354  ;;  %v5245_v51 = vpack.c.bf16 %v2592_v14, %v2590_v30 }
 0x239   : > { %v6357_v36 = vunpack.i.h.bf16 %v6355_v61  ;;  %v6356_v1 = vunpack.i.l.bf16 %v6355_v61  ;;  %v2052_v3 = vsel %vm2022_vm5, %v6361_v50, %v6362_v25  ;;  %v1913_v61 = vld [vmem:[#allocation7 + $0xf8] sm:$0xff] }
 0x23a   : > { %v6370_v27 = vpop.permute.xlu1 %6369  ;;  %5246 = vmatprep.subr.bf16.mxu0 %v5245_v51 }
 0x23b   : > { %v2591_v37 = vsel %vm2564_vm6, %v6357_v36, %v6351_v46  ;;  %v2589_v55 = vsel %vm2564_vm6, %v6356_v1, %v6346_v15  ;;  %v6372_v58 = vunpack.i.h.bf16 %v6370_v27  ;;  %v6371_v44 = vunpack.i.l.bf16 %v6370_v27  ;;  %v1910_v15 = vld [vmem:[#allocation7 + $0xe0] sm:$0xff] }
 0x23c   : > { %v5247_v59 = vpack.c.bf16 %v2591_v37, %v2589_v55  ;;  %v6365_v19 = vpop.permute.xlu0 %6364 }
 0x23d   : > { %v6367_v62 = vunpack.i.h.bf16 %v6365_v19  ;;  %v6366_v9 = vunpack.i.l.bf16 %v6365_v19  ;;  %v2051_v4 = vsel %vm2022_vm5, %v6371_v44, %v6361_v50  ;;  %v1912_v44 = vld [vmem:[#allocation7 + $0xf0] sm:$0xff] }
 0x23e   : > { %v6380_v23 = vpop.permute.xlu1 %6379  ;;  %5248 = vmatpush1.bf16.msra.mxu0 %v5247_v59 }
 0x23f   : > { %v6382_v21 = vunpack.i.h.bf16 %v6380_v23  ;;  %v6381_v13 = vunpack.i.l.bf16 %v6380_v23  ;;  %v2053_v31 = vsel %vm2022_vm5, %v6372_v58, %v6366_v9  ;;  %v2054_v32 = vsel %vm2022_vm5, %v6366_v9, %v6367_v62  ;;  %v2724_v62 = vld [vmem:[#allocation7 + $0x118] sm:$0xff] }
 0x240   : > { %v5179_v0 = vpack.c.bf16 %v2053_v31, %v2051_v4  ;;  %v6375_v5 = vpop.permute.xlu0 %6374  ;;  %v5177_v41 = vpack.c.bf16 %v2054_v32, %v2052_v3  ;;  %v2183_v32 = vld [vmem:[#allocation7 + $0x40] sm:$0xff] }
 0x241   : > { %v6377_v54 = vunpack.i.h.bf16 %v6375_v5  ;;  %v6376_v56 = vunpack.i.l.bf16 %v6375_v5  ;;  %v2596_v2 = vsel %vm2564_vm6, %v6381_v13, %v6382_v21 }
 0x242   : > { %v6390_v16 = vpop.permute.xlu1 %6389  ;;  %5178 = vmatprep.subr.bf16.mxu1 %v5177_v41 }
 0x243   : > { %5180 = vmatpush1.bf16.msra.mxu1 %v5179_v0  ;;  %v2594_v39 = vsel %vm2564_vm6, %v6376_v56, %v6377_v54  ;;  %v6392_v40 = vunpack.i.h.bf16 %v6390_v16  ;;  %v6391_v22 = vunpack.i.l.bf16 %v6390_v16 }
 0x244   : > { %v6385_v26 = vpop.permute.xlu0 %6384  ;;  %v5249_v33 = vpack.c.bf16 %v2596_v2, %v2594_v39 }
 0x245   : > { %v6387_v42 = vunpack.i.h.bf16 %v6385_v26  ;;  %v6386_v29 = vunpack.i.l.bf16 %v6385_v26  ;;  %v2056_v60 = vsel %vm2022_vm5, %v6391_v22, %v6392_v40 }
 0x246   : > { %v6400_v38 = vpop.permute.xlu1 %6399  ;;  %5250 = vmatprep.subr.bf16.mxu0 %v5249_v33 }
 0x247   : > { %v2595_v47 = vsel %vm2564_vm6, %v6387_v42, %v6381_v13  ;;  %v2593_v52 = vsel %vm2564_vm6, %v6386_v29, %v6376_v56  ;;  %v6402_v28 = vunpack.i.h.bf16 %v6400_v38  ;;  %v6401_v6 = vunpack.i.l.bf16 %v6400_v38 }
 0x248   : > { %v5251_v57 = vpack.c.bf16 %v2595_v47, %v2593_v52  ;;  %v6395_v10 = vpop.permute.xlu0 %6394 }
 0x249   : > { %v6397_v63 = vunpack.i.h.bf16 %v6395_v10  ;;  %v6396_v45 = vunpack.i.l.bf16 %v6395_v10  ;;  %v2055_v20 = vsel %vm2022_vm5, %v6401_v6, %v6391_v22  ;;  %v2185_v22 = vld [vmem:[#allocation7 + $0x50] sm:$0xff]  ;;  %v2722_v6 = vld [vmem:[#allocation7 + $0x108] sm:$0xff] }
 0x24a   : > { %v6410_v35 = vpop.permute.xlu1 %6409  ;;  %5252 = vmatpush1.bf16.msra.mxu0 %v5251_v57 }
 0x24b   : > { %v6412_v7 = vunpack.i.h.bf16 %v6410_v35  ;;  %v6411_v34 = vunpack.i.l.bf16 %v6410_v35  ;;  %v2057_v46 = vsel %vm2022_vm5, %v6402_v28, %v6396_v45  ;;  %v2058_v11 = vsel %vm2022_vm5, %v6396_v45, %v6397_v63  ;;  %v2186_v35 = vld [vmem:[#allocation7 + $0x58] sm:$0xff] }
 0x24c   : > { %v5183_v43 = vpack.c.bf16 %v2057_v46, %v2055_v20  ;;  %v6405_v49 = vpop.permute.xlu0 %6404  ;;  %v5181_v24 = vpack.c.bf16 %v2058_v11, %v2056_v60 }
 0x24d   : > { %v6407_v8 = vunpack.i.h.bf16 %v6405_v49  ;;  %v6406_v53 = vunpack.i.l.bf16 %v6405_v49  ;;  %v2600_v18 = vsel %vm2564_vm6, %v6411_v34, %v6412_v7 }
 0x24e   : > { %v6420_v12 = vpop.permute.xlu1 %6419  ;;  %5182 = vmatprep.subr.bf16.mxu1 %v5181_v24 }
 0x24f   : > { %5184 = vmatpush1.bf16.msra.mxu1 %v5183_v43  ;;  %v2598_v27 = vsel %vm2564_vm6, %v6406_v53, %v6407_v8  ;;  %v6422_v23 = vunpack.i.h.bf16 %v6420_v12  ;;  %v6421_v25 = vunpack.i.l.bf16 %v6420_v12 }
 0x250   : > { %v6415_v14 = vpop.permute.xlu0 %6414  ;;  %v5253_v30 = vpack.c.bf16 %v2600_v18, %v2598_v27 }
 0x251   : > { %v6417_v51 = vunpack.i.h.bf16 %v6415_v14  ;;  %v6416_v36 = vunpack.i.l.bf16 %v6415_v14  ;;  %v2835_v41 = vsel %vm2833_vm7, %v6421_v25, %v6422_v23 }
 0x252   : > { %v6430_v48 = vpop.permute.xlu1 %6429  ;;  %2166 = vmatmul.mubr.f32.vlgmr.msra.gmra.mrb[0].mxu1 %v1910_v15  ;;  %5254 = vmatprep.subr.bf16.mxu0 %v5253_v30 }
 0x253   : > { %v2599_v50 = vsel %vm2564_vm6, %v6417_v51, %v6411_v34  ;;  %v2597_v37 = vsel %vm2564_vm6, %v6416_v36, %v6406_v53  ;;  %v6432_v55 = vunpack.i.h.bf16 %v6430_v48  ;;  %v6431_v58 = vunpack.i.l.bf16 %v6430_v48  ;;  %4917 = vmatprep.mubr.msk.f32.mxu1 %vm824_vm0, %v1913_v61 }
 0x254   : > { %v5255_v59 = vpack.c.bf16 %v2599_v50, %v2597_v37  ;;  %v6425_v19 = vpop.permute.xlu0 %6424  ;;  %v8365_v9 = vpop.f32.mrb[0].mxu0 }
 0x255   : > { %v6427_v21 = vunpack.i.h.bf16 %v6425_v19  ;;  %v6426_v13 = vunpack.i.l.bf16 %v6425_v19  ;;  %v8367_v3 = vpop.f32.mrb[1].mxu0  ;;  %v2834_v0 = vsel %vm2833_vm7, %v6431_v58, %v6421_v25 }
 0x256   : > { %v6440_v1 = vpop.permute.xlu1 %6439  ;;  %2172 = vmatmul.mubr.f32.gmra.mrb[2].mxu1 %v1912_v44  ;;  %5256 = vmatpush1.bf16.msra.mxu0 %v5255_v59 }
 0x257   : > { %v6442_v16 = vunpack.i.h.bf16 %v6440_v1  ;;  %v6441_v4 = vunpack.i.l.bf16 %v6440_v1  ;;  %v2836_v5 = vsel %vm2833_vm7, %v6432_v55, %v6426_v13  ;;  %v2837_v54 = vsel %vm2833_vm7, %v6426_v13, %v6427_v21  ;;  %4923 = vmatprep.mubr.msk.f32.mxu1 %vm824_vm0, %v2724_v62 }
 0x258   : > { %v5259_v56 = vpack.c.bf16 %v2836_v5, %v2834_v0  ;;  %v6435_v38 = vpop.permute.xlu0 %6434  ;;  %v5257_v2 = vpack.c.bf16 %v2837_v54, %v2835_v41  ;;  %v8374_v39 = vpop.f32.mrb[2].mxu0 }
 0x259   : > { %v6437_v26 = vunpack.i.h.bf16 %v6435_v38  ;;  %v6436_v33 = vunpack.i.l.bf16 %v6435_v38  ;;  %2708 = vmatmul.mubr.f32.vlgmr.msra.gmra.mrb[4].mxu0 %v2183_v32  ;;  %v2841_v29 = vsel %vm2833_vm7, %v6441_v4, %v6442_v16  ;;  %v8377_v40 = vpop.f32.mrb[3].mxu0 }
 0x25a   : > { %v6450_v31 = vpop.permute.xlu1 %6449  ;;  %5258 = vmatprep.subr.bf16.mxu0 %v5257_v2  ;;  %5329 = vmatprep.subr.bf16.mxu1 %v5257_v2 }
 0x25b   : > { %5260 = vmatpush1.bf16.msra.mxu0 %v5259_v56  ;;  %5338 = vmatpush1.bf16.msra.mxu1 %v5259_v56  ;;  %v2839_v47 = vsel %vm2833_vm7, %v6436_v33, %v6437_v26  ;;  %v6452_v45 = vunpack.i.h.bf16 %v6450_v31  ;;  %v6451_v7 = vunpack.i.l.bf16 %v6450_v31 }
 0x25c   : > { %v6445_v52 = vpop.permute.xlu0 %6444  ;;  %v5261_v28 = vpack.c.bf16 %v2841_v29, %v2839_v47  ;;  %4921 = vmatprep.mubr.msk.f32.mxu0 %vm824_vm0, %v2186_v35 }
 0x25d   : > { %v6447_v57 = vunpack.i.h.bf16 %v6445_v52  ;;  %v6446_v10 = vunpack.i.l.bf16 %v6445_v52  ;;  %2714 = vmatmul.mubr.f32.gmra.mrb[6].mxu0 %v2185_v22  ;;  %v2843_v15 = vsel %vm2833_vm7, %v6451_v7, %v6452_v45 }
 0x25e   : > { %v6460_v42 = vpop.permute.xlu1 %6459  ;;  %5262 = vmatprep.subr.bf16.mxu0 %v5261_v28  ;;  %5330 = vmatprep.subr.bf16.mxu1 %v5261_v28 }
 0x25f   : > { %v2840_v34 = vsel %vm2833_vm7, %v6447_v57, %v6441_v4  ;;  %v2838_v12 = vsel %vm2833_vm7, %v6446_v10, %v6436_v33  ;;  %v6462_v20 = vunpack.i.h.bf16 %v6460_v42  ;;  %v6461_v46 = vunpack.i.l.bf16 %v6460_v42  ;;  %4922 = vmatprep.mubr.msk.f32.mxu0 %vm824_vm0, %v2722_v6 }
 0x260   : > { %v5263_v60 = vpack.c.bf16 %v2840_v34, %v2838_v12  ;;  %v6455_v11 = vpop.permute.xlu0 %6454 }
 0x261   : > { %v6457_v43 = vunpack.i.h.bf16 %v6455_v11  ;;  %v6456_v49 = vunpack.i.l.bf16 %v6455_v11  ;;  %v2842_v48 = vsel %vm2833_vm7, %v6461_v46, %v6451_v7 }
 0x262   : > { %v6470_v63 = vpop.permute.xlu1 %6469  ;;  %5264 = vmatpush1.bf16.msra.mxu0 %v5263_v60  ;;  %5339 = vmatpush1.bf16.msra.mxu1 %v5263_v60 }
 0x263   : > { %v6472_v24 = vunpack.i.h.bf16 %v6470_v63  ;;  %v6471_v8 = vunpack.i.l.bf16 %v6470_v63  ;;  %v2844_v18 = vsel %vm2833_vm7, %v6462_v20, %v6456_v49  ;;  %v2845_v27 = vsel %vm2833_vm7, %v6456_v49, %v6457_v43 }
 0x264   : > { %v5267_v14 = vpack.c.bf16 %v2844_v18, %v2842_v48  ;;  %v5265_v61 = vpack.c.bf16 %v2845_v27, %v2843_v15 }
 0x265   : > { %v6465_v30 = vpop.permute.xlu0 %6464  ;;  %v2849_v23 = vsel %vm2833_vm7, %v6471_v8, %v6472_v24 }
 0x266   : > { %v6480_v53 = vpop.permute.xlu1 %6479  ;;  %v6467_v51 = vunpack.i.h.bf16 %v6465_v30  ;;  %v6466_v36 = vunpack.i.l.bf16 %v6465_v30  ;;  %5266 = vmatprep.subr.bf16.mxu0 %v5265_v61  ;;  %5331 = vmatprep.subr.bf16.mxu1 %v5265_v61 }
 0x267   : > { %5268 = vmatpush1.bf16.msra.mxu0 %v5267_v14  ;;  %5340 = vmatpush1.bf16.msra.mxu1 %v5267_v14  ;;  %v6482_v59 = vunpack.i.h.bf16 %v6480_v53  ;;  %v6481_v19 = vunpack.i.l.bf16 %v6480_v53 }
 0x268   : > { %v2847_v25 = vsel %vm2833_vm7, %v6466_v36, %v6467_v51 }
 0x269   : > { %v6475_v50 = vpop.permute.xlu0 %6474  ;;  %v5269_v37 = vpack.c.bf16 %v2849_v23, %v2847_v25  ;;  %v2851_v2 = vsel %vm2833_vm7, %v6481_v19, %v6482_v59 }
 0x26a   : > { %v6490_v1 = vpop.permute.xlu1 %6489  ;;  %v6477_v55 = vunpack.i.h.bf16 %v6475_v50  ;;  %v6476_v58 = vunpack.i.l.bf16 %v6475_v50 }
 0x26b   : > { %5270 = vmatprep.subr.bf16.mxu0 %v5269_v37  ;;  %5332 = vmatprep.subr.bf16.mxu1 %v5269_v37  ;;  %v6492_v13 = vunpack.i.h.bf16 %v6490_v1  ;;  %v6491_v16 = vunpack.i.l.bf16 %v6490_v1 }
 0x26c   : > { %v2848_v62 = vsel %vm2833_vm7, %v6477_v55, %v6471_v8  ;;  %v2846_v21 = vsel %vm2833_vm7, %v6476_v58, %v6466_v36 }
 0x26d   : > { %v5271_v4 = vpack.c.bf16 %v2848_v62, %v2846_v21  ;;  %v6485_v31 = vpop.permute.xlu0 %6484  ;;  %v2850_v56 = vsel %vm2833_vm7, %v6491_v16, %v6481_v19 }
 0x26e   : > { %v6500_v44 = vpop.permute.xlu1 %6499  ;;  %v6487_v32 = vunpack.i.h.bf16 %v6485_v31  ;;  %v6486_v0 = vunpack.i.l.bf16 %v6485_v31 }
 0x26f   : > { %v6502_v5 = vunpack.i.h.bf16 %v6500_v44  ;;  %v6501_v41 = vunpack.i.l.bf16 %v6500_v44  ;;  %5272 = vmatpush1.bf16.msra.mxu0 %v5271_v4  ;;  %5341 = vmatpush1.bf16.msra.mxu1 %v5271_v4 }
 0x270   : > { %v2852_v38 = vsel %vm2833_vm7, %v6492_v13, %v6486_v0  ;;  %v2853_v26 = vsel %vm2833_vm7, %v6486_v0, %v6487_v32 }
 0x271   : > { %v5275_v33 = vpack.c.bf16 %v2852_v38, %v2850_v56  ;;  %v6495_v42 = vpop.permute.xlu0 %6494  ;;  %v5273_v29 = vpack.c.bf16 %v2853_v26, %v2851_v2  ;;  %v2857_v52 = vsel %vm2833_vm7, %v6501_v41, %v6502_v5  ;;  %v2721_v26 = vld [vmem:[#allocation7 + $0x100] sm:$0xff] }
 0x272   : > { %v6510_v54 = vpop.permute.xlu1 %6509  ;;  %v6497_v35 = vunpack.i.h.bf16 %v6495_v42  ;;  %v6496_v22 = vunpack.i.l.bf16 %v6495_v42  ;;  %v379_v42 = vlaneseq }
 0x273   : > { %5274 = vmatprep.subr.bf16.mxu0 %v5273_v29  ;;  %5333 = vmatprep.subr.bf16.mxu1 %v5273_v29  ;;  %v6512_v7 = vunpack.i.h.bf16 %v6510_v54  ;;  %v6511_v34 = vunpack.i.l.bf16 %v6510_v54 }
 0x274   : > { %5276 = vmatpush1.bf16.msra.mxu0 %v5275_v33  ;;  %5342 = vmatpush1.bf16.msra.mxu1 %v5275_v33  ;;  %v2855_v28 = vsel %vm2833_vm7, %v6496_v22, %v6497_v35  ;;  %v2723_v33 = vld [vmem:[#allocation7 + $0x110] sm:$0xff]  ;;  %v380_v29 = vand.u32 127, %v379_v42 }
 0x275   : > { %v6505_v6 = vpop.permute.xlu0 %6504  ;;  %v5277_v57 = vpack.c.bf16 %v2857_v52, %v2855_v28  ;;  %v2859_v27 = vsel %vm2833_vm7, %v6511_v34, %v6512_v7 }
 0x276   : > { %v6520_v47 = vpop.permute.xlu1 %6519  ;;  %v6507_v10 = vunpack.i.h.bf16 %v6505_v6  ;;  %v6506_v63 = vunpack.i.l.bf16 %v6505_v6  ;;  %v381_v35 = vadd.s32 128, %v380_v29 }
 0x277   : > { %5278 = vmatprep.subr.bf16.mxu0 %v5277_v57  ;;  %5334 = vmatprep.subr.bf16.mxu1 %v5277_v57  ;;  %v6522_v46 = vunpack.i.h.bf16 %v6520_v47  ;;  %v6521_v60 = vunpack.i.l.bf16 %v6520_v47 }
 0x278   : > { %v2856_v12 = vsel %vm2833_vm7, %v6507_v10, %v6501_v41  ;;  %v2854_v20 = vsel %vm2833_vm7, %v6506_v63, %v6496_v22  ;;  %v386_v22 = vand.u32 15, %v380_v29  ;;  %v393_v47 = vand.u32 15, %v381_v35 }
 0x279   : > { %v5279_v11 = vpack.c.bf16 %v2856_v12, %v2854_v20  ;;  %v6515_v43 = vpop.permute.xlu0 %6514  ;;  %v2858_v18 = vsel %vm2833_vm7, %v6521_v60, %v6511_v34 }
 0x27a   : > { %v6530_v45 = vpop.permute.xlu1 %6529  ;;  %v6517_v49 = vunpack.i.h.bf16 %v6515_v43  ;;  %v6516_v24 = vunpack.i.l.bf16 %v6515_v43  ;;  %vm406_vm8 = vcmp.ge.s32.totalorder %v386_v22, 1  ;;  %vm407_vm9 = vcmp.ge.s32.totalorder %v393_v47, 1 }
 0x27b   : > { %v6532_v8 = vunpack.i.h.bf16 %v6530_v45  ;;  %v6531_v53 = vunpack.i.l.bf16 %v6530_v45  ;;  %5280 = vmatpush1.bf16.msra.mxu0 %v5279_v11  ;;  %5343 = vmatpush1.bf16.msra.mxu1 %v5279_v11  ;;  %v8414_v52 = vsel %vm406_vm8, 1.0, %v8826_v17  ;;  %v8417_v28 = vsel %vm407_vm9, 1.0, %v8826_v17 }
 0x27c   : > { %v2860_v15 = vsel %vm2833_vm7, %v6522_v46, %v6516_v24  ;;  %v2861_v14 = vsel %vm2833_vm7, %v6516_v24, %v6517_v49  ;;  %v2993_v6 = vmul.f32 %v8414_v52, %v8365_v9  ;;  %v2994_v57 = vmul.f32 %v8417_v28, %v8367_v3 }
 0x27d   : > { %v5283_v30 = vpack.c.bf16 %v2860_v15, %v2858_v18  ;;  %v6525_v61 = vpop.permute.xlu0 %6524  ;;  %v5281_v51 = vpack.c.bf16 %v2861_v14, %v2859_v27  ;;  %v2865_v23 = vsel %vm2833_vm7, %v6531_v53, %v6532_v8  ;;  %v2995_v34 = vmul.f32 %v8414_v52, %v8374_v39 }
 0x27e   : > { %v6540_v48 = vpop.permute.xlu1 %6539  ;;  %v6527_v36 = vunpack.i.h.bf16 %v6525_v61  ;;  %v6526_v1 = vunpack.i.l.bf16 %v6525_v61  ;;  %v2996_v12 = vmul.f32 %v8417_v28, %v8377_v40  ;;  %vm412_vm10 = vcmp.lt.s32.totalorder %v386_v22, 15 }
 0x27f   : > { %5282 = vmatprep.subr.bf16.mxu0 %v5281_v51  ;;  %5335 = vmatprep.subr.bf16.mxu1 %v5281_v51  ;;  %v6542_v59 = vunpack.i.h.bf16 %v6540_v48  ;;  %v6541_v19 = vunpack.i.l.bf16 %v6540_v48  ;;  %vm413_vm11 = vcmp.lt.s32.totalorder %v393_v47, 15  ;;  %v8428_v9 = vsel %vm412_vm10, 1.0, %v8826_v17 }
 0x280   : > { %5284 = vmatpush1.bf16.msra.mxu0 %v5283_v30  ;;  %5344 = vmatpush1.bf16.msra.mxu1 %v5283_v30  ;;  %v2863_v25 = vsel %vm2833_vm7, %v6526_v1, %v6527_v36  ;;  %v8431_v3 = vsel %vm413_vm11, 1.0, %v8826_v17  ;;  %v3025_v36 = vstv %s378_s24 }
 0x281   : > { %v6535_v50 = vpop.permute.xlu0 %6534  ;;  %v5285_v55 = vpack.c.bf16 %v2865_v23, %v2863_v25  ;;  %v2867_v54 = vsel %vm2833_vm7, %v6541_v19, %v6542_v59 }
 0x282   : > { %v6550_v37 = vpop.permute.xlu1 %6549  ;;  %v6537_v58 = vunpack.i.h.bf16 %v6535_v50  ;;  %v6536_v44 = vunpack.i.l.bf16 %v6535_v50 }
 0x283   : > { %5286 = vmatprep.subr.bf16.mxu0 %v5285_v55  ;;  %5336 = vmatprep.subr.bf16.mxu1 %v5285_v55  ;;  %v6552_v13 = vunpack.i.h.bf16 %v6550_v37  ;;  %v6551_v16 = vunpack.i.l.bf16 %v6550_v37 }
 0x284   : > { %v2864_v62 = vsel %vm2833_vm7, %v6537_v58, %v6531_v53  ;;  %v2862_v21 = vsel %vm2833_vm7, %v6536_v44, %v6526_v1 }
 0x285   : > { %v5287_v4 = vpack.c.bf16 %v2864_v62, %v2862_v21  ;;  %v6545_v31 = vpop.permute.xlu0 %6544  ;;  %v2866_v5 = vsel %vm2833_vm7, %v6551_v16, %v6541_v19 }
 0x286   : > { %v6547_v32 = vunpack.i.h.bf16 %v6545_v31  ;;  %v6546_v0 = vunpack.i.l.bf16 %v6545_v31 }
 0x287   : > { %5288 = vmatpush1.bf16.msra.mxu0 %v5287_v4  ;;  %5345 = vmatpush1.bf16.msra.mxu1 %v5287_v4 }
 0x288   : > { %v2868_v41 = vsel %vm2833_vm7, %v6552_v13, %v6546_v0  ;;  %v2869_v56 = vsel %vm2833_vm7, %v6546_v0, %v6547_v32 }
 0x289   : > { %v5291_v38 = vpack.c.bf16 %v2868_v41, %v2866_v5  ;;  %v5289_v2 = vpack.c.bf16 %v2869_v56, %v2867_v54 }
 0x28b   : > { %5290 = vmatprep.subr.bf16.mxu0 %v5289_v2  ;;  %5337 = vmatprep.subr.bf16.mxu1 %v5289_v2 }
 0x28c   : > { %5292 = vmatpush1.bf16.msra.mxu0 %v5291_v38  ;;  %5346 = vmatpush1.bf16.msra.mxu1 %v5291_v38  ;;  %v3923_v38 = vld [vmem:[%s8771_s5] sm:$0xff] }
 0x28f   : > { %2977 = vmatmul.mubr.f32.vlgmr.msra.gmra.mrb[4].mxu0 %v2721_v26  ;;  %2983 = vmatmul.mubr.f32.vlgmr.msra.gmra.mrb[4].mxu1 %v2723_v33 }
 0x290   : > { %3144 = vmatprep.mubr.f32.mxu1 %v8826_v17 }
 0x293   : > { %v3019_v1 = vpop.permute.xlu1 %3018 }
 0x296   : > { %v3014_v27 = vpop.permute.xlu0 %3013 }
 0x325   : > { %v2167_v10 = vpop.f32.mrb[0].mxu1 }
 0x326   : > { %v2997_v63 = vadd.f32 %v2993_v6, %v2167_v10  ;;  %v2169_v45 = vpop.f32.mrb[1].mxu1 }
 0x327   : > { %v2998_v7 = vadd.f32 %v2994_v57, %v2169_v45 }
 0x329   : > { %v2173_v20 = vpop.f32.mrb[2].mxu1 }
 0x32a   : > { %v2999_v46 = vadd.f32 %v2995_v34, %v2173_v20  ;;  %v2175_v60 = vpop.f32.mrb[3].mxu1 }
 0x32b   : > { %v3000_v11 = vadd.f32 %v2996_v12, %v2175_v60 }
 0x330   : > { %v2715_v43 = vpop.f32.mrb[6].mxu0 }
 0x331   : > { %v2717_v49 = vpop.f32.mrb[7].mxu0 }
 0x362   : > { %v2978_v39 = vpop.f32.mrb[4].mxu0  ;;  %v2984_v24 = vpop.f32.mrb[4].mxu1 }
 0x363   : > { %v3001_v40 = vmul.f32 %v8428_v9, %v2978_v39  ;;  %v5347_v8 = vadd.f32 %v2984_v24, %v2715_v43  ;;  %v2980_v53 = vpop.f32.mrb[5].mxu0  ;;  %v2986_v48 = vpop.f32.mrb[5].mxu1  ;;  %v4924_v39 = vld [vmem:[%s8770_s4 + $0x18] sm:$0xff] }
 0x364   : > { %v3002_v18 = vmul.f32 %v8431_v3, %v2980_v53  ;;  %v5348_v15 = vadd.f32 %v2986_v48, %v2717_v49 }
 0x365   : > { %v3005_v14 = vadd.f32 %v3001_v40, %v2997_v63  ;;  %v3003_v30 = vmul.f32 %v5347_v8, %v8428_v9 }
 0x366   : > { %v3006_v61 = vadd.f32 %v3002_v18, %v2998_v7  ;;  %v3004_v51 = vmul.f32 %v5348_v15, %v8431_v3 }
 0x367   : > { %v3021_v23 = vadd.f32 %v3014_v27, %v3005_v14  ;;  %v3007_v25 = vadd.f32 %v3003_v30, %v2999_v46 }
 0x368   : > { %v3022_v50 = vadd.f32 %v3014_v27, %v3006_v61  ;;  %v3008_v37 = vadd.f32 %v3004_v51, %v3000_v11 }
 0x369   : > { %v3026_v55 = vmul.f32 %v3025_v36, %v3021_v23  ;;  %v3023_v58 = vadd.f32 %v3019_v1, %v3007_v25 }
 0x36a   : > { %v3027_v44 = vmul.f32 %v3025_v36, %v3022_v50  ;;  %v3024_v59 = vadd.f32 %v3019_v1, %v3008_v37 }
 0x36b   : > { %3030 = vst [vmem:[%s8438_s2] sm:$0xff] %v3026_v55  ;;  %v8441_v19 = vmax.f32 %v3026_v55, 0.0  ;;  %v3028_v62 = vmul.f32 %v3025_v36, %v3023_v58 }
 0x36c   : > { %3031 = vst [vmem:[%s8438_s2 + $0x8] sm:$0xff] %v3027_v44  ;;  %v8444_v21 = vmax.f32 %v3027_v44, 0.0  ;;  %v3029_v13 = vmul.f32 %v3025_v36, %v3024_v59  ;;  %v3048_v59 = vld [vmem:[%s8770_s4] sm:$0xff] }
 0x36d   : > { %3032 = vst [vmem:[%s8438_s2 + $0x10] sm:$0xff] %v3028_v62  ;;  %v8447_v16 = vmax.f32 %v3028_v62, 0.0 }
 0x36e   : > { %3033 = vst [vmem:[%s8438_s2 + $0x18] sm:$0xff] %v3029_v13  ;;  %v8450_v4 = vmax.f32 %v3029_v13, 0.0  ;;  %v6560_v31 = vpack.i.bf16 %v8444_v21, %v8441_v19  ;;  %v6590_v54 = vpack.i.bf16 %v8826_v17, %v8444_v21 }
 0x36f   : > { %v6595_v32 = vpack.i.bf16 %v8447_v16, %v8441_v19  ;;  %v5307_v41 = vpack.c.bf16 %v8447_v16, %v8441_v19 }
 0x370   : > { %6561 = vrot.lane.b32.xlu1 %v6560_v31, %s6901_s18  ;;  %v6555_v0 = vpack.i.bf16 %v8450_v4, %v8447_v16  ;;  %v5305_v5 = vpack.c.bf16 %v8450_v4, %v8444_v21  ;;  %v6585_v56 = vpack.i.bf16 %v8826_v17, %v8450_v4 }
 0x372   : > { %6556 = vrot.lane.b32.xlu0 %v6555_v0, %s6901_s18 }
 0x374   : > { %6566 = vrot.lane.b32.xlu1 %v8826_v17, %s6901_s18 }
 0x376   : > { %6576 = vrot.lane.b32.xlu0 %v6560_v31, %s6902_s16 }
 0x378   : > { %6571 = vrot.lane.b32.xlu1 %v6555_v0, %s6902_s16 }
 0x37a   : > { %6581 = vrot.lane.b32.xlu0 %v8826_v17, %s6902_s16 }
 0x37c   : > { %6591 = vrot.lane.b32.xlu1 %v6590_v54, %s6903_s19 }
 0x37e   : > { %6586 = vrot.lane.b32.xlu0 %v6585_v56, %s6903_s19 }
 0x380   : > { %6596 = vrot.lane.b32.xlu1 %v6595_v32, %s6903_s19 }
 0x382   : > { %6606 = vrot.lane.b32.xlu0 %v6560_v31, %s6904_s15 }
 0x384   : > { %6601 = vrot.lane.b32.xlu1 %v6555_v0, %s6904_s15 }
 0x386   : > { %6611 = vrot.lane.b32.xlu0 %v8826_v17, %s6904_s15 }
 0x388   : > { %6621 = vrot.lane.b32.xlu1 %v6595_v32, %s6906_s27 }
 0x38a   : > { %6616 = vrot.lane.b32.xlu0 %v6585_v56, %s6906_s27 }
 0x38c   : > { %6626 = vrot.lane.b32.xlu1 %v6590_v54, %s6906_s27 }
 0x38e   : > { %6636 = vrot.lane.b32.xlu0 %v6590_v54, %s6905_s23 }
 0x390   : > { %6631 = vrot.lane.b32.xlu1 %v6585_v56, %s6905_s23 }
 0x392   : > { %6641 = vrot.lane.b32.xlu0 %v6595_v32, %s6905_s23 }
 0x394   : > { %6651 = vrot.lane.b32.xlu1 %v6560_v31, %s6907_s10 }
 0x396   : > { %6646 = vrot.lane.b32.xlu0 %v6555_v0, %s6907_s10 }
 0x398   : > { %6656 = vrot.lane.b32.xlu1 %v8826_v17, %s6907_s10 }
 0x39a   : > { %6666 = vrot.lane.b32.xlu0 %v6590_v54, %s6908_s26 }
 0x39c   : > { %6661 = vrot.lane.b32.xlu1 %v6585_v56, %s6908_s26 }
 0x39e   : > { %6671 = vrot.lane.b32.xlu0 %v6595_v32, %s6908_s26 }
 0x3a0   : > { %3926 = vperm.xlu1 %6554, %v3923_v38  }
 0x3e2   : > { %v6562_v2 = vpop.permute.xlu1 %6561 }
 0x3e3   : > { %v6564_v26 = vunpack.i.h.bf16 %v6562_v2  ;;  %v6563_v33 = vunpack.i.l.bf16 %v6562_v2 }
 0x3e4   : > { %v6557_v42 = vpop.permute.xlu0 %6556 }
 0x3e5   : > { %v6559_v29 = vunpack.i.h.bf16 %v6557_v42  ;;  %v6558_v35 = vunpack.i.l.bf16 %v6557_v42  ;;  %v3070_v57 = vsel %vm751_vm1, %v6563_v33, %v6564_v26 }
 0x3e6   : > { %v6567_v22 = vpop.permute.xlu1 %6566 }
 0x3e7   : > { %v6569_v47 = vunpack.i.h.bf16 %v6567_v22  ;;  %v6568_v6 = vunpack.i.l.bf16 %v6567_v22  ;;  %v3072_v10 = vsel %vm751_vm1, %v6558_v35, %v6559_v29  ;;  %v4927_v22 = vld [vmem:[%s8770_s4 + $0x30] sm:$0xff] }
 0x3e8   : > { %v6577_v63 = vpop.permute.xlu0 %6576  ;;  %v5293_v45 = vpack.c.bf16 %v3072_v10, %v3070_v57 }
 0x3e9   : > { %v3071_v7 = vsel %vm751_vm1, %v6569_v47, %v6558_v35  ;;  %v3069_v34 = vsel %vm751_vm1, %v6568_v6, %v6563_v33  ;;  %v6579_v12 = vunpack.i.h.bf16 %v6577_v63  ;;  %v6578_v20 = vunpack.i.l.bf16 %v6577_v63 }
 0x3ea   : > { %v5295_v46 = vpack.c.bf16 %v3071_v7, %v3069_v34  ;;  %v6572_v60 = vpop.permute.xlu1 %6571  ;;  %5294 = vmatprep.subr.bf16.mxu1 %v5293_v45  ;;  %v4930_v34 = vld [vmem:[%s8770_s4 + $0x20] sm:$0xff] }
 0x3eb   : > { %v6574_v11 = vunpack.i.h.bf16 %v6572_v60  ;;  %v6573_v43 = vunpack.i.l.bf16 %v6572_v60  ;;  %v3164_v8 = vsel %vm1016_vm2, %v6578_v20, %v6579_v12 }
 0x3ec   : > { %v6582_v49 = vpop.permute.xlu0 %6581  ;;  %5296 = vmatpush1.bf16.msra.mxu1 %v5295_v46 }
 0x3ed   : > { %v6584_v24 = vunpack.i.h.bf16 %v6582_v49  ;;  %v6583_v40 = vunpack.i.l.bf16 %v6582_v49  ;;  %v3166_v53 = vsel %vm1016_vm2, %v6573_v43, %v6574_v11 }
 0x3ee   : > { %v6592_v48 = vpop.permute.xlu1 %6591  ;;  %v5297_v18 = vpack.c.bf16 %v3166_v53, %v3164_v8 }
 0x3ef   : > { %v3163_v15 = vsel %vm1016_vm2, %v6583_v40, %v6578_v20  ;;  %v3165_v27 = vsel %vm1016_vm2, %v6584_v24, %v6573_v43  ;;  %v6594_v14 = vunpack.i.h.bf16 %v6592_v48  ;;  %v6593_v30 = vunpack.i.l.bf16 %v6592_v48  ;;  %4925 = vmatmul.mubr.msk.f32.vlgmr.msra.gmra.mrb[6].mxu1 %vm824_vm0, %v4924_v39  ;;  %v4929_v48 = vld [vmem:[%s8770_s4 + $0x8] sm:$0xff] }
 0x3f0   : > { %v5299_v61 = vpack.c.bf16 %v3165_v27, %v3163_v15  ;;  %v6587_v51 = vpop.permute.xlu0 %6586  ;;  %5298 = vmatprep.subr.bf16.mxu1 %v5297_v18  ;;  %3238 = vmatprep.mubr.f32.mxu1 %v8826_v17 }
 0x3f1   : > { %v6589_v36 = vunpack.i.h.bf16 %v6587_v51  ;;  %v6588_v1 = vunpack.i.l.bf16 %v6587_v51  ;;  %v3272_v37 = vsel %vm1393_vm3, %v6593_v30, %v6594_v14 }
 0x3f2   : > { %v6597_v23 = vpop.permute.xlu1 %6596  ;;  %5300 = vmatpush1.bf16.msra.mxu1 %v5299_v61 }
 0x3f3   : > { %v6599_v25 = vunpack.i.h.bf16 %v6597_v23  ;;  %v6598_v50 = vunpack.i.l.bf16 %v6597_v23  ;;  %v3274_v55 = vsel %vm1393_vm3, %v6588_v1, %v6589_v36 }
 0x3f4   : > { %v6607_v58 = vpop.permute.xlu0 %6606  ;;  %v5301_v44 = vpack.c.bf16 %v3274_v55, %v3272_v37 }
 0x3f5   : > { %v3273_v62 = vsel %vm1393_vm3, %v6599_v25, %v6588_v1  ;;  %v3271_v13 = vsel %vm1393_vm3, %v6598_v50, %v6593_v30  ;;  %v6609_v38 = vunpack.i.h.bf16 %v6607_v58  ;;  %v6608_v2 = vunpack.i.l.bf16 %v6607_v58 }
 0x3f6   : > { %v5303_v31 = vpack.c.bf16 %v3273_v62, %v3271_v13  ;;  %v6602_v32 = vpop.permute.xlu1 %6601  ;;  %5302 = vmatprep.subr.bf16.mxu1 %v5301_v44 }
 0x3f7   : > { %v6604_v0 = vunpack.i.h.bf16 %v6602_v32  ;;  %v6603_v54 = vunpack.i.l.bf16 %v6602_v32  ;;  %4926 = vmatmul.mubr.msk.f32.vlgmr.msra.gmra.mrb[6].mxu1 %vm824_vm0, %v3048_v59  ;;  %v3446_v57 = vsel %vm824_vm0, %v6608_v2, %v6609_v38  ;;  %v4933_v32 = vld [vmem:[%s8770_s4 + $0x38] sm:$0xff] }
 0x3f8   : > { %v6612_v56 = vpop.permute.xlu0 %6611  ;;  %5304 = vmatpush1.bf16.msra.mxu1 %v5303_v31  ;;  %3346 = vmatprep.mubr.f32.mxu1 %v8826_v17 }
 0x3f9   : > { %5306 = vmatprep.subr.bf16.mxu1 %v5305_v5  ;;  %v6614_v33 = vunpack.i.h.bf16 %v6612_v56  ;;  %v6613_v42 = vunpack.i.l.bf16 %v6612_v56  ;;  %v3448_v29 = vsel %vm824_vm0, %v6603_v54, %v6604_v0 }
 0x3fa   : > { %v6622_v26 = vpop.permute.xlu1 %6621  ;;  %v5309_v63 = vpack.c.bf16 %v3448_v29, %v3446_v57 }
 0x3fb   : > { %v3445_v45 = vsel %vm824_vm0, %v6613_v42, %v6608_v2  ;;  %v3447_v21 = vsel %vm824_vm0, %v6614_v33, %v6603_v54  ;;  %v6624_v40 = vunpack.i.h.bf16 %v6622_v26 }
 0x3fc   : > { %v6617_v35 = vpop.permute.xlu0 %6616  ;;  %v5311_v46 = vpack.c.bf16 %v3447_v21, %v3445_v45 }
 0x3fd   : > { %v6619_v47 = vunpack.i.h.bf16 %v6617_v35  ;;  %v6618_v6 = vunpack.i.l.bf16 %v6617_v35  ;;  %v4936_v35 = vld [vmem:[%s8770_s4 + $0x28] sm:$0xff] }
 0x3fe   : > { %v6627_v10 = vpop.permute.xlu1 %6626 }
 0x3ff   : > { %v6629_v4 = vunpack.i.h.bf16 %v6627_v10  ;;  %v6628_v5 = vunpack.i.l.bf16 %v6627_v10  ;;  %4928 = vmatmul.mubr.msk.f32.vlgmr.msra.gmra.mrb[6].mxu1 %vm824_vm0, %v4927_v22  ;;  %v3544_v20 = vsel %vm2022_vm5, %v6618_v6, %v6619_v47  ;;  %v3543_v15 = vsel %vm2022_vm5, %v6624_v40, %v6618_v6 }
 0x400   : > { %5308 = vmatpush1.bf16.msra.mxu1 %v5307_v41  ;;  %v6637_v7 = vpop.permute.xlu0 %6636  ;;  %3426 = vmatprep.mubr.f32.mxu1 %v8826_v17  ;;  %v6623_v41 = vunpack.i.l.bf16 %v6622_v26 }
 0x401   : > { %5310 = vmatprep.subr.bf16.mxu1 %v5309_v63  ;;  %v3542_v12 = vsel %vm2022_vm5, %v6628_v5, %v6629_v4  ;;  %v6639_v49 = vunpack.i.h.bf16 %v6637_v7  ;;  %v6638_v39 = vunpack.i.l.bf16 %v6637_v7  ;;  %v4935_v4 = vld [vmem:[%s8770_s4 + $0x10] sm:$0xff]  ;;  %v4939_v7 = vld [vmem:[%s8770_s4 + $0x40] sm:$0xff] }
 0x402   : > { %v6632_v60 = vpop.permute.xlu1 %6631  ;;  %v5313_v11 = vpack.c.bf16 %v3544_v20, %v3542_v12  ;;  %v3541_v8 = vsel %vm2022_vm5, %v6623_v41, %v6628_v5 }
 0x403   : > { %4931 = vmatmul.mubr.msk.f32.vlgmr.msra.gmra.mrb[8].mxu1 %vm824_vm0, %v4930_v34  ;;  %v6634_v43 = vunpack.i.h.bf16 %v6632_v60  ;;  %v6633_v19 = vunpack.i.l.bf16 %v6632_v60  ;;  %v5315_v27 = vpack.c.bf16 %v3543_v15, %v3541_v8  ;;  %v3642_v30 = vsel %vm2300_vm4, %v6638_v39, %v6639_v49 }
 0x404   : > { %5312 = vmatpush1.bf16.msra.mxu1 %v5311_v46  ;;  %v6642_v16 = vpop.permute.xlu0 %6641  ;;  %3520 = vmatprep.mubr.f32.mxu1 %v8826_v17 }
 0x405   : > { %5314 = vmatprep.subr.bf16.mxu1 %v5313_v11  ;;  %v3644_v18 = vsel %vm2300_vm4, %v6633_v19, %v6634_v43  ;;  %v6644_v61 = vunpack.i.h.bf16 %v6642_v16  ;;  %v6643_v51 = vunpack.i.l.bf16 %v6642_v16 }
 0x406   : > { %v6652_v24 = vpop.permute.xlu1 %6651  ;;  %v5317_v36 = vpack.c.bf16 %v3644_v18, %v3642_v30 }
 0x407   : > { %v6654_v25 = vunpack.i.h.bf16 %v6652_v24  ;;  %v6653_v50 = vunpack.i.l.bf16 %v6652_v24  ;;  %v3641_v58 = vsel %vm2300_vm4, %v6643_v51, %v6638_v39  ;;  %v3643_v44 = vsel %vm2300_vm4, %v6644_v61, %v6633_v19 }
 0x408   : > { %v6647_v53 = vpop.permute.xlu0 %6646  ;;  %v5319_v54 = vpack.c.bf16 %v3643_v44, %v3641_v58  ;;  %v3938_v44 = vld [vmem:[%s8772_s6] sm:$0x3] }
 0x409   : > { %v6649_v1 = vunpack.i.h.bf16 %v6647_v53  ;;  %v6648_v23 = vunpack.i.l.bf16 %v6647_v53  ;;  %v3736_v2 = vsel %vm2564_vm6, %v6653_v50, %v6654_v25 }
 0x40a   : > { %v6657_v14 = vpop.permute.xlu1 %6656 }
 0x40b   : > { %4932 = vmatmul.mubr.msk.f32.vlgmr.msra.gmra.mrb[8].mxu1 %vm824_vm0, %v4929_v48  ;;  %v6659_v59 = vunpack.i.h.bf16 %v6657_v14  ;;  %v6658_v62 = vunpack.i.l.bf16 %v6657_v14  ;;  %v3738_v0 = vsel %vm2564_vm6, %v6648_v23, %v6649_v1 }
 0x40c   : > { %5316 = vmatpush1.bf16.msra.mxu1 %v5315_v27  ;;  %3616 = vmatprep.mubr.f32.mxu1 %v8826_v17  ;;  %v6667_v37 = vpop.permute.xlu0 %6666  ;;  %v5321_v42 = vpack.c.bf16 %v3738_v0, %v3736_v2  ;;  %v4725_v27 = vld [vmem:[%s8773_s7] sm:$0x3] }
 0x40d   : > { %5318 = vmatprep.subr.bf16.mxu1 %v5317_v36  ;;  %v6669_v56 = vunpack.i.h.bf16 %v6667_v37  ;;  %v6668_v38 = vunpack.i.l.bf16 %v6667_v37  ;;  %v3737_v26 = vsel %vm2564_vm6, %v6659_v59, %v6648_v23  ;;  %v3735_v33 = vsel %vm2564_vm6, %v6658_v62, %v6653_v50  ;;  %v4941_v36 = vld [vmem:[%s8772_s6 + $0x6] sm:$0x3] }
 0x40e   : > { %v6662_v55 = vpop.permute.xlu1 %6661  ;;  %v5323_v47 = vpack.c.bf16 %v3737_v26, %v3735_v33  ;;  %v4947_v26 = vld [vmem:[%s8772_s6 + $0x8] sm:$0x3] }
 0x40f   : > { %v6664_v13 = vunpack.i.h.bf16 %v6662_v55  ;;  %v6663_v31 = vunpack.i.l.bf16 %v6662_v55  ;;  %v3832_v6 = vsel %vm2833_vm7, %v6668_v38, %v6669_v56 }
 0x410   : > { %v6672_v29 = vpop.permute.xlu0 %6671 }
 0x411   : > { %v3834_v22 = vsel %vm2833_vm7, %v6663_v31, %v6664_v13  ;;  %v6674_v57 = vunpack.i.h.bf16 %v6672_v29  ;;  %v6673_v10 = vunpack.i.l.bf16 %v6672_v29 }
 0x412   : > { %v5325_v63 = vpack.c.bf16 %v3834_v22, %v3832_v6  ;;  %v4946_v6 = vld [vmem:[%s8772_s6 + $0x2] sm:$0x3] }
 0x413   : > { %4934 = vmatmul.mubr.msk.f32.vlgmr.msra.gmra.mrb[8].mxu1 %vm824_vm0, %v4933_v32  ;;  %v3831_v45 = vsel %vm2833_vm7, %v6673_v10, %v6668_v38  ;;  %v3833_v21 = vsel %vm2833_vm7, %v6674_v57, %v6663_v31 }
 0x414   : > { %5320 = vmatpush1.bf16.msra.mxu1 %v5319_v54  ;;  %3716 = vmatprep.mubr.f32.mxu1 %v8826_v17  ;;  %v5327_v5 = vpack.c.bf16 %v3833_v21, %v3831_v45  ;;  %v4944_v54 = vld [vmem:[%s8772_s6 + $0xc] sm:$0x3] }
 0x415   : > { %5322 = vmatprep.subr.bf16.mxu1 %v5321_v42 }
 0x417   : > { %4937 = vmatmul.mubr.msk.f32.vlgmr.msra.gmra.mrb[10].mxu1 %vm824_vm0, %v4936_v35 }
 0x418   : > { %5324 = vmatpush1.bf16.msra.mxu1 %v5323_v47  ;;  %3810 = vmatprep.mubr.f32.mxu1 %v8826_v17 }
 0x419   : > { %5326 = vmatprep.subr.bf16.mxu1 %v5325_v63 }
 0x41f   : > { %4938 = vmatmul.mubr.msk.f32.vlgmr.msra.gmra.mrb[10].mxu1 %vm824_vm0, %v4935_v4  ;;  %v3927_v40 = vpop.permute.xlu1 %3926 }
 0x420   : > { %5328 = vmatpush1.bf16.msra.mxu1 %v5327_v5  ;;  %3906 = vmatprep.mubr.f32.mxu1 %v8826_v17  ;;  %v4950_v5 = vld [vmem:[%s8772_s6 + $0xe] sm:$0x3] }
 0x427   : > { %4940 = vmatmul.mubr.msk.f32.vlgmr.msra.gmra.mrb[10].mxu1 %vm824_vm0, %v4939_v7 }
 0x428   : > { %4022 = vmatprep.mubr.f32.mxu1 %v8826_v17 }
 0x4d2   : > { %v3348_v34 = vpop.f32.mrb[6].mxu1 }
 0x4d3   : > { %v3350_v12 = vpop.f32.mrb[7].mxu1  ;;  %v3915_v20 = vmul.f32 %v8414_v52, %v3348_v34 }
 0x4d4   : > { %v3916_v46 = vmul.f32 %v8417_v28, %v3350_v12  ;;  %v4953_v12 = vld [vmem:[%s8772_s6 + $0xa] sm:$0x3] }
 0x4e6   : > { %v3618_v60 = vpop.f32.mrb[8].mxu1 }
 0x4e7   : > { %v3917_v11 = vadd.f32 %v3915_v20, %v3618_v60  ;;  %v3620_v43 = vpop.f32.mrb[9].mxu1 }
 0x4e8   : > { %v3918_v19 = vadd.f32 %v3916_v46, %v3620_v43 }
 0x4fa   : > { %v3908_v16 = vpop.f32.mrb[10].mxu1 }
 0x4fb   : > { %v3919_v41 = vmul.f32 %v8428_v9, %v3908_v16  ;;  %v3910_v49 = vpop.f32.mrb[11].mxu1 }
 0x4fc   : > { %v3920_v39 = vmul.f32 %v8431_v3, %v3910_v49 }
 0x4fd   : > { %v3921_v24 = vadd.f32 %v3919_v41, %v3917_v11  ;;  %v4956_v41 = vld [vmem:[%s8772_s6 + $0x10] sm:$0x3] }
 0x4fe   : > { %v3922_v8 = vadd.f32 %v3920_v39, %v3918_v19  ;;  %v4952_v19 = vld [vmem:[%s8772_s6 + $0x4] sm:$0x3] }
 0x4ff   : > { %v3929_v53 = vadd.f32 %v3927_v40, %v3921_v24 }
 0x500   : > { %v3930_v48 = vadd.f32 %v3927_v40, %v3922_v8 }
 0x501   : > { %v3931_v18 = vmax.f32 %v3929_v53, 0.0 }
 0x502   : > { %v3932_v15 = vmax.f32 %v3930_v48, 0.0 }
 0x503   : > { %3946 = vrot.lane.b32.xlu0 %v3931_v18, %s6901_s18 }
 0x504   : > { %3948 = vrot.lane.b32.xlu1 %v3932_v15, %s6901_s18 }
 0x507   : > { %3944 = vrot.lane.b32.xlu0 %v8826_v17, %s6901_s18  ;;  %s8686_s18 = scalar_lea.hbm %s8775_s9, %s4968_s20 }
 0x508   : > { %4031 = vrot.lane.b32.xlu1 %v3931_v18, %s6902_s16 }
 0x50b   : > { %4033 = vrot.lane.b32.xlu0 %v3932_v15, %s6902_s16 }
 0x50c   : > { %4029 = vrot.lane.b32.xlu1 %v8826_v17, %s6902_s16  ;;  %s4751_s16 = scalar_lea.sflag [#allocation11], %s7111_s30 }
 0x50f   : > { %4123 = vrot.lane.b32.xlu0 %v3932_v15, %s6903_s19 }
 0x510   : > { %4125 = vrot.lane.b32.xlu1 %v8826_v17, %s6903_s19 }
 0x513   : > { %4121 = vrot.lane.b32.xlu0 %v3931_v18, %s6903_s19  ;;  %s6792_s19 = scalar_lea.vmem %s8680_s28, 512 }
 0x514   : > { %4287 = vrot.lane.b32.xlu1 %v3931_v18, %s6904_s15  ;;  %p6793_p4 = scmp.ne.s32.totalorder %s8680_s28, %s6792_s19 }
 0x516   : > { %p6794_p6 = pnand %p6793_p4, %p7060_p12 }
 0x517   : > { %4289 = vrot.lane.b32.xlu0 %v3932_v15, %s6904_s15 }
 0x518   : > { %4285 = vrot.lane.b32.xlu1 %v8826_v17, %s6904_s15  ;;  %p6795_p8 = pneg %p6794_p6 }
 0x51b   : > { %4371 = vrot.lane.b32.xlu0 %v3931_v18, %s6906_s27 }
 0x51c   : > { %4375 = vrot.lane.b32.xlu1 %v8826_v17, %s6906_s27 }
 0x51f   : > { %4373 = vrot.lane.b32.xlu0 %v3932_v15, %s6906_s27 }
 0x520   : > { %4463 = vrot.lane.b32.xlu1 %v3932_v15, %s6905_s23 }
 0x523   : > { %4465 = vrot.lane.b32.xlu0 %v8826_v17, %s6905_s23 }
 0x524   : > { %4461 = vrot.lane.b32.xlu1 %v3931_v18, %s6905_s23  ;;  %s6910_s23 = smov [#allocation10]  }
 0x525   : > { %s6796_s27 = sshll.u32 %s6910_s23, 4  ;;  %s6797_s27 = int_to_ptr.vmem [resolvable:$false] %s6796_s27 }
 0x526   : > { %s6798_s2 = scalar_lea.vmem %s6797_s27, 1024  ;;  %p6799_p10 = scmp.lt.s32.totalorder %s8680_s28, %s6797_s27 }
 0x527   : > { %4547 = vrot.lane.b32.xlu0 %v3931_v18, %s6907_s10  ;;  %p6800_p11 = scmp.lt.s32.totalorder %s6798_s2, %s6792_s19 }
 0x528   : > { %4549 = vrot.lane.b32.xlu1 %v3932_v15, %s6907_s10 }
 0x529   : > { %p6801_p3 = por %p6800_p11, %p6799_p10 }
 0x52b   : > { %4545 = vrot.lane.b32.xlu0 %v8826_v17, %s6907_s10  ;;  %p6802_p7 = pnand %p6801_p3, %p6795_p8 }
 0x52c   : > { %4633 = vrot.lane.b32.xlu1 %v3932_v15, %s6908_s26 }
 0x52f   : > { %4635 = vrot.lane.b32.xlu0 %v8826_v17, %s6908_s26 }
 0x530   : > { %4631 = vrot.lane.b32.xlu1 %v3931_v18, %s6908_s26 }
 0x533   : > { %4728 = vperm.xlu0 %6553, %v4725_v27  }
 0x575   : > { %v3947_v14 = vpop.permute.xlu0 %3946 }
 0x576   : > { %v3949_v30 = vpop.permute.xlu1 %3948 }
 0x577   : > { %v3951_v61 = vsel %vm751_vm1, %v3947_v14, %v3949_v30 }
 0x578   : > { %3958 = vmatprep.subr.mxu1 %v3951_v61 }
 0x579   : > { %v3945_v51 = vpop.permute.xlu0 %3944 }
 0x57a   : > { %v3950_v1 = vsel %vm751_vm1, %v3945_v51, %v3947_v14  ;;  %v4032_v23 = vpop.permute.xlu1 %4031 }
 0x57b   : > { %3959 = vmatpush1.msra.mxu1 %v3950_v1 }
 0x57c   : > { %4942 = vmatmul.mubr.msk.f32.vlgmr.msra.gmra.mrb[12].mxu1 %vm3954_vm12, %v4941_v36 }
 0x57d   : > { %v4034_v25 = vpop.permute.xlu0 %4033  ;;  %4106 = vmatprep.mubr.f32.mxu1 %v8826_v17 }
 0x57e   : > { %v4030_v50 = vpop.permute.xlu1 %4029  ;;  %v4036_v37 = vsel %vm1016_vm2, %v4032_v23, %v4034_v25 }
 0x57f   : > { %v4035_v55 = vsel %vm1016_vm2, %v4030_v50, %v4032_v23  ;;  %4042 = vmatprep.subr.mxu1 %v4036_v37 }
 0x580   : > { %4043 = vmatpush1.msra.mxu1 %v4035_v55 }
 0x581   : > { %v4124_v58 = vpop.permute.xlu0 %4123 }
 0x582   : > { %v4126_v59 = vpop.permute.xlu1 %4125 }
 0x583   : > { %v4128_v62 = vsel %vm1393_vm3, %v4124_v58, %v4126_v59 }
 0x584   : > { %4943 = vmatmul.mubr.msk.f32.vlgmr.msra.gmra.mrb[12].mxu1 %vm3954_vm12, %v3938_v44  ;;  %4134 = vmatprep.subr.mxu1 %v4128_v62 }
 0x585   : > { %v4122_v13 = vpop.permute.xlu0 %4121  ;;  %4198 = vmatprep.mubr.f32.mxu1 %v8826_v17 }
 0x586   : > { %v4127_v31 = vsel %vm1393_vm3, %v4122_v13, %v4124_v58  ;;  %v4288_v32 = vpop.permute.xlu1 %4287 }
 0x587   : > { %4135 = vmatpush1.msra.mxu1 %v4127_v31 }
 0x588   : > { %4214 = vmatprep.subr.mxu1 %v3932_v15 }
 0x589   : > { %v4290_v0 = vpop.permute.xlu0 %4289 }
 0x58a   : > { %v4286_v56 = vpop.permute.xlu1 %4285  ;;  %v4292_v2 = vsel %vm824_vm0, %v4288_v32, %v4290_v0 }
 0x58b   : > { %v4291_v42 = vsel %vm824_vm0, %v4286_v56, %v4288_v32 }
 0x58c   : > { %4945 = vmatmul.mubr.msk.f32.vlgmr.msra.gmra.mrb[12].mxu1 %vm3954_vm12, %v4944_v54 }
 0x58d   : > { %4215 = vmatpush1.msra.mxu1 %v3931_v18  ;;  %v4372_v38 = vpop.permute.xlu0 %4371  ;;  %4278 = vmatprep.mubr.f32.mxu1 %v8826_v17 }
 0x58e   : > { %4298 = vmatprep.subr.mxu1 %v4292_v2  ;;  %v4376_v33 = vpop.permute.xlu1 %4375 }
 0x590   : > { %4948 = vmatmul.mubr.msk.f32.vlgmr.msra.gmra.mrb[14].mxu1 %vm3954_vm12, %v4947_v26 }
 0x591   : > { %4299 = vmatpush1.msra.mxu1 %v4291_v42  ;;  %v4374_v29 = vpop.permute.xlu0 %4373  ;;  %4362 = vmatprep.mubr.f32.mxu1 %v8826_v17 }
 0x592   : > { %v4464_v35 = vpop.permute.xlu1 %4463  ;;  %v4378_v22 = vsel %vm2022_vm5, %v4374_v29, %v4376_v33  ;;  %v4377_v10 = vsel %vm2022_vm5, %v4372_v38, %v4374_v29 }
 0x593   : > { %4384 = vmatprep.subr.mxu1 %v4378_v22 }
 0x595   : > { %v4466_v47 = vpop.permute.xlu0 %4465 }
 0x596   : > { %v4462_v57 = vpop.permute.xlu1 %4461  ;;  %v4468_v45 = vsel %vm2300_vm4, %v4464_v35, %v4466_v47 }
 0x597   : > { %v4467_v7 = vsel %vm2300_vm4, %v4462_v57, %v4464_v35 }
 0x598   : > { %4949 = vmatmul.mubr.msk.f32.vlgmr.msra.gmra.mrb[14].mxu1 %vm3954_vm12, %v4946_v6 }
 0x599   : > { %4385 = vmatpush1.msra.mxu1 %v4377_v10  ;;  %v4548_v63 = vpop.permute.xlu0 %4547  ;;  %4448 = vmatprep.mubr.f32.mxu1 %v8826_v17 }
 0x59a   : > { %4474 = vmatprep.subr.mxu1 %v4468_v45  ;;  %v4550_v21 = vpop.permute.xlu1 %4549 }
 0x59b   : > { %v4552_v34 = vsel %vm2564_vm6, %v4548_v63, %v4550_v21 }
 0x59d   : > { %v4546_v4 = vpop.permute.xlu0 %4545 }
 0x59e   : > { %v4634_v46 = vpop.permute.xlu1 %4633  ;;  %v4551_v60 = vsel %vm2564_vm6, %v4546_v4, %v4548_v63 }
 0x5a0   : > { %4951 = vmatmul.mubr.msk.f32.vlgmr.msra.gmra.mrb[14].mxu1 %vm3954_vm12, %v4950_v5 }
 0x5a1   : > { %4475 = vmatpush1.msra.mxu1 %v4467_v7  ;;  %4538 = vmatprep.mubr.f32.mxu1 %v8826_v17  ;;  %v4636_v20 = vpop.permute.xlu0 %4635 }
 0x5a2   : > { %4558 = vmatprep.subr.mxu1 %v4552_v34  ;;  %v4638_v11 = vsel %vm2833_vm7, %v4634_v46, %v4636_v20  ;;  %v4632_v43 = vpop.permute.xlu1 %4631 }
 0x5a3   : > { %v4637_v16 = vsel %vm2833_vm7, %v4632_v43, %v4634_v46 }
 0x5a4   : > { %4954 = vmatmul.mubr.msk.f32.vlgmr.msra.gmra.mrb[16].mxu1 %vm3954_vm12, %v4953_v12 }
 0x5a5   : > { %4559 = vmatpush1.msra.mxu1 %v4551_v60  ;;  %4622 = vmatprep.mubr.f32.mxu1 %v8826_v17 }
 0x5a6   : > { %4644 = vmatprep.subr.mxu1 %v4638_v11 }
 0x5ac   : > { %4955 = vmatmul.mubr.msk.f32.vlgmr.msra.gmra.mrb[16].mxu1 %vm3954_vm12, %v4952_v19 }
 0x5ad   : > { %4645 = vmatpush1.msra.mxu1 %v4637_v16  ;;  %4708 = vmatprep.mubr.f32.mxu1 %v8826_v17 }
 0x5b4   : > { %4957 = vmatmul.mubr.msk.f32.vlgmr.msra.gmra.mrb[16].mxu1 %vm3954_vm12, %v4956_v41 }
 0x5b5   : > { %6805 = shalt.err (!%p6802_p7)
}
 0x5b6   : > { %s6806_s10 = scalar_lea.hbm %s8686_s18, 512  ;;  %s6810_s20 = scalar_lea.hbm %s8775_s9, 1024 }
 0x5b7   : > { %p6807_p9 = scmp.ne.s32.totalorder %s8686_s18, %s6806_s10  ;;  %p6811_p5 = scmp.lt.u32.totalorder %s8686_s18, %s8775_s9 }
 0x5b8   : > { %p6812_p13 = scmp.lt.u32.totalorder %s6810_s20, %s6806_s10  ;;  %p6814_p4 = scmp.lt.u32.totalorder %s6806_s10, %s8686_s18 }
 0x5b9   : > { %p6808_p1 = pnand %p6807_p9, %p7060_p12 }
 0x5ba   : > { %p6813_p2 = por %p6812_p13, %p6811_p5 }
 0x5bb   : > { %p6809_p0 = pneg %p6808_p1 }
 0x5bc   : > { %p6815_p6 = por %p6814_p4, %p6813_p2 }
 0x5be   : > { %p6816_p8 = pnand %p6815_p6, %p6809_p0 }
 0x5c0   : > { %6819 = shalt.err (!%p6816_p8)
}
 0x5c1   : > { %s6911_s19 = smov 256   ;;  %s4900_s23 = sshll.u32 %s7111_s30, 2  ;;  %v4729_v61 = vpop.permute.xlu0 %4728 }
 0x5c2   : > { %5405 = dma.vmem_to_hbm [thread:$0]  (%p7060_p12), %s8680_s28, 512, %s8686_s18, %s4751_s16, %s6911_s19, %s6911_s19, %s6904_s15  }
 0x5c3   : > { %s4967_s15 = sshll.u32 %s6987_s0, 6  ;;  %s370_s28 = scalar_lea.vmem [#allocation9], %s4900_s23 }
 0x5c4   : > { %s4765_s18 = sshll.u32 %s370_s28, 4  ;;  %s8722_s2 = scalar_lea.hbm %s8774_s8, %s4967_s15  ;;  %s8724_s18 = int_to_ptr.vmem [resolvable:$true] %s4765_s18 }
 0x5c5   : > { %s4746_s10 = scalar_lea.sflag [#allocation6], %s7111_s30  ;;  %s6820_s26 = scalar_lea.vmem %s8724_s18, 64 }
 0x5c6   : > { %p6821_p10 = scmp.ne.s32.totalorder %s8724_s18, %s6820_s26  ;;  %s6912_s0 = smov [#allocation9]  }
 0x5c7   : > { %s6824_s25 = sshll.u32 %s6912_s0, 4  ;;  %s6825_s25 = int_to_ptr.vmem [resolvable:$false] %s6824_s25 }
 0x5c8   : > { %p6822_p11 = pnand %p6821_p10, %p7060_p12  ;;  %s6826_s20 = scalar_lea.vmem %s6825_s25, 128 }
 0x5c9   : > { %p6827_p7 = scmp.lt.s32.totalorder %s8724_s18, %s6825_s25  ;;  %p6828_p9 = scmp.lt.s32.totalorder %s6826_s20, %s6820_s26 }
 0x5ca   : > { %p6823_p3 = pneg %p6822_p11 }
 0x5cb   : > { %p6829_p1 = por %p6828_p9, %p6827_p7 }
 0x5cd   : > { %p6830_p0 = pnand %p6829_p1, %p6823_p3 }
 0x65f   : > { %v4200_v17 = vpop.f32.mrb[12].mxu1 }
 0x660   : > { %v4202_v49 = vpop.f32.mrb[13].mxu1  ;;  %v4717_v39 = vmul.f32 %v8414_v52, %v4200_v17 }
 0x661   : > { %v4718_v24 = vmul.f32 %v8417_v28, %v4202_v49 }
 0x673   : > { %v4450_v40 = vpop.f32.mrb[14].mxu1 }
 0x674   : > { %v4719_v8 = vadd.f32 %v4717_v39, %v4450_v40  ;;  %v4452_v53 = vpop.f32.mrb[15].mxu1 }
 0x675   : > { %v4720_v48 = vadd.f32 %v4718_v24, %v4452_v53 }
 0x687   : > { %v4710_v18 = vpop.f32.mrb[16].mxu1 }
 0x688   : > { %v4721_v15 = vmul.f32 %v8428_v9, %v4710_v18  ;;  %v4712_v27 = vpop.f32.mrb[17].mxu1 }
 0x689   : > { %v4722_v14 = vmul.f32 %v8431_v3, %v4712_v27 }
 0x68a   : > { %v4723_v30 = vadd.f32 %v4721_v15, %v4719_v8 }
 0x68b   : > { %v4724_v51 = vadd.f32 %v4722_v14, %v4720_v48 }
 0x68c   : > { %v4731_v36 = vadd.f32 %v4729_v61, %v4723_v30 }
 0x68d   : > { %v4732_v52 = vadd.f32 %v4729_v61, %v4724_v51 }
 0x68f   : > { %v4735_v28 = vcombine.low %v4731_v36, %v4732_v52 }
 0x691   : > { %4958 = vst.sshfl [vmem:[%s370_s28] sm:$0x33 pattern:$0x76325410] %v4735_v28 }
 0x692   : > { %6833 = shalt.err (!%p6830_p0)
}
 0x693   : > { %s6834_s30 = scalar_lea.hbm %s8722_s2, 64  ;;  %s6838_s19 = scalar_lea.hbm %s8774_s8, 128 }
 0x694   : > { %p6835_p5 = scmp.ne.s32.totalorder %s8722_s2, %s6834_s30  ;;  %p6839_p4 = scmp.lt.u32.totalorder %s8722_s2, %s8774_s8 }
 0x695   : > { %p6840_p6 = scmp.lt.u32.totalorder %s6838_s19, %s6834_s30  ;;  %p6842_p10 = scmp.lt.u32.totalorder %s6834_s30, %s8722_s2 }
 0x696   : > { %p6836_p13 = pnand %p6835_p5, %p7060_p12 }
 0x697   : > { %p6841_p8 = por %p6840_p6, %p6839_p4 }
 0x698   : > { %p6837_p2 = pneg %p6836_p13 }
 0x699   : > { %p6843_p11 = por %p6842_p10, %p6841_p8 }
 0x69b   : > { %p6844_p3 = pnand %p6843_p11, %p6837_p2 }
 0x69d   : > { %6847 = shalt.err (!%p6844_p3)
}
 0x69e   : > { %5404 = dma.vmem_to_hbm [thread:$0]  (%p7060_p12), %s8724_s18, 64, %s8722_s2, %s4746_s10  }
 0x69f PF: > { %s4793_s28 = sand.u32 1, %s6882_s11   ;;  %p8842_p7 = scmp.ne.s32.totalorder %s8799_s17, 0 }
 0x6a0   : > { %p8843_p9 = scmp.ge.s32.totalorder %s6894_s14, 2  ;;  %s4794_s16 = scalar_lea.sflag [#allocation6], %s4793_s28 }
 0x6a2   : > { %p5417_p1 = pnand %p8843_p9, %p8842_p7 }
 0x6a4   : > { %6873 = dma.done.wait (!%p5417_p1), %s4794_s16, 64  }
 0x6a5   : > { %6875 = vsyncadd (!%p5417_p1), %s4794_s16, 4294967232  ;;  %s4803_s27 = scalar_lea.sflag [#allocation11], %s4793_s28 }
 0x6a6   : > { %6877 = dma.done.wait (!%p5417_p1), %s4803_s27, 512  }
 0x6a7   : > { %6879 = vsyncadd (!%p5417_p1), %s4803_s27, 4294966784  ;;  %s8844_s29 = sld [smem:[#allocation16_spill]]  ;;  %p28_p12 = scmp.ge.s32.totalorder %s7022_s22, 4  }
 0x6a8   : > { %s8845_s11 = smov %s6886_s12  ;;  %s8846_s12 = smov %s6890_s13 }
 0x6a9   : > { %s8848_s14 = smov %s7022_s22  ;;  %30 = sbr.rel (!%p28_p12) target bundleno = 11 (0xb), region = 142 }
 0x6ad   : > { %s8847_s13 = smov %s8844_s29 }
 0x6b0   :  { %4808 = vsyncpa [#allocation5], 1 }
 0x6b1   :  { %4810 = vsyncpa [#allocation5 + $0x1], 1 }
 0x6b2   :  { %4811 = vsyncpa [#allocation8], 1 }
 0x6b3   :  { %4812 = vsyncpa [#allocation6], 1 }
 0x6b4   :  { %4814 = vsyncpa [#allocation6 + $0x1], 1 }
 0x6b5   :  { %4815 = vsyncpa [#allocation11], 1 }
 0x6b6   :  { %4817 = vsyncpa [#allocation11 + $0x1], 1 }

</bundles_post_ra>
